<compile_context>
chip_gen: v6e
topology: v6e:2x2x1
jax: 0.10.0
libtpu: 0.0.40
codegen_flags: <defaults>
</compile_context>

<pallas_src>
import functools
import math

import jax
import jax.numpy as jnp
from jax.experimental import pallas as pl
from jax.experimental.pallas import tpu as pltpu

# ---- model hyper-parameters (small, consistent with the forward contract) ----
DIM = 32
N_HEADS = 4
HEAD_DIM = DIM // N_HEADS
FFN_DIM = 64
N_LAYERS = 2
SRC_LEN = 8
BSZ = 2
MEM_LEN = 4
EPS = 1e-5
TR_WEIGHT_SHARE = False

_W_ORDER = ("wq", "bq", "wk", "bk", "wv", "bv", "wo", "bo",
            "w1", "b1", "w2", "b2", "ln1_g", "ln1_b", "ln2_g", "ln2_b")


# ----------------------------- fused Pallas kernel ----------------------------

def _build_stack_kernel(*, n_layers, S, B, D, H, M, eps, has_norm):
    """Builds the fused encoder-stack kernel for static (n_layers, S, B, D, H, M)."""
    K = M + S
    hd = D // H
    scale = 1.0 / math.sqrt(hd)
    nw = len(_W_ORDER)

    def layer_norm(x, g, b):
        mu = jnp.mean(x, axis=-1, keepdims=True)
        var = jnp.mean((x - mu) ** 2, axis=-1, keepdims=True)
        return (x - mu) * jax.lax.rsqrt(var + eps) * g + b

    def kernel(*refs):
        # ---- parse refs (inputs, outputs, scratch) in the fixed wrapper order ----
        idx = 0
        src_ref = refs[idx]; idx += 1          # [B*S, D] batch-major flat
        pos_ref = refs[idx]; idx += 1          # [B*K, D] batch-major flat
        mask_ref = refs[idx]; idx += 1         # [S, K] additive mask
        mem_refs = []
        if M > 0:
            for _ in range(n_layers):
                mem_refs.append(refs[idx]); idx += 1   # [B*M, D] each
        layer_w = []
        for _ in range(n_layers):
            layer_w.append(refs[idx:idx + nw]); idx += nw
        if has_norm:
            ng_ref = refs[idx]; idx += 1
            nb_ref = refs[idx]; idx += 1
        out_ref = refs[idx]; idx += 1          # [B*S, D]
        newmem_refs = []
        if M > 0:
            for _ in range(n_layers):
                newmem_refs.append(refs[idx]); idx += 1  # [B*M, D] each
        cat_scr = refs[idx]; idx += 1          # VMEM scratch [B*K, D]
        attn_scr = refs[idx]; idx += 1         # VMEM scratch [B*S, D]

        pos = pos_ref[...]
        mask = mask_ref[...]
        x = src_ref[...]                       # current layer input, stays in VMEM/vregs

        for l in range(n_layers):
            (wq, bq, wk, bk, wv, bv, wo, bo,
             w1, b1, w2, b2, g1, be1, g2, be2) = layer_w[l]

            # ---- cat(mem, x) per batch (batch-major rows), plus memory caching ----
            if M > 0:
                mem = mem_refs[l][...]
                for b in range(B):
                    cat_scr[b * K:b * K + M, :] = mem[b * M:(b + 1) * M, :]
                    cat_scr[b * K + M:(b + 1) * K, :] = x[b * S:(b + 1) * S, :]
                    # _cache_mem: last M rows of cat(prev_mem, layer_input) for this batch
                    newmem_refs[l][b * M:(b + 1) * M, :] = cat_scr[b * K + S:(b + 1) * K, :]
                cat = cat_scr[...]             # [B*K, D]
            else:
                cat = x

            # ---- projections (positional embedding folded into the key path) ----
            kin = cat + pos
            q = jnp.dot(x, wq[...], preferred_element_type=jnp.float32) + bq[...]    # [B*S, D]
            k = jnp.dot(kin, wk[...], preferred_element_type=jnp.float32) + bk[...]  # [B*K, D]
            v = jnp.dot(cat, wv[...], preferred_element_type=jnp.float32) + bv[...]  # [B*K, D]

            # ---- multi-head attention: unrolled over (batch, head), VMEM resident ----
            for b in range(B):
                q_b = q[b * S:(b + 1) * S, :]
                k_b = k[b * K:(b + 1) * K, :]
                v_b = v[b * K:(b + 1) * K, :]
                for h in range(H):
                    q_bh = q_b[:, h * hd:(h + 1) * hd]      # [S, hd]
                    k_bh = k_b[:, h * hd:(h + 1) * hd]      # [K, hd]
                    v_bh = v_b[:, h * hd:(h + 1) * hd]      # [K, hd]
                    # contract head_dim directly (q @ k^T without an explicit transpose)
                    s = jax.lax.dot_general(
                        q_bh, k_bh, (((1,), (1,)), ((), ())),
                        preferred_element_type=jnp.float32) * scale    # [S, K]
                    s = s + mask
                    s = s - jnp.max(s, axis=-1, keepdims=True)
                    p = jnp.exp(s)
                    o = jnp.dot(p, v_bh, preferred_element_type=jnp.float32)
                    o = o * pl.reciprocal(jnp.sum(p, axis=-1, keepdims=True), approx=True)
                    # merge heads directly into a lane-dense [B*S, D] slab
                    attn_scr[b * S:(b + 1) * S, h * hd:(h + 1) * hd] = o

            attn_out = jnp.dot(attn_scr[...], wo[...],
                               preferred_element_type=jnp.float32) + bo[...]

            # ---- residual + post-norm, FFN, residual + post-norm (dropout = identity) ----
            x = layer_norm(x + attn_out, g1[...], be1[...])
            hdn = jnp.maximum(jnp.dot(x, w1[...], preferred_element_type=jnp.float32) + b1[...],
                              0.0)
            ff = jnp.dot(hdn, w2[...], preferred_element_type=jnp.float32) + b2[...]
            x = layer_norm(x + ff, g2[...], be2[...])

        if has_norm:
            x = layer_norm(x, ng_ref[...], nb_ref[...])
        out_ref[...] = x.astype(out_ref.dtype)

    return kernel


# --------------------------- parameter initialization -------------------------

def xavier_uniform(key, shape):
    fan_in, fan_out = shape
    limit = math.sqrt(6.0 / (fan_in + fan_out))
    return jax.random.uniform(key, shape, jnp.float32, -limit, limit)


def init_layer_params(key):
    ks = jax.random.split(key, 6)
    return {
        "wq": xavier_uniform(ks[0], (DIM, DIM)), "bq": jnp.zeros((1, DIM), jnp.float32),
        "wk": xavier_uniform(ks[1], (DIM, DIM)), "bk": jnp.zeros((1, DIM), jnp.float32),
        "wv": xavier_uniform(ks[2], (DIM, DIM)), "bv": jnp.zeros((1, DIM), jnp.float32),
        "wo": xavier_uniform(ks[3], (DIM, DIM)), "bo": jnp.zeros((1, DIM), jnp.float32),
        "w1": xavier_uniform(ks[4], (DIM, FFN_DIM)), "b1": jnp.zeros((1, FFN_DIM), jnp.float32),
        "w2": xavier_uniform(ks[5], (FFN_DIM, DIM)), "b2": jnp.zeros((1, DIM), jnp.float32),
        "ln1_g": jnp.ones((1, DIM), jnp.float32), "ln1_b": jnp.zeros((1, DIM), jnp.float32),
        "ln2_g": jnp.ones((1, DIM), jnp.float32), "ln2_b": jnp.zeros((1, DIM), jnp.float32),
    }


# ------------------------------- forward pass ---------------------------------

@functools.partial(jax.jit, static_argnames=("tr_weight_share", "n_layers", "n_heads"))
def transformer_encoder_forward(layer_params, norm_params, src, pos_emb, mems=None, mask=None,
                                tr_weight_share=TR_WEIGHT_SHARE, n_layers=N_LAYERS,
                                n_heads=N_HEADS):
    """src: [S, B, D]; pos_emb: [K, B, D]; mems: list of [M, B, D]; mask: [S, K] additive."""
    S, B, D = src.shape
    has_mem = (mems is not None) and (mems[0] is not None) and (mems[0].shape[0] > 0)
    M = mems[0].shape[0] if has_mem else 0
    K = M + S
    assert pos_emb.shape[0] == K and pos_emb.shape[1] == B
    has_norm = norm_params is not None

    if mask is None:
        mask = jnp.zeros((S, K), jnp.float32)
    mask = mask.astype(jnp.float32)

    # one-time layout change at the kernel boundary: [L, B, D] -> batch-major flat [B*L, D]
    def to_bm(t):
        return jnp.transpose(t.astype(jnp.float32), (1, 0, 2)).reshape(B * t.shape[0], D)

    inputs = [to_bm(src), to_bm(pos_emb), mask]
    if has_mem:
        for l in range(n_layers):
            inputs.append(to_bm(mems[l]))
    for l in range(n_layers):
        p = layer_params[0] if tr_weight_share else layer_params[l]
        for name in _W_ORDER:
            inputs.append(p[name])
    if has_norm:
        inputs += [norm_params["g"], norm_params["b"]]

    out_shapes = [jax.ShapeDtypeStruct((B * S, D), jnp.float32)]
    if has_mem:
        out_shapes += [jax.ShapeDtypeStruct((B * M, D), jnp.float32) for _ in range(n_layers)]

    kernel = _build_stack_kernel(n_layers=n_layers, S=S, B=B, D=D, H=n_heads, M=M,
                                 eps=EPS, has_norm=has_norm)

    results = pl.pallas_call(
        kernel,
        out_shape=out_shapes,
        in_specs=[pl.BlockSpec(memory_space=pltpu.MemorySpace.VMEM) for _ in inputs],
        out_specs=[pl.BlockSpec(memory_space=pltpu.MemorySpace.VMEM) for _ in out_shapes],
        scratch_shapes=[pltpu.VMEM((B * K, D), jnp.float32),   # cat(mem, src) buffer
                        pltpu.VMEM((B * S, D), jnp.float32)],  # merged-heads attention slab
    )(*inputs)

    output = results[0].reshape(B, S, D).transpose(1, 0, 2)    # back to [S, B, D]
    new_mems = []
    for l in range(n_layers):
        if has_mem:
            nm = results[1 + l].reshape(B, M, D).transpose(1, 0, 2)   # [M, B, D]
            new_mems.append(jax.lax.stop_gradient(nm))
        else:
            new_mems.append(None)
    return output, new_mems


# ----------------------------------- main --------------------------------------

if __name__ == "__main__":
    root = jax.random.PRNGKey(0)
    k_params, k_src, k_pos, k_mem = jax.random.split(root, 4)

    # deterministic parameter init (synthetic; not a checkpoint load)
    layer_keys = jax.random.split(k_params, N_LAYERS)
    layer_params = [init_layer_params(layer_keys[i]) for i in range(N_LAYERS)]
    norm_params = {"g": jnp.ones((1, DIM), jnp.float32), "b": jnp.zeros((1, DIM), jnp.float32)}

    KLEN = MEM_LEN + SRC_LEN
    src = jax.random.normal(k_src, (SRC_LEN, BSZ, DIM), jnp.float32)      # [src_len, bsz, dim]
    pos_emb = jax.random.normal(k_pos, (KLEN, BSZ, DIM), jnp.float32)     # [klen, bsz, dim]
    mem_keys = jax.random.split(k_mem, N_LAYERS)
    mems = [jax.random.normal(mem_keys[i], (MEM_LEN, BSZ, DIM), jnp.float32)
            for i in range(N_LAYERS)]                                     # [mem_len, bsz, dim] * n_layers

    # additive attention mask [src_len, klen]: memory fully visible, causal over src
    row = jnp.arange(SRC_LEN)[:, None]
    col = jnp.arange(KLEN)[None, :] - MEM_LEN
    mask = jnp.where(col <= row, 0.0, -1e9).astype(jnp.float32)

    output, new_mems = transformer_encoder_forward(layer_params, norm_params,
                                                   src, pos_emb, mems=mems, mask=mask,
                                                   tr_weight_share=TR_WEIGHT_SHARE)
    output = jax.block_until_ready(output)
    for m in new_mems:
        if m is not None:
            jax.block_until_ready(m)

    assert output.shape == (SRC_LEN, BSZ, DIM)
    assert all(m.shape == (MEM_LEN, BSZ, DIM) for m in new_mems)
    assert bool(jnp.all(jnp.isfinite(output)))
    # _cache_mem check: layer-0 new memory must equal the last MEM_LEN src positions
    assert bool(jnp.allclose(new_mems[0], src[-MEM_LEN:]))
    print("KERNEL_OK")
</pallas_src>

<mosaic_0001>
module attributes {stable_mosaic.version = 11 : i64} {
  func.func @kernel(%arg0: memref<16x32xf32, #tpu.memory_space<vmem>>, %arg1: memref<24x32xf32, #tpu.memory_space<vmem>>, %arg2: memref<8x12xf32, #tpu.memory_space<vmem>>, %arg3: memref<8x32xf32, #tpu.memory_space<vmem>>, %arg4: memref<8x32xf32, #tpu.memory_space<vmem>>, %arg5: memref<32x32xf32, #tpu.memory_space<vmem>>, %arg6: memref<1x32xf32, #tpu.memory_space<vmem>>, %arg7: memref<32x32xf32, #tpu.memory_space<vmem>>, %arg8: memref<1x32xf32, #tpu.memory_space<vmem>>, %arg9: memref<32x32xf32, #tpu.memory_space<vmem>>, %arg10: memref<1x32xf32, #tpu.memory_space<vmem>>, %arg11: memref<32x32xf32, #tpu.memory_space<vmem>>, %arg12: memref<1x32xf32, #tpu.memory_space<vmem>>, %arg13: memref<32x64xf32, #tpu.memory_space<vmem>>, %arg14: memref<1x64xf32, #tpu.memory_space<vmem>>, %arg15: memref<64x32xf32, #tpu.memory_space<vmem>>, %arg16: memref<1x32xf32, #tpu.memory_space<vmem>>, %arg17: memref<1x32xf32, #tpu.memory_space<vmem>>, %arg18: memref<1x32xf32, #tpu.memory_space<vmem>>, %arg19: memref<1x32xf32, #tpu.memory_space<vmem>>, %arg20: memref<1x32xf32, #tpu.memory_space<vmem>>, %arg21: memref<32x32xf32, #tpu.memory_space<vmem>>, %arg22: memref<1x32xf32, #tpu.memory_space<vmem>>, %arg23: memref<32x32xf32, #tpu.memory_space<vmem>>, %arg24: memref<1x32xf32, #tpu.memory_space<vmem>>, %arg25: memref<32x32xf32, #tpu.memory_space<vmem>>, %arg26: memref<1x32xf32, #tpu.memory_space<vmem>>, %arg27: memref<32x32xf32, #tpu.memory_space<vmem>>, %arg28: memref<1x32xf32, #tpu.memory_space<vmem>>, %arg29: memref<32x64xf32, #tpu.memory_space<vmem>>, %arg30: memref<1x64xf32, #tpu.memory_space<vmem>>, %arg31: memref<64x32xf32, #tpu.memory_space<vmem>>, %arg32: memref<1x32xf32, #tpu.memory_space<vmem>>, %arg33: memref<1x32xf32, #tpu.memory_space<vmem>>, %arg34: memref<1x32xf32, #tpu.memory_space<vmem>>, %arg35: memref<1x32xf32, #tpu.memory_space<vmem>>, %arg36: memref<1x32xf32, #tpu.memory_space<vmem>>, %arg37: memref<1x32xf32, #tpu.memory_space<vmem>>, %arg38: memref<1x32xf32, #tpu.memory_space<vmem>>, %arg39: memref<16x32xf32, #tpu.memory_space<vmem>>, %arg40: memref<8x32xf32, #tpu.memory_space<vmem>>, %arg41: memref<8x32xf32, #tpu.memory_space<vmem>>, %arg42: memref<24x32xf32, #tpu.memory_space<vmem>>, %arg43: memref<16x32xf32, #tpu.memory_space<vmem>>) attributes {dimension_semantics = [], scalar_prefetch = 0 : i64, scratch_operands = 2 : i64, tpu.core_type = #tpu.core_type<tc>} {
    %c0 = arith.constant 0 : index
    %c0_0 = arith.constant 0 : index
    %0 = vector.load %arg1[%c0, %c0_0] : memref<24x32xf32, #tpu.memory_space<vmem>>, vector<24x32xf32>
    %c0_1 = arith.constant 0 : index
    %c0_2 = arith.constant 0 : index
    %1 = vector.load %arg2[%c0_1, %c0_2] : memref<8x12xf32, #tpu.memory_space<vmem>>, vector<8x12xf32>
    %c0_3 = arith.constant 0 : index
    %c0_4 = arith.constant 0 : index
    %2 = vector.load %arg0[%c0_3, %c0_4] : memref<16x32xf32, #tpu.memory_space<vmem>>, vector<16x32xf32>
    %c0_5 = arith.constant 0 : index
    %c0_6 = arith.constant 0 : index
    %3 = vector.load %arg3[%c0_5, %c0_6] : memref<8x32xf32, #tpu.memory_space<vmem>>, vector<8x32xf32>
    %4 = vector.extract_strided_slice %3 {offsets = [0, 0], sizes = [4, 32], strides = [1, 1]} : vector<8x32xf32> to vector<4x32xf32>
    %c0_7 = arith.constant 0 : index
    %c0_8 = arith.constant 0 : index
    %5 = vector.load %arg42[%c0_7, %c0_8] : memref<24x32xf32, #tpu.memory_space<vmem>>, vector<4x32xf32>
    tpu.vector_store %arg42[%c0_7, %c0_8], %4 {strides = array<i32>} : memref<24x32xf32, #tpu.memory_space<vmem>>, vector<4x32xf32>,
    %6 = vector.extract_strided_slice %2 {offsets = [0, 0], sizes = [8, 32], strides = [1, 1]} : vector<16x32xf32> to vector<8x32xf32>
    %c4 = arith.constant 4 : index
    %c0_9 = arith.constant 0 : index
    %7 = vector.load %arg42[%c4, %c0_9] : memref<24x32xf32, #tpu.memory_space<vmem>>, vector<8x32xf32>
    tpu.vector_store %arg42[%c4, %c0_9], %6 {strides = array<i32>} : memref<24x32xf32, #tpu.memory_space<vmem>>, vector<8x32xf32>,
    %c8 = arith.constant 8 : index
    %c0_10 = arith.constant 0 : index
    %8 = vector.load %arg42[%c8, %c0_10] : memref<24x32xf32, #tpu.memory_space<vmem>>, vector<4x32xf32>
    %c0_11 = arith.constant 0 : index
    %c0_12 = arith.constant 0 : index
    %9 = vector.load %arg40[%c0_11, %c0_12] : memref<8x32xf32, #tpu.memory_space<vmem>>, vector<4x32xf32>
    tpu.vector_store %arg40[%c0_11, %c0_12], %8 {strides = array<i32>} : memref<8x32xf32, #tpu.memory_space<vmem>>, vector<4x32xf32>,
    %10 = vector.extract_strided_slice %3 {offsets = [4, 0], sizes = [4, 32], strides = [1, 1]} : vector<8x32xf32> to vector<4x32xf32>
    %c12 = arith.constant 12 : index
    %c0_13 = arith.constant 0 : index
    %11 = vector.load %arg42[%c12, %c0_13] : memref<24x32xf32, #tpu.memory_space<vmem>>, vector<4x32xf32>
    tpu.vector_store %arg42[%c12, %c0_13], %10 {strides = array<i32>} : memref<24x32xf32, #tpu.memory_space<vmem>>, vector<4x32xf32>,
    %12 = vector.extract_strided_slice %2 {offsets = [8, 0], sizes = [8, 32], strides = [1, 1]} : vector<16x32xf32> to vector<8x32xf32>
    %c16 = arith.constant 16 : index
    %c0_14 = arith.constant 0 : index
    %13 = vector.load %arg42[%c16, %c0_14] : memref<24x32xf32, #tpu.memory_space<vmem>>, vector<8x32xf32>
    tpu.vector_store %arg42[%c16, %c0_14], %12 {strides = array<i32>} : memref<24x32xf32, #tpu.memory_space<vmem>>, vector<8x32xf32>,
    %c20 = arith.constant 20 : index
    %c0_15 = arith.constant 0 : index
    %14 = vector.load %arg42[%c20, %c0_15] : memref<24x32xf32, #tpu.memory_space<vmem>>, vector<4x32xf32>
    %c4_16 = arith.constant 4 : index
    %c0_17 = arith.constant 0 : index
    %15 = vector.load %arg40[%c4_16, %c0_17] : memref<8x32xf32, #tpu.memory_space<vmem>>, vector<4x32xf32>
    tpu.vector_store %arg40[%c4_16, %c0_17], %14 {strides = array<i32>} : memref<8x32xf32, #tpu.memory_space<vmem>>, vector<4x32xf32>,
    %c0_18 = arith.constant 0 : index
    %c0_19 = arith.constant 0 : index
    %16 = vector.load %arg42[%c0_18, %c0_19] : memref<24x32xf32, #tpu.memory_space<vmem>>, vector<24x32xf32>
    %17 = arith.addf %16, %0 : vector<24x32xf32>
    %c0_20 = arith.constant 0 : index
    %c0_21 = arith.constant 0 : index
    %18 = vector.load %arg5[%c0_20, %c0_21] : memref<32x32xf32, #tpu.memory_space<vmem>>, vector<32x32xf32>
    %cst = arith.constant dense<0.000000e+00> : vector<16x32xf32>
    %19 = tpu.matmul %2, %18, %cst {dimension_numbers = #tpu.dot_dimension_numbers<[1], [0], [0], [1], [0, 0, 1, 1], [], []>} : vector<16x32xf32>, vector<32x32xf32>, vector<16x32xf32> -> vector<16x32xf32>
    %c0_22 = arith.constant 0 : index
    %c0_23 = arith.constant 0 : index
    %20 = vector.load %arg6[%c0_22, %c0_23] : memref<1x32xf32, #tpu.memory_space<vmem>>, vector<1x32xf32>
    %21 = vector.broadcast %20 : vector<1x32xf32> to vector<16x32xf32>
    %22 = arith.addf %19, %21 : vector<16x32xf32>
    %c0_24 = arith.constant 0 : index
    %c0_25 = arith.constant 0 : index
    %23 = vector.load %arg7[%c0_24, %c0_25] : memref<32x32xf32, #tpu.memory_space<vmem>>, vector<32x32xf32>
    %cst_26 = arith.constant dense<0.000000e+00> : vector<24x32xf32>
    %24 = tpu.matmul %17, %23, %cst_26 {dimension_numbers = #tpu.dot_dimension_numbers<[1], [0], [0], [1], [0, 0, 1, 1], [], []>} : vector<24x32xf32>, vector<32x32xf32>, vector<24x32xf32> -> vector<24x32xf32>
    %c0_27 = arith.constant 0 : index
    %c0_28 = arith.constant 0 : index
    %25 = vector.load %arg8[%c0_27, %c0_28] : memref<1x32xf32, #tpu.memory_space<vmem>>, vector<1x32xf32>
    %26 = vector.broadcast %25 : vector<1x32xf32> to vector<24x32xf32>
    %27 = arith.addf %24, %26 : vector<24x32xf32>
    %c0_29 = arith.constant 0 : index
    %c0_30 = arith.constant 0 : index
    %28 = vector.load %arg9[%c0_29, %c0_30] : memref<32x32xf32, #tpu.memory_space<vmem>>, vector<32x32xf32>
    %cst_31 = arith.constant dense<0.000000e+00> : vector<24x32xf32>
    %29 = tpu.matmul %16, %28, %cst_31 {dimension_numbers = #tpu.dot_dimension_numbers<[1], [0], [0], [1], [0, 0, 1, 1], [], []>} : vector<24x32xf32>, vector<32x32xf32>, vector<24x32xf32> -> vector<24x32xf32>
    %c0_32 = arith.constant 0 : index
    %c0_33 = arith.constant 0 : index
    %30 = vector.load %arg10[%c0_32, %c0_33] : memref<1x32xf32, #tpu.memory_space<vmem>>, vector<1x32xf32>
    %31 = vector.broadcast %30 : vector<1x32xf32> to vector<24x32xf32>
    %32 = arith.addf %29, %31 : vector<24x32xf32>
    %33 = vector.extract_strided_slice %22 {offsets = [0, 0], sizes = [8, 32], strides = [1, 1]} : vector<16x32xf32> to vector<8x32xf32>
    %34 = vector.extract_strided_slice %27 {offsets = [0, 0], sizes = [12, 32], strides = [1, 1]} : vector<24x32xf32> to vector<12x32xf32>
    %35 = vector.extract_strided_slice %32 {offsets = [0, 0], sizes = [12, 32], strides = [1, 1]} : vector<24x32xf32> to vector<12x32xf32>
    %36 = vector.extract_strided_slice %33 {offsets = [0, 0], sizes = [8, 8], strides = [1, 1]} : vector<8x32xf32> to vector<8x8xf32>
    %37 = vector.extract_strided_slice %34 {offsets = [0, 0], sizes = [12, 8], strides = [1, 1]} : vector<12x32xf32> to vector<12x8xf32>
    %38 = vector.extract_strided_slice %35 {offsets = [0, 0], sizes = [12, 8], strides = [1, 1]} : vector<12x32xf32> to vector<12x8xf32>
    %cst_34 = arith.constant dense<0.000000e+00> : vector<8x12xf32>
    %39 = tpu.matmul %36, %37, %cst_34 {dimension_numbers = #tpu.dot_dimension_numbers<[1], [1], [0], [0], [0, 0, 1, 0], [], []>} : vector<8x8xf32>, vector<12x8xf32>, vector<8x12xf32> -> vector<8x12xf32>
    %cst_35 = arith.constant 0.353553385 : f32
    %40 = vector.broadcast %cst_35 : f32 to vector<8x12xf32>
    %41 = arith.mulf %39, %40 : vector<8x12xf32>
    %42 = arith.addf %41, %1 : vector<8x12xf32>
    %cst_36 = arith.constant dense<0xFF800000> : vector<8xf32>
    %43 = vector.multi_reduction <maximumf>, %42, %cst_36 [1] : vector<8x12xf32> to vector<8xf32>
    %44 = vector.shape_cast %43 : vector<8xf32> to vector<8x1xf32>
    %45 = vector.broadcast %44 : vector<8x1xf32> to vector<8x12xf32>
    %46 = arith.subf %42, %45 : vector<8x12xf32>
    %47 = math.exp %46 : vector<8x12xf32>
    %cst_37 = arith.constant dense<0.000000e+00> : vector<8x8xf32>
    %48 = tpu.matmul %47, %38, %cst_37 {dimension_numbers = #tpu.dot_dimension_numbers<[1], [0], [0], [1], [0, 0, 1, 1], [], []>} : vector<8x12xf32>, vector<12x8xf32>, vector<8x8xf32> -> vector<8x8xf32>
    %cst_38 = arith.constant dense<0.000000e+00> : vector<8xf32>
    %49 = vector.multi_reduction <add>, %47, %cst_38 [1] : vector<8x12xf32> to vector<8xf32>
    %50 = vector.shape_cast %49 : vector<8xf32> to vector<8x1xf32>
    %51 = tpu.reciprocal %50 {approx = true} : vector<8x1xf32> -> vector<8x1xf32>
    %52 = vector.broadcast %51 : vector<8x1xf32> to vector<8x8xf32>
    %53 = arith.mulf %48, %52 : vector<8x8xf32>
    %c0_39 = arith.constant 0 : index
    %c0_40 = arith.constant 0 : index
    %54 = vector.load %arg43[%c0_39, %c0_40] : memref<16x32xf32, #tpu.memory_space<vmem>>, vector<8x8xf32>
    tpu.vector_store %arg43[%c0_39, %c0_40], %53 {strides = array<i32>} : memref<16x32xf32, #tpu.memory_space<vmem>>, vector<8x8xf32>,
    %55 = vector.extract_strided_slice %33 {offsets = [0, 8], sizes = [8, 8], strides = [1, 1]} : vector<8x32xf32> to vector<8x8xf32>
    %56 = vector.extract_strided_slice %34 {offsets = [0, 8], sizes = [12, 8], strides = [1, 1]} : vector<12x32xf32> to vector<12x8xf32>
    %57 = vector.extract_strided_slice %35 {offsets = [0, 8], sizes = [12, 8], strides = [1, 1]} : vector<12x32xf32> to vector<12x8xf32>
    %cst_41 = arith.constant dense<0.000000e+00> : vector<8x12xf32>
    %58 = tpu.matmul %55, %56, %cst_41 {dimension_numbers = #tpu.dot_dimension_numbers<[1], [1], [0], [0], [0, 0, 1, 0], [], []>} : vector<8x8xf32>, vector<12x8xf32>, vector<8x12xf32> -> vector<8x12xf32>
    %cst_42 = arith.constant 0.353553385 : f32
    %59 = vector.broadcast %cst_42 : f32 to vector<8x12xf32>
    %60 = arith.mulf %58, %59 : vector<8x12xf32>
    %61 = arith.addf %60, %1 : vector<8x12xf32>
    %cst_43 = arith.constant dense<0xFF800000> : vector<8xf32>
    %62 = vector.multi_reduction <maximumf>, %61, %cst_43 [1] : vector<8x12xf32> to vector<8xf32>
    %63 = vector.shape_cast %62 : vector<8xf32> to vector<8x1xf32>
    %64 = vector.broadcast %63 : vector<8x1xf32> to vector<8x12xf32>
    %65 = arith.subf %61, %64 : vector<8x12xf32>
    %66 = math.exp %65 : vector<8x12xf32>
    %cst_44 = arith.constant dense<0.000000e+00> : vector<8x8xf32>
    %67 = tpu.matmul %66, %57, %cst_44 {dimension_numbers = #tpu.dot_dimension_numbers<[1], [0], [0], [1], [0, 0, 1, 1], [], []>} : vector<8x12xf32>, vector<12x8xf32>, vector<8x8xf32> -> vector<8x8xf32>
    %cst_45 = arith.constant dense<0.000000e+00> : vector<8xf32>
    %68 = vector.multi_reduction <add>, %66, %cst_45 [1] : vector<8x12xf32> to vector<8xf32>
    %69 = vector.shape_cast %68 : vector<8xf32> to vector<8x1xf32>
    %70 = tpu.reciprocal %69 {approx = true} : vector<8x1xf32> -> vector<8x1xf32>
    %71 = vector.broadcast %70 : vector<8x1xf32> to vector<8x8xf32>
    %72 = arith.mulf %67, %71 : vector<8x8xf32>
    %c0_46 = arith.constant 0 : index
    %c8_47 = arith.constant 8 : index
    %73 = vector.load %arg43[%c0_46, %c8_47] : memref<16x32xf32, #tpu.memory_space<vmem>>, vector<8x8xf32>
    tpu.vector_store %arg43[%c0_46, %c8_47], %72 {strides = array<i32>} : memref<16x32xf32, #tpu.memory_space<vmem>>, vector<8x8xf32>,
    %74 = vector.extract_strided_slice %33 {offsets = [0, 16], sizes = [8, 8], strides = [1, 1]} : vector<8x32xf32> to vector<8x8xf32>
    %75 = vector.extract_strided_slice %34 {offsets = [0, 16], sizes = [12, 8], strides = [1, 1]} : vector<12x32xf32> to vector<12x8xf32>
    %76 = vector.extract_strided_slice %35 {offsets = [0, 16], sizes = [12, 8], strides = [1, 1]} : vector<12x32xf32> to vector<12x8xf32>
    %cst_48 = arith.constant dense<0.000000e+00> : vector<8x12xf32>
    %77 = tpu.matmul %74, %75, %cst_48 {dimension_numbers = #tpu.dot_dimension_numbers<[1], [1], [0], [0], [0, 0, 1, 0], [], []>} : vector<8x8xf32>, vector<12x8xf32>, vector<8x12xf32> -> vector<8x12xf32>
    %cst_49 = arith.constant 0.353553385 : f32
    %78 = vector.broadcast %cst_49 : f32 to vector<8x12xf32>
    %79 = arith.mulf %77, %78 : vector<8x12xf32>
    %80 = arith.addf %79, %1 : vector<8x12xf32>
    %cst_50 = arith.constant dense<0xFF800000> : vector<8xf32>
    %81 = vector.multi_reduction <maximumf>, %80, %cst_50 [1] : vector<8x12xf32> to vector<8xf32>
    %82 = vector.shape_cast %81 : vector<8xf32> to vector<8x1xf32>
    %83 = vector.broadcast %82 : vector<8x1xf32> to vector<8x12xf32>
    %84 = arith.subf %80, %83 : vector<8x12xf32>
    %85 = math.exp %84 : vector<8x12xf32>
    %cst_51 = arith.constant dense<0.000000e+00> : vector<8x8xf32>
    %86 = tpu.matmul %85, %76, %cst_51 {dimension_numbers = #tpu.dot_dimension_numbers<[1], [0], [0], [1], [0, 0, 1, 1], [], []>} : vector<8x12xf32>, vector<12x8xf32>, vector<8x8xf32> -> vector<8x8xf32>
    %cst_52 = arith.constant dense<0.000000e+00> : vector<8xf32>
    %87 = vector.multi_reduction <add>, %85, %cst_52 [1] : vector<8x12xf32> to vector<8xf32>
    %88 = vector.shape_cast %87 : vector<8xf32> to vector<8x1xf32>
    %89 = tpu.reciprocal %88 {approx = true} : vector<8x1xf32> -> vector<8x1xf32>
    %90 = vector.broadcast %89 : vector<8x1xf32> to vector<8x8xf32>
    %91 = arith.mulf %86, %90 : vector<8x8xf32>
    %c0_53 = arith.constant 0 : index
    %c16_54 = arith.constant 16 : index
    %92 = vector.load %arg43[%c0_53, %c16_54] : memref<16x32xf32, #tpu.memory_space<vmem>>, vector<8x8xf32>
    tpu.vector_store %arg43[%c0_53, %c16_54], %91 {strides = array<i32>} : memref<16x32xf32, #tpu.memory_space<vmem>>, vector<8x8xf32>,
    %93 = vector.extract_strided_slice %33 {offsets = [0, 24], sizes = [8, 8], strides = [1, 1]} : vector<8x32xf32> to vector<8x8xf32>
    %94 = vector.extract_strided_slice %34 {offsets = [0, 24], sizes = [12, 8], strides = [1, 1]} : vector<12x32xf32> to vector<12x8xf32>
    %95 = vector.extract_strided_slice %35 {offsets = [0, 24], sizes = [12, 8], strides = [1, 1]} : vector<12x32xf32> to vector<12x8xf32>
    %cst_55 = arith.constant dense<0.000000e+00> : vector<8x12xf32>
    %96 = tpu.matmul %93, %94, %cst_55 {dimension_numbers = #tpu.dot_dimension_numbers<[1], [1], [0], [0], [0, 0, 1, 0], [], []>} : vector<8x8xf32>, vector<12x8xf32>, vector<8x12xf32> -> vector<8x12xf32>
    %cst_56 = arith.constant 0.353553385 : f32
    %97 = vector.broadcast %cst_56 : f32 to vector<8x12xf32>
    %98 = arith.mulf %96, %97 : vector<8x12xf32>
    %99 = arith.addf %98, %1 : vector<8x12xf32>
    %cst_57 = arith.constant dense<0xFF800000> : vector<8xf32>
    %100 = vector.multi_reduction <maximumf>, %99, %cst_57 [1] : vector<8x12xf32> to vector<8xf32>
    %101 = vector.shape_cast %100 : vector<8xf32> to vector<8x1xf32>
    %102 = vector.broadcast %101 : vector<8x1xf32> to vector<8x12xf32>
    %103 = arith.subf %99, %102 : vector<8x12xf32>
    %104 = math.exp %103 : vector<8x12xf32>
    %cst_58 = arith.constant dense<0.000000e+00> : vector<8x8xf32>
    %105 = tpu.matmul %104, %95, %cst_58 {dimension_numbers = #tpu.dot_dimension_numbers<[1], [0], [0], [1], [0, 0, 1, 1], [], []>} : vector<8x12xf32>, vector<12x8xf32>, vector<8x8xf32> -> vector<8x8xf32>
    %cst_59 = arith.constant dense<0.000000e+00> : vector<8xf32>
    %106 = vector.multi_reduction <add>, %104, %cst_59 [1] : vector<8x12xf32> to vector<8xf32>
    %107 = vector.shape_cast %106 : vector<8xf32> to vector<8x1xf32>
    %108 = tpu.reciprocal %107 {approx = true} : vector<8x1xf32> -> vector<8x1xf32>
    %109 = vector.broadcast %108 : vector<8x1xf32> to vector<8x8xf32>
    %110 = arith.mulf %105, %109 : vector<8x8xf32>
    %c0_60 = arith.constant 0 : index
    %c24 = arith.constant 24 : index
    %111 = vector.load %arg43[%c0_60, %c24] : memref<16x32xf32, #tpu.memory_space<vmem>>, vector<8x8xf32>
    tpu.vector_store %arg43[%c0_60, %c24], %110 {strides = array<i32>} : memref<16x32xf32, #tpu.memory_space<vmem>>, vector<8x8xf32>,
    %112 = vector.extract_strided_slice %22 {offsets = [8, 0], sizes = [8, 32], strides = [1, 1]} : vector<16x32xf32> to vector<8x32xf32>
    %113 = vector.extract_strided_slice %27 {offsets = [12, 0], sizes = [12, 32], strides = [1, 1]} : vector<24x32xf32> to vector<12x32xf32>
    %114 = vector.extract_strided_slice %32 {offsets = [12, 0], sizes = [12, 32], strides = [1, 1]} : vector<24x32xf32> to vector<12x32xf32>
    %115 = vector.extract_strided_slice %112 {offsets = [0, 0], sizes = [8, 8], strides = [1, 1]} : vector<8x32xf32> to vector<8x8xf32>
    %116 = vector.extract_strided_slice %113 {offsets = [0, 0], sizes = [12, 8], strides = [1, 1]} : vector<12x32xf32> to vector<12x8xf32>
    %117 = vector.extract_strided_slice %114 {offsets = [0, 0], sizes = [12, 8], strides = [1, 1]} : vector<12x32xf32> to vector<12x8xf32>
    %cst_61 = arith.constant dense<0.000000e+00> : vector<8x12xf32>
    %118 = tpu.matmul %115, %116, %cst_61 {dimension_numbers = #tpu.dot_dimension_numbers<[1], [1], [0], [0], [0, 0, 1, 0], [], []>} : vector<8x8xf32>, vector<12x8xf32>, vector<8x12xf32> -> vector<8x12xf32>
    %cst_62 = arith.constant 0.353553385 : f32
    %119 = vector.broadcast %cst_62 : f32 to vector<8x12xf32>
    %120 = arith.mulf %118, %119 : vector<8x12xf32>
    %121 = arith.addf %120, %1 : vector<8x12xf32>
    %cst_63 = arith.constant dense<0xFF800000> : vector<8xf32>
    %122 = vector.multi_reduction <maximumf>, %121, %cst_63 [1] : vector<8x12xf32> to vector<8xf32>
    %123 = vector.shape_cast %122 : vector<8xf32> to vector<8x1xf32>
    %124 = vector.broadcast %123 : vector<8x1xf32> to vector<8x12xf32>
    %125 = arith.subf %121, %124 : vector<8x12xf32>
    %126 = math.exp %125 : vector<8x12xf32>
    %cst_64 = arith.constant dense<0.000000e+00> : vector<8x8xf32>
    %127 = tpu.matmul %126, %117, %cst_64 {dimension_numbers = #tpu.dot_dimension_numbers<[1], [0], [0], [1], [0, 0, 1, 1], [], []>} : vector<8x12xf32>, vector<12x8xf32>, vector<8x8xf32> -> vector<8x8xf32>
    %cst_65 = arith.constant dense<0.000000e+00> : vector<8xf32>
    %128 = vector.multi_reduction <add>, %126, %cst_65 [1] : vector<8x12xf32> to vector<8xf32>
    %129 = vector.shape_cast %128 : vector<8xf32> to vector<8x1xf32>
    %130 = tpu.reciprocal %129 {approx = true} : vector<8x1xf32> -> vector<8x1xf32>
    %131 = vector.broadcast %130 : vector<8x1xf32> to vector<8x8xf32>
    %132 = arith.mulf %127, %131 : vector<8x8xf32>
    %c8_66 = arith.constant 8 : index
    %c0_67 = arith.constant 0 : index
    %133 = vector.load %arg43[%c8_66, %c0_67] : memref<16x32xf32, #tpu.memory_space<vmem>>, vector<8x8xf32>
    tpu.vector_store %arg43[%c8_66, %c0_67], %132 {strides = array<i32>} : memref<16x32xf32, #tpu.memory_space<vmem>>, vector<8x8xf32>,
    %134 = vector.extract_strided_slice %112 {offsets = [0, 8], sizes = [8, 8], strides = [1, 1]} : vector<8x32xf32> to vector<8x8xf32>
    %135 = vector.extract_strided_slice %113 {offsets = [0, 8], sizes = [12, 8], strides = [1, 1]} : vector<12x32xf32> to vector<12x8xf32>
    %136 = vector.extract_strided_slice %114 {offsets = [0, 8], sizes = [12, 8], strides = [1, 1]} : vector<12x32xf32> to vector<12x8xf32>
    %cst_68 = arith.constant dense<0.000000e+00> : vector<8x12xf32>
    %137 = tpu.matmul %134, %135, %cst_68 {dimension_numbers = #tpu.dot_dimension_numbers<[1], [1], [0], [0], [0, 0, 1, 0], [], []>} : vector<8x8xf32>, vector<12x8xf32>, vector<8x12xf32> -> vector<8x12xf32>
    %cst_69 = arith.constant 0.353553385 : f32
    %138 = vector.broadcast %cst_69 : f32 to vector<8x12xf32>
    %139 = arith.mulf %137, %138 : vector<8x12xf32>
    %140 = arith.addf %139, %1 : vector<8x12xf32>
    %cst_70 = arith.constant dense<0xFF800000> : vector<8xf32>
    %141 = vector.multi_reduction <maximumf>, %140, %cst_70 [1] : vector<8x12xf32> to vector<8xf32>
    %142 = vector.shape_cast %141 : vector<8xf32> to vector<8x1xf32>
    %143 = vector.broadcast %142 : vector<8x1xf32> to vector<8x12xf32>
    %144 = arith.subf %140, %143 : vector<8x12xf32>
    %145 = math.exp %144 : vector<8x12xf32>
    %cst_71 = arith.constant dense<0.000000e+00> : vector<8x8xf32>
    %146 = tpu.matmul %145, %136, %cst_71 {dimension_numbers = #tpu.dot_dimension_numbers<[1], [0], [0], [1], [0, 0, 1, 1], [], []>} : vector<8x12xf32>, vector<12x8xf32>, vector<8x8xf32> -> vector<8x8xf32>
    %cst_72 = arith.constant dense<0.000000e+00> : vector<8xf32>
    %147 = vector.multi_reduction <add>, %145, %cst_72 [1] : vector<8x12xf32> to vector<8xf32>
    %148 = vector.shape_cast %147 : vector<8xf32> to vector<8x1xf32>
    %149 = tpu.reciprocal %148 {approx = true} : vector<8x1xf32> -> vector<8x1xf32>
    %150 = vector.broadcast %149 : vector<8x1xf32> to vector<8x8xf32>
    %151 = arith.mulf %146, %150 : vector<8x8xf32>
    %c8_73 = arith.constant 8 : index
    %c8_74 = arith.constant 8 : index
    %152 = vector.load %arg43[%c8_73, %c8_74] : memref<16x32xf32, #tpu.memory_space<vmem>>, vector<8x8xf32>
    tpu.vector_store %arg43[%c8_73, %c8_74], %151 {strides = array<i32>} : memref<16x32xf32, #tpu.memory_space<vmem>>, vector<8x8xf32>,
    %153 = vector.extract_strided_slice %112 {offsets = [0, 16], sizes = [8, 8], strides = [1, 1]} : vector<8x32xf32> to vector<8x8xf32>
    %154 = vector.extract_strided_slice %113 {offsets = [0, 16], sizes = [12, 8], strides = [1, 1]} : vector<12x32xf32> to vector<12x8xf32>
    %155 = vector.extract_strided_slice %114 {offsets = [0, 16], sizes = [12, 8], strides = [1, 1]} : vector<12x32xf32> to vector<12x8xf32>
    %cst_75 = arith.constant dense<0.000000e+00> : vector<8x12xf32>
    %156 = tpu.matmul %153, %154, %cst_75 {dimension_numbers = #tpu.dot_dimension_numbers<[1], [1], [0], [0], [0, 0, 1, 0], [], []>} : vector<8x8xf32>, vector<12x8xf32>, vector<8x12xf32> -> vector<8x12xf32>
    %cst_76 = arith.constant 0.353553385 : f32
    %157 = vector.broadcast %cst_76 : f32 to vector<8x12xf32>
    %158 = arith.mulf %156, %157 : vector<8x12xf32>
    %159 = arith.addf %158, %1 : vector<8x12xf32>
    %cst_77 = arith.constant dense<0xFF800000> : vector<8xf32>
    %160 = vector.multi_reduction <maximumf>, %159, %cst_77 [1] : vector<8x12xf32> to vector<8xf32>
    %161 = vector.shape_cast %160 : vector<8xf32> to vector<8x1xf32>
    %162 = vector.broadcast %161 : vector<8x1xf32> to vector<8x12xf32>
    %163 = arith.subf %159, %162 : vector<8x12xf32>
    %164 = math.exp %163 : vector<8x12xf32>
    %cst_78 = arith.constant dense<0.000000e+00> : vector<8x8xf32>
    %165 = tpu.matmul %164, %155, %cst_78 {dimension_numbers = #tpu.dot_dimension_numbers<[1], [0], [0], [1], [0, 0, 1, 1], [], []>} : vector<8x12xf32>, vector<12x8xf32>, vector<8x8xf32> -> vector<8x8xf32>
    %cst_79 = arith.constant dense<0.000000e+00> : vector<8xf32>
    %166 = vector.multi_reduction <add>, %164, %cst_79 [1] : vector<8x12xf32> to vector<8xf32>
    %167 = vector.shape_cast %166 : vector<8xf32> to vector<8x1xf32>
    %168 = tpu.reciprocal %167 {approx = true} : vector<8x1xf32> -> vector<8x1xf32>
    %169 = vector.broadcast %168 : vector<8x1xf32> to vector<8x8xf32>
    %170 = arith.mulf %165, %169 : vector<8x8xf32>
    %c8_80 = arith.constant 8 : index
    %c16_81 = arith.constant 16 : index
    %171 = vector.load %arg43[%c8_80, %c16_81] : memref<16x32xf32, #tpu.memory_space<vmem>>, vector<8x8xf32>
    tpu.vector_store %arg43[%c8_80, %c16_81], %170 {strides = array<i32>} : memref<16x32xf32, #tpu.memory_space<vmem>>, vector<8x8xf32>,
    %172 = vector.extract_strided_slice %112 {offsets = [0, 24], sizes = [8, 8], strides = [1, 1]} : vector<8x32xf32> to vector<8x8xf32>
    %173 = vector.extract_strided_slice %113 {offsets = [0, 24], sizes = [12, 8], strides = [1, 1]} : vector<12x32xf32> to vector<12x8xf32>
    %174 = vector.extract_strided_slice %114 {offsets = [0, 24], sizes = [12, 8], strides = [1, 1]} : vector<12x32xf32> to vector<12x8xf32>
    %cst_82 = arith.constant dense<0.000000e+00> : vector<8x12xf32>
    %175 = tpu.matmul %172, %173, %cst_82 {dimension_numbers = #tpu.dot_dimension_numbers<[1], [1], [0], [0], [0, 0, 1, 0], [], []>} : vector<8x8xf32>, vector<12x8xf32>, vector<8x12xf32> -> vector<8x12xf32>
    %cst_83 = arith.constant 0.353553385 : f32
    %176 = vector.broadcast %cst_83 : f32 to vector<8x12xf32>
    %177 = arith.mulf %175, %176 : vector<8x12xf32>
    %178 = arith.addf %177, %1 : vector<8x12xf32>
    %cst_84 = arith.constant dense<0xFF800000> : vector<8xf32>
    %179 = vector.multi_reduction <maximumf>, %178, %cst_84 [1] : vector<8x12xf32> to vector<8xf32>
    %180 = vector.shape_cast %179 : vector<8xf32> to vector<8x1xf32>
    %181 = vector.broadcast %180 : vector<8x1xf32> to vector<8x12xf32>
    %182 = arith.subf %178, %181 : vector<8x12xf32>
    %183 = math.exp %182 : vector<8x12xf32>
    %cst_85 = arith.constant dense<0.000000e+00> : vector<8x8xf32>
    %184 = tpu.matmul %183, %174, %cst_85 {dimension_numbers = #tpu.dot_dimension_numbers<[1], [0], [0], [1], [0, 0, 1, 1], [], []>} : vector<8x12xf32>, vector<12x8xf32>, vector<8x8xf32> -> vector<8x8xf32>
    %cst_86 = arith.constant dense<0.000000e+00> : vector<8xf32>
    %185 = vector.multi_reduction <add>, %183, %cst_86 [1] : vector<8x12xf32> to vector<8xf32>
    %186 = vector.shape_cast %185 : vector<8xf32> to vector<8x1xf32>
    %187 = tpu.reciprocal %186 {approx = true} : vector<8x1xf32> -> vector<8x1xf32>
    %188 = vector.broadcast %187 : vector<8x1xf32> to vector<8x8xf32>
    %189 = arith.mulf %184, %188 : vector<8x8xf32>
    %c8_87 = arith.constant 8 : index
    %c24_88 = arith.constant 24 : index
    %190 = vector.load %arg43[%c8_87, %c24_88] : memref<16x32xf32, #tpu.memory_space<vmem>>, vector<8x8xf32>
    tpu.vector_store %arg43[%c8_87, %c24_88], %189 {strides = array<i32>} : memref<16x32xf32, #tpu.memory_space<vmem>>, vector<8x8xf32>,
    %c0_89 = arith.constant 0 : index
    %c0_90 = arith.constant 0 : index
    %191 = vector.load %arg43[%c0_89, %c0_90] : memref<16x32xf32, #tpu.memory_space<vmem>>, vector<16x32xf32>
    %c0_91 = arith.constant 0 : index
    %c0_92 = arith.constant 0 : index
    %192 = vector.load %arg11[%c0_91, %c0_92] : memref<32x32xf32, #tpu.memory_space<vmem>>, vector<32x32xf32>
    %cst_93 = arith.constant dense<0.000000e+00> : vector<16x32xf32>
    %193 = tpu.matmul %191, %192, %cst_93 {dimension_numbers = #tpu.dot_dimension_numbers<[1], [0], [0], [1], [0, 0, 1, 1], [], []>} : vector<16x32xf32>, vector<32x32xf32>, vector<16x32xf32> -> vector<16x32xf32>
    %c0_94 = arith.constant 0 : index
    %c0_95 = arith.constant 0 : index
    %194 = vector.load %arg12[%c0_94, %c0_95] : memref<1x32xf32, #tpu.memory_space<vmem>>, vector<1x32xf32>
    %195 = vector.broadcast %194 : vector<1x32xf32> to vector<16x32xf32>
    %196 = arith.addf %193, %195 : vector<16x32xf32>
    %197 = arith.addf %2, %196 : vector<16x32xf32>
    %c0_96 = arith.constant 0 : index
    %c0_97 = arith.constant 0 : index
    %198 = vector.load %arg17[%c0_96, %c0_97] : memref<1x32xf32, #tpu.memory_space<vmem>>, vector<1x32xf32>
    %c0_98 = arith.constant 0 : index
    %c0_99 = arith.constant 0 : index
    %199 = vector.load %arg18[%c0_98, %c0_99] : memref<1x32xf32, #tpu.memory_space<vmem>>, vector<1x32xf32>
    %cst_100 = arith.constant dense<0.000000e+00> : vector<16xf32>
    %200 = vector.multi_reduction <add>, %197, %cst_100 [1] : vector<16x32xf32> to vector<16xf32>
    %201 = vector.shape_cast %200 : vector<16xf32> to vector<16x1xf32>
    %cst_101 = arith.constant 3.200000e+01 : f32
    %202 = vector.broadcast %cst_101 : f32 to vector<16x1xf32>
    %203 = arith.divf %201, %202 : vector<16x1xf32>
    %204 = vector.broadcast %203 : vector<16x1xf32> to vector<16x32xf32>
    %205 = arith.subf %197, %204 : vector<16x32xf32>
    %206 = arith.mulf %205, %205 : vector<16x32xf32>
    %cst_102 = arith.constant dense<0.000000e+00> : vector<16xf32>
    %207 = vector.multi_reduction <add>, %206, %cst_102 [1] : vector<16x32xf32> to vector<16xf32>
    %208 = vector.shape_cast %207 : vector<16xf32> to vector<16x1xf32>
    %cst_103 = arith.constant 3.200000e+01 : f32
    %209 = vector.broadcast %cst_103 : f32 to vector<16x1xf32>
    %210 = arith.divf %208, %209 : vector<16x1xf32>
    %211 = vector.broadcast %203 : vector<16x1xf32> to vector<16x32xf32>
    %212 = arith.subf %197, %211 : vector<16x32xf32>
    %cst_104 = arith.constant 9.99999974E-6 : f32
    %213 = vector.broadcast %cst_104 : f32 to vector<16x1xf32>
    %214 = arith.addf %210, %213 : vector<16x1xf32>
    %215 = math.rsqrt %214 : vector<16x1xf32>
    %216 = vector.broadcast %215 : vector<16x1xf32> to vector<16x32xf32>
    %217 = arith.mulf %212, %216 : vector<16x32xf32>
    %218 = vector.broadcast %198 : vector<1x32xf32> to vector<16x32xf32>
    %219 = arith.mulf %217, %218 : vector<16x32xf32>
    %220 = vector.broadcast %199 : vector<1x32xf32> to vector<16x32xf32>
    %221 = arith.addf %219, %220 : vector<16x32xf32>
    %c0_105 = arith.constant 0 : index
    %c0_106 = arith.constant 0 : index
    %222 = vector.load %arg13[%c0_105, %c0_106] : memref<32x64xf32, #tpu.memory_space<vmem>>, vector<32x64xf32>
    %cst_107 = arith.constant dense<0.000000e+00> : vector<16x64xf32>
    %223 = tpu.matmul %221, %222, %cst_107 {dimension_numbers = #tpu.dot_dimension_numbers<[1], [0], [0], [1], [0, 0, 1, 1], [], []>} : vector<16x32xf32>, vector<32x64xf32>, vector<16x64xf32> -> vector<16x64xf32>
    %c0_108 = arith.constant 0 : index
    %c0_109 = arith.constant 0 : index
    %224 = vector.load %arg14[%c0_108, %c0_109] : memref<1x64xf32, #tpu.memory_space<vmem>>, vector<1x64xf32>
    %225 = vector.broadcast %224 : vector<1x64xf32> to vector<16x64xf32>
    %226 = arith.addf %223, %225 : vector<16x64xf32>
    %cst_110 = arith.constant 0.000000e+00 : f32
    %227 = vector.broadcast %cst_110 : f32 to vector<16x64xf32>
    %228 = arith.maximumf %226, %227 : vector<16x64xf32>
    %c0_111 = arith.constant 0 : index
    %c0_112 = arith.constant 0 : index
    %229 = vector.load %arg15[%c0_111, %c0_112] : memref<64x32xf32, #tpu.memory_space<vmem>>, vector<64x32xf32>
    %cst_113 = arith.constant dense<0.000000e+00> : vector<16x32xf32>
    %230 = tpu.matmul %228, %229, %cst_113 {dimension_numbers = #tpu.dot_dimension_numbers<[1], [0], [0], [1], [0, 0, 1, 1], [], []>} : vector<16x64xf32>, vector<64x32xf32>, vector<16x32xf32> -> vector<16x32xf32>
    %c0_114 = arith.constant 0 : index
    %c0_115 = arith.constant 0 : index
    %231 = vector.load %arg16[%c0_114, %c0_115] : memref<1x32xf32, #tpu.memory_space<vmem>>, vector<1x32xf32>
    %232 = vector.broadcast %231 : vector<1x32xf32> to vector<16x32xf32>
    %233 = arith.addf %230, %232 : vector<16x32xf32>
    %234 = arith.addf %221, %233 : vector<16x32xf32>
    %c0_116 = arith.constant 0 : index
    %c0_117 = arith.constant 0 : index
    %235 = vector.load %arg19[%c0_116, %c0_117] : memref<1x32xf32, #tpu.memory_space<vmem>>, vector<1x32xf32>
    %c0_118 = arith.constant 0 : index
    %c0_119 = arith.constant 0 : index
    %236 = vector.load %arg20[%c0_118, %c0_119] : memref<1x32xf32, #tpu.memory_space<vmem>>, vector<1x32xf32>
    %cst_120 = arith.constant dense<0.000000e+00> : vector<16xf32>
    %237 = vector.multi_reduction <add>, %234, %cst_120 [1] : vector<16x32xf32> to vector<16xf32>
    %238 = vector.shape_cast %237 : vector<16xf32> to vector<16x1xf32>
    %cst_121 = arith.constant 3.200000e+01 : f32
    %239 = vector.broadcast %cst_121 : f32 to vector<16x1xf32>
    %240 = arith.divf %238, %239 : vector<16x1xf32>
    %241 = vector.broadcast %240 : vector<16x1xf32> to vector<16x32xf32>
    %242 = arith.subf %234, %241 : vector<16x32xf32>
    %243 = arith.mulf %242, %242 : vector<16x32xf32>
    %cst_122 = arith.constant dense<0.000000e+00> : vector<16xf32>
    %244 = vector.multi_reduction <add>, %243, %cst_122 [1] : vector<16x32xf32> to vector<16xf32>
    %245 = vector.shape_cast %244 : vector<16xf32> to vector<16x1xf32>
    %cst_123 = arith.constant 3.200000e+01 : f32
    %246 = vector.broadcast %cst_123 : f32 to vector<16x1xf32>
    %247 = arith.divf %245, %246 : vector<16x1xf32>
    %248 = vector.broadcast %240 : vector<16x1xf32> to vector<16x32xf32>
    %249 = arith.subf %234, %248 : vector<16x32xf32>
    %cst_124 = arith.constant 9.99999974E-6 : f32
    %250 = vector.broadcast %cst_124 : f32 to vector<16x1xf32>
    %251 = arith.addf %247, %250 : vector<16x1xf32>
    %252 = math.rsqrt %251 : vector<16x1xf32>
    %253 = vector.broadcast %252 : vector<16x1xf32> to vector<16x32xf32>
    %254 = arith.mulf %249, %253 : vector<16x32xf32>
    %255 = vector.broadcast %235 : vector<1x32xf32> to vector<16x32xf32>
    %256 = arith.mulf %254, %255 : vector<16x32xf32>
    %257 = vector.broadcast %236 : vector<1x32xf32> to vector<16x32xf32>
    %258 = arith.addf %256, %257 : vector<16x32xf32>
    %c0_125 = arith.constant 0 : index
    %c0_126 = arith.constant 0 : index
    %259 = vector.load %arg4[%c0_125, %c0_126] : memref<8x32xf32, #tpu.memory_space<vmem>>, vector<8x32xf32>
    %260 = vector.extract_strided_slice %259 {offsets = [0, 0], sizes = [4, 32], strides = [1, 1]} : vector<8x32xf32> to vector<4x32xf32>
    %c0_127 = arith.constant 0 : index
    %c0_128 = arith.constant 0 : index
    %261 = vector.load %arg42[%c0_127, %c0_128] : memref<24x32xf32, #tpu.memory_space<vmem>>, vector<4x32xf32>
    tpu.vector_store %arg42[%c0_127, %c0_128], %260 {strides = array<i32>} : memref<24x32xf32, #tpu.memory_space<vmem>>, vector<4x32xf32>,
    %262 = vector.extract_strided_slice %258 {offsets = [0, 0], sizes = [8, 32], strides = [1, 1]} : vector<16x32xf32> to vector<8x32xf32>
    %c4_129 = arith.constant 4 : index
    %c0_130 = arith.constant 0 : index
    %263 = vector.load %arg42[%c4_129, %c0_130] : memref<24x32xf32, #tpu.memory_space<vmem>>, vector<8x32xf32>
    tpu.vector_store %arg42[%c4_129, %c0_130], %262 {strides = array<i32>} : memref<24x32xf32, #tpu.memory_space<vmem>>, vector<8x32xf32>,
    %c8_131 = arith.constant 8 : index
    %c0_132 = arith.constant 0 : index
    %264 = vector.load %arg42[%c8_131, %c0_132] : memref<24x32xf32, #tpu.memory_space<vmem>>, vector<4x32xf32>
    %c0_133 = arith.constant 0 : index
    %c0_134 = arith.constant 0 : index
    %265 = vector.load %arg41[%c0_133, %c0_134] : memref<8x32xf32, #tpu.memory_space<vmem>>, vector<4x32xf32>
    tpu.vector_store %arg41[%c0_133, %c0_134], %264 {strides = array<i32>} : memref<8x32xf32, #tpu.memory_space<vmem>>, vector<4x32xf32>,
    %266 = vector.extract_strided_slice %259 {offsets = [4, 0], sizes = [4, 32], strides = [1, 1]} : vector<8x32xf32> to vector<4x32xf32>
    %c12_135 = arith.constant 12 : index
    %c0_136 = arith.constant 0 : index
    %267 = vector.load %arg42[%c12_135, %c0_136] : memref<24x32xf32, #tpu.memory_space<vmem>>, vector<4x32xf32>
    tpu.vector_store %arg42[%c12_135, %c0_136], %266 {strides = array<i32>} : memref<24x32xf32, #tpu.memory_space<vmem>>, vector<4x32xf32>,
    %268 = vector.extract_strided_slice %258 {offsets = [8, 0], sizes = [8, 32], strides = [1, 1]} : vector<16x32xf32> to vector<8x32xf32>
    %c16_137 = arith.constant 16 : index
    %c0_138 = arith.constant 0 : index
    %269 = vector.load %arg42[%c16_137, %c0_138] : memref<24x32xf32, #tpu.memory_space<vmem>>, vector<8x32xf32>
    tpu.vector_store %arg42[%c16_137, %c0_138], %268 {strides = array<i32>} : memref<24x32xf32, #tpu.memory_space<vmem>>, vector<8x32xf32>,
    %c20_139 = arith.constant 20 : index
    %c0_140 = arith.constant 0 : index
    %270 = vector.load %arg42[%c20_139, %c0_140] : memref<24x32xf32, #tpu.memory_space<vmem>>, vector<4x32xf32>
    %c4_141 = arith.constant 4 : index
    %c0_142 = arith.constant 0 : index
    %271 = vector.load %arg41[%c4_141, %c0_142] : memref<8x32xf32, #tpu.memory_space<vmem>>, vector<4x32xf32>
    tpu.vector_store %arg41[%c4_141, %c0_142], %270 {strides = array<i32>} : memref<8x32xf32, #tpu.memory_space<vmem>>, vector<4x32xf32>,
    %c0_143 = arith.constant 0 : index
    %c0_144 = arith.constant 0 : index
    %272 = vector.load %arg42[%c0_143, %c0_144] : memref<24x32xf32, #tpu.memory_space<vmem>>, vector<24x32xf32>
    %273 = arith.addf %272, %0 : vector<24x32xf32>
    %c0_145 = arith.constant 0 : index
    %c0_146 = arith.constant 0 : index
    %274 = vector.load %arg21[%c0_145, %c0_146] : memref<32x32xf32, #tpu.memory_space<vmem>>, vector<32x32xf32>
    %cst_147 = arith.constant dense<0.000000e+00> : vector<16x32xf32>
    %275 = tpu.matmul %258, %274, %cst_147 {dimension_numbers = #tpu.dot_dimension_numbers<[1], [0], [0], [1], [0, 0, 1, 1], [], []>} : vector<16x32xf32>, vector<32x32xf32>, vector<16x32xf32> -> vector<16x32xf32>
    %c0_148 = arith.constant 0 : index
    %c0_149 = arith.constant 0 : index
    %276 = vector.load %arg22[%c0_148, %c0_149] : memref<1x32xf32, #tpu.memory_space<vmem>>, vector<1x32xf32>
    %277 = vector.broadcast %276 : vector<1x32xf32> to vector<16x32xf32>
    %278 = arith.addf %275, %277 : vector<16x32xf32>
    %c0_150 = arith.constant 0 : index
    %c0_151 = arith.constant 0 : index
    %279 = vector.load %arg23[%c0_150, %c0_151] : memref<32x32xf32, #tpu.memory_space<vmem>>, vector<32x32xf32>
    %cst_152 = arith.constant dense<0.000000e+00> : vector<24x32xf32>
    %280 = tpu.matmul %273, %279, %cst_152 {dimension_numbers = #tpu.dot_dimension_numbers<[1], [0], [0], [1], [0, 0, 1, 1], [], []>} : vector<24x32xf32>, vector<32x32xf32>, vector<24x32xf32> -> vector<24x32xf32>
    %c0_153 = arith.constant 0 : index
    %c0_154 = arith.constant 0 : index
    %281 = vector.load %arg24[%c0_153, %c0_154] : memref<1x32xf32, #tpu.memory_space<vmem>>, vector<1x32xf32>
    %282 = vector.broadcast %281 : vector<1x32xf32> to vector<24x32xf32>
    %283 = arith.addf %280, %282 : vector<24x32xf32>
    %c0_155 = arith.constant 0 : index
    %c0_156 = arith.constant 0 : index
    %284 = vector.load %arg25[%c0_155, %c0_156] : memref<32x32xf32, #tpu.memory_space<vmem>>, vector<32x32xf32>
    %cst_157 = arith.constant dense<0.000000e+00> : vector<24x32xf32>
    %285 = tpu.matmul %272, %284, %cst_157 {dimension_numbers = #tpu.dot_dimension_numbers<[1], [0], [0], [1], [0, 0, 1, 1], [], []>} : vector<24x32xf32>, vector<32x32xf32>, vector<24x32xf32> -> vector<24x32xf32>
    %c0_158 = arith.constant 0 : index
    %c0_159 = arith.constant 0 : index
    %286 = vector.load %arg26[%c0_158, %c0_159] : memref<1x32xf32, #tpu.memory_space<vmem>>, vector<1x32xf32>
    %287 = vector.broadcast %286 : vector<1x32xf32> to vector<24x32xf32>
    %288 = arith.addf %285, %287 : vector<24x32xf32>
    %289 = vector.extract_strided_slice %278 {offsets = [0, 0], sizes = [8, 32], strides = [1, 1]} : vector<16x32xf32> to vector<8x32xf32>
    %290 = vector.extract_strided_slice %283 {offsets = [0, 0], sizes = [12, 32], strides = [1, 1]} : vector<24x32xf32> to vector<12x32xf32>
    %291 = vector.extract_strided_slice %288 {offsets = [0, 0], sizes = [12, 32], strides = [1, 1]} : vector<24x32xf32> to vector<12x32xf32>
    %292 = vector.extract_strided_slice %289 {offsets = [0, 0], sizes = [8, 8], strides = [1, 1]} : vector<8x32xf32> to vector<8x8xf32>
    %293 = vector.extract_strided_slice %290 {offsets = [0, 0], sizes = [12, 8], strides = [1, 1]} : vector<12x32xf32> to vector<12x8xf32>
    %294 = vector.extract_strided_slice %291 {offsets = [0, 0], sizes = [12, 8], strides = [1, 1]} : vector<12x32xf32> to vector<12x8xf32>
    %cst_160 = arith.constant dense<0.000000e+00> : vector<8x12xf32>
    %295 = tpu.matmul %292, %293, %cst_160 {dimension_numbers = #tpu.dot_dimension_numbers<[1], [1], [0], [0], [0, 0, 1, 0], [], []>} : vector<8x8xf32>, vector<12x8xf32>, vector<8x12xf32> -> vector<8x12xf32>
    %cst_161 = arith.constant 0.353553385 : f32
    %296 = vector.broadcast %cst_161 : f32 to vector<8x12xf32>
    %297 = arith.mulf %295, %296 : vector<8x12xf32>
    %298 = arith.addf %297, %1 : vector<8x12xf32>
    %cst_162 = arith.constant dense<0xFF800000> : vector<8xf32>
    %299 = vector.multi_reduction <maximumf>, %298, %cst_162 [1] : vector<8x12xf32> to vector<8xf32>
    %300 = vector.shape_cast %299 : vector<8xf32> to vector<8x1xf32>
    %301 = vector.broadcast %300 : vector<8x1xf32> to vector<8x12xf32>
    %302 = arith.subf %298, %301 : vector<8x12xf32>
    %303 = math.exp %302 : vector<8x12xf32>
    %cst_163 = arith.constant dense<0.000000e+00> : vector<8x8xf32>
    %304 = tpu.matmul %303, %294, %cst_163 {dimension_numbers = #tpu.dot_dimension_numbers<[1], [0], [0], [1], [0, 0, 1, 1], [], []>} : vector<8x12xf32>, vector<12x8xf32>, vector<8x8xf32> -> vector<8x8xf32>
    %cst_164 = arith.constant dense<0.000000e+00> : vector<8xf32>
    %305 = vector.multi_reduction <add>, %303, %cst_164 [1] : vector<8x12xf32> to vector<8xf32>
    %306 = vector.shape_cast %305 : vector<8xf32> to vector<8x1xf32>
    %307 = tpu.reciprocal %306 {approx = true} : vector<8x1xf32> -> vector<8x1xf32>
    %308 = vector.broadcast %307 : vector<8x1xf32> to vector<8x8xf32>
    %309 = arith.mulf %304, %308 : vector<8x8xf32>
    %c0_165 = arith.constant 0 : index
    %c0_166 = arith.constant 0 : index
    %310 = vector.load %arg43[%c0_165, %c0_166] : memref<16x32xf32, #tpu.memory_space<vmem>>, vector<8x8xf32>
    tpu.vector_store %arg43[%c0_165, %c0_166], %309 {strides = array<i32>} : memref<16x32xf32, #tpu.memory_space<vmem>>, vector<8x8xf32>,
    %311 = vector.extract_strided_slice %289 {offsets = [0, 8], sizes = [8, 8], strides = [1, 1]} : vector<8x32xf32> to vector<8x8xf32>
    %312 = vector.extract_strided_slice %290 {offsets = [0, 8], sizes = [12, 8], strides = [1, 1]} : vector<12x32xf32> to vector<12x8xf32>
    %313 = vector.extract_strided_slice %291 {offsets = [0, 8], sizes = [12, 8], strides = [1, 1]} : vector<12x32xf32> to vector<12x8xf32>
    %cst_167 = arith.constant dense<0.000000e+00> : vector<8x12xf32>
    %314 = tpu.matmul %311, %312, %cst_167 {dimension_numbers = #tpu.dot_dimension_numbers<[1], [1], [0], [0], [0, 0, 1, 0], [], []>} : vector<8x8xf32>, vector<12x8xf32>, vector<8x12xf32> -> vector<8x12xf32>
    %cst_168 = arith.constant 0.353553385 : f32
    %315 = vector.broadcast %cst_168 : f32 to vector<8x12xf32>
    %316 = arith.mulf %314, %315 : vector<8x12xf32>
    %317 = arith.addf %316, %1 : vector<8x12xf32>
    %cst_169 = arith.constant dense<0xFF800000> : vector<8xf32>
    %318 = vector.multi_reduction <maximumf>, %317, %cst_169 [1] : vector<8x12xf32> to vector<8xf32>
    %319 = vector.shape_cast %318 : vector<8xf32> to vector<8x1xf32>
    %320 = vector.broadcast %319 : vector<8x1xf32> to vector<8x12xf32>
    %321 = arith.subf %317, %320 : vector<8x12xf32>
    %322 = math.exp %321 : vector<8x12xf32>
    %cst_170 = arith.constant dense<0.000000e+00> : vector<8x8xf32>
    %323 = tpu.matmul %322, %313, %cst_170 {dimension_numbers = #tpu.dot_dimension_numbers<[1], [0], [0], [1], [0, 0, 1, 1], [], []>} : vector<8x12xf32>, vector<12x8xf32>, vector<8x8xf32> -> vector<8x8xf32>
    %cst_171 = arith.constant dense<0.000000e+00> : vector<8xf32>
    %324 = vector.multi_reduction <add>, %322, %cst_171 [1] : vector<8x12xf32> to vector<8xf32>
    %325 = vector.shape_cast %324 : vector<8xf32> to vector<8x1xf32>
    %326 = tpu.reciprocal %325 {approx = true} : vector<8x1xf32> -> vector<8x1xf32>
    %327 = vector.broadcast %326 : vector<8x1xf32> to vector<8x8xf32>
    %328 = arith.mulf %323, %327 : vector<8x8xf32>
    %c0_172 = arith.constant 0 : index
    %c8_173 = arith.constant 8 : index
    %329 = vector.load %arg43[%c0_172, %c8_173] : memref<16x32xf32, #tpu.memory_space<vmem>>, vector<8x8xf32>
    tpu.vector_store %arg43[%c0_172, %c8_173], %328 {strides = array<i32>} : memref<16x32xf32, #tpu.memory_space<vmem>>, vector<8x8xf32>,
    %330 = vector.extract_strided_slice %289 {offsets = [0, 16], sizes = [8, 8], strides = [1, 1]} : vector<8x32xf32> to vector<8x8xf32>
    %331 = vector.extract_strided_slice %290 {offsets = [0, 16], sizes = [12, 8], strides = [1, 1]} : vector<12x32xf32> to vector<12x8xf32>
    %332 = vector.extract_strided_slice %291 {offsets = [0, 16], sizes = [12, 8], strides = [1, 1]} : vector<12x32xf32> to vector<12x8xf32>
    %cst_174 = arith.constant dense<0.000000e+00> : vector<8x12xf32>
    %333 = tpu.matmul %330, %331, %cst_174 {dimension_numbers = #tpu.dot_dimension_numbers<[1], [1], [0], [0], [0, 0, 1, 0], [], []>} : vector<8x8xf32>, vector<12x8xf32>, vector<8x12xf32> -> vector<8x12xf32>
    %cst_175 = arith.constant 0.353553385 : f32
    %334 = vector.broadcast %cst_175 : f32 to vector<8x12xf32>
    %335 = arith.mulf %333, %334 : vector<8x12xf32>
    %336 = arith.addf %335, %1 : vector<8x12xf32>
    %cst_176 = arith.constant dense<0xFF800000> : vector<8xf32>
    %337 = vector.multi_reduction <maximumf>, %336, %cst_176 [1] : vector<8x12xf32> to vector<8xf32>
    %338 = vector.shape_cast %337 : vector<8xf32> to vector<8x1xf32>
    %339 = vector.broadcast %338 : vector<8x1xf32> to vector<8x12xf32>
    %340 = arith.subf %336, %339 : vector<8x12xf32>
    %341 = math.exp %340 : vector<8x12xf32>
    %cst_177 = arith.constant dense<0.000000e+00> : vector<8x8xf32>
    %342 = tpu.matmul %341, %332, %cst_177 {dimension_numbers = #tpu.dot_dimension_numbers<[1], [0], [0], [1], [0, 0, 1, 1], [], []>} : vector<8x12xf32>, vector<12x8xf32>, vector<8x8xf32> -> vector<8x8xf32>
    %cst_178 = arith.constant dense<0.000000e+00> : vector<8xf32>
    %343 = vector.multi_reduction <add>, %341, %cst_178 [1] : vector<8x12xf32> to vector<8xf32>
    %344 = vector.shape_cast %343 : vector<8xf32> to vector<8x1xf32>
    %345 = tpu.reciprocal %344 {approx = true} : vector<8x1xf32> -> vector<8x1xf32>
    %346 = vector.broadcast %345 : vector<8x1xf32> to vector<8x8xf32>
    %347 = arith.mulf %342, %346 : vector<8x8xf32>
    %c0_179 = arith.constant 0 : index
    %c16_180 = arith.constant 16 : index
    %348 = vector.load %arg43[%c0_179, %c16_180] : memref<16x32xf32, #tpu.memory_space<vmem>>, vector<8x8xf32>
    tpu.vector_store %arg43[%c0_179, %c16_180], %347 {strides = array<i32>} : memref<16x32xf32, #tpu.memory_space<vmem>>, vector<8x8xf32>,
    %349 = vector.extract_strided_slice %289 {offsets = [0, 24], sizes = [8, 8], strides = [1, 1]} : vector<8x32xf32> to vector<8x8xf32>
    %350 = vector.extract_strided_slice %290 {offsets = [0, 24], sizes = [12, 8], strides = [1, 1]} : vector<12x32xf32> to vector<12x8xf32>
    %351 = vector.extract_strided_slice %291 {offsets = [0, 24], sizes = [12, 8], strides = [1, 1]} : vector<12x32xf32> to vector<12x8xf32>
    %cst_181 = arith.constant dense<0.000000e+00> : vector<8x12xf32>
    %352 = tpu.matmul %349, %350, %cst_181 {dimension_numbers = #tpu.dot_dimension_numbers<[1], [1], [0], [0], [0, 0, 1, 0], [], []>} : vector<8x8xf32>, vector<12x8xf32>, vector<8x12xf32> -> vector<8x12xf32>
    %cst_182 = arith.constant 0.353553385 : f32
    %353 = vector.broadcast %cst_182 : f32 to vector<8x12xf32>
    %354 = arith.mulf %352, %353 : vector<8x12xf32>
    %355 = arith.addf %354, %1 : vector<8x12xf32>
    %cst_183 = arith.constant dense<0xFF800000> : vector<8xf32>
    %356 = vector.multi_reduction <maximumf>, %355, %cst_183 [1] : vector<8x12xf32> to vector<8xf32>
    %357 = vector.shape_cast %356 : vector<8xf32> to vector<8x1xf32>
    %358 = vector.broadcast %357 : vector<8x1xf32> to vector<8x12xf32>
    %359 = arith.subf %355, %358 : vector<8x12xf32>
    %360 = math.exp %359 : vector<8x12xf32>
    %cst_184 = arith.constant dense<0.000000e+00> : vector<8x8xf32>
    %361 = tpu.matmul %360, %351, %cst_184 {dimension_numbers = #tpu.dot_dimension_numbers<[1], [0], [0], [1], [0, 0, 1, 1], [], []>} : vector<8x12xf32>, vector<12x8xf32>, vector<8x8xf32> -> vector<8x8xf32>
    %cst_185 = arith.constant dense<0.000000e+00> : vector<8xf32>
    %362 = vector.multi_reduction <add>, %360, %cst_185 [1] : vector<8x12xf32> to vector<8xf32>
    %363 = vector.shape_cast %362 : vector<8xf32> to vector<8x1xf32>
    %364 = tpu.reciprocal %363 {approx = true} : vector<8x1xf32> -> vector<8x1xf32>
    %365 = vector.broadcast %364 : vector<8x1xf32> to vector<8x8xf32>
    %366 = arith.mulf %361, %365 : vector<8x8xf32>
    %c0_186 = arith.constant 0 : index
    %c24_187 = arith.constant 24 : index
    %367 = vector.load %arg43[%c0_186, %c24_187] : memref<16x32xf32, #tpu.memory_space<vmem>>, vector<8x8xf32>
    tpu.vector_store %arg43[%c0_186, %c24_187], %366 {strides = array<i32>} : memref<16x32xf32, #tpu.memory_space<vmem>>, vector<8x8xf32>,
    %368 = vector.extract_strided_slice %278 {offsets = [8, 0], sizes = [8, 32], strides = [1, 1]} : vector<16x32xf32> to vector<8x32xf32>
    %369 = vector.extract_strided_slice %283 {offsets = [12, 0], sizes = [12, 32], strides = [1, 1]} : vector<24x32xf32> to vector<12x32xf32>
    %370 = vector.extract_strided_slice %288 {offsets = [12, 0], sizes = [12, 32], strides = [1, 1]} : vector<24x32xf32> to vector<12x32xf32>
    %371 = vector.extract_strided_slice %368 {offsets = [0, 0], sizes = [8, 8], strides = [1, 1]} : vector<8x32xf32> to vector<8x8xf32>
    %372 = vector.extract_strided_slice %369 {offsets = [0, 0], sizes = [12, 8], strides = [1, 1]} : vector<12x32xf32> to vector<12x8xf32>
    %373 = vector.extract_strided_slice %370 {offsets = [0, 0], sizes = [12, 8], strides = [1, 1]} : vector<12x32xf32> to vector<12x8xf32>
    %cst_188 = arith.constant dense<0.000000e+00> : vector<8x12xf32>
    %374 = tpu.matmul %371, %372, %cst_188 {dimension_numbers = #tpu.dot_dimension_numbers<[1], [1], [0], [0], [0, 0, 1, 0], [], []>} : vector<8x8xf32>, vector<12x8xf32>, vector<8x12xf32> -> vector<8x12xf32>
    %cst_189 = arith.constant 0.353553385 : f32
    %375 = vector.broadcast %cst_189 : f32 to vector<8x12xf32>
    %376 = arith.mulf %374, %375 : vector<8x12xf32>
    %377 = arith.addf %376, %1 : vector<8x12xf32>
    %cst_190 = arith.constant dense<0xFF800000> : vector<8xf32>
    %378 = vector.multi_reduction <maximumf>, %377, %cst_190 [1] : vector<8x12xf32> to vector<8xf32>
    %379 = vector.shape_cast %378 : vector<8xf32> to vector<8x1xf32>
    %380 = vector.broadcast %379 : vector<8x1xf32> to vector<8x12xf32>
    %381 = arith.subf %377, %380 : vector<8x12xf32>
    %382 = math.exp %381 : vector<8x12xf32>
    %cst_191 = arith.constant dense<0.000000e+00> : vector<8x8xf32>
    %383 = tpu.matmul %382, %373, %cst_191 {dimension_numbers = #tpu.dot_dimension_numbers<[1], [0], [0], [1], [0, 0, 1, 1], [], []>} : vector<8x12xf32>, vector<12x8xf32>, vector<8x8xf32> -> vector<8x8xf32>
    %cst_192 = arith.constant dense<0.000000e+00> : vector<8xf32>
    %384 = vector.multi_reduction <add>, %382, %cst_192 [1] : vector<8x12xf32> to vector<8xf32>
    %385 = vector.shape_cast %384 : vector<8xf32> to vector<8x1xf32>
    %386 = tpu.reciprocal %385 {approx = true} : vector<8x1xf32> -> vector<8x1xf32>
    %387 = vector.broadcast %386 : vector<8x1xf32> to vector<8x8xf32>
    %388 = arith.mulf %383, %387 : vector<8x8xf32>
    %c8_193 = arith.constant 8 : index
    %c0_194 = arith.constant 0 : index
    %389 = vector.load %arg43[%c8_193, %c0_194] : memref<16x32xf32, #tpu.memory_space<vmem>>, vector<8x8xf32>
    tpu.vector_store %arg43[%c8_193, %c0_194], %388 {strides = array<i32>} : memref<16x32xf32, #tpu.memory_space<vmem>>, vector<8x8xf32>,
    %390 = vector.extract_strided_slice %368 {offsets = [0, 8], sizes = [8, 8], strides = [1, 1]} : vector<8x32xf32> to vector<8x8xf32>
    %391 = vector.extract_strided_slice %369 {offsets = [0, 8], sizes = [12, 8], strides = [1, 1]} : vector<12x32xf32> to vector<12x8xf32>
    %392 = vector.extract_strided_slice %370 {offsets = [0, 8], sizes = [12, 8], strides = [1, 1]} : vector<12x32xf32> to vector<12x8xf32>
    %cst_195 = arith.constant dense<0.000000e+00> : vector<8x12xf32>
    %393 = tpu.matmul %390, %391, %cst_195 {dimension_numbers = #tpu.dot_dimension_numbers<[1], [1], [0], [0], [0, 0, 1, 0], [], []>} : vector<8x8xf32>, vector<12x8xf32>, vector<8x12xf32> -> vector<8x12xf32>
    %cst_196 = arith.constant 0.353553385 : f32
    %394 = vector.broadcast %cst_196 : f32 to vector<8x12xf32>
    %395 = arith.mulf %393, %394 : vector<8x12xf32>
    %396 = arith.addf %395, %1 : vector<8x12xf32>
    %cst_197 = arith.constant dense<0xFF800000> : vector<8xf32>
    %397 = vector.multi_reduction <maximumf>, %396, %cst_197 [1] : vector<8x12xf32> to vector<8xf32>
    %398 = vector.shape_cast %397 : vector<8xf32> to vector<8x1xf32>
    %399 = vector.broadcast %398 : vector<8x1xf32> to vector<8x12xf32>
    %400 = arith.subf %396, %399 : vector<8x12xf32>
    %401 = math.exp %400 : vector<8x12xf32>
    %cst_198 = arith.constant dense<0.000000e+00> : vector<8x8xf32>
    %402 = tpu.matmul %401, %392, %cst_198 {dimension_numbers = #tpu.dot_dimension_numbers<[1], [0], [0], [1], [0, 0, 1, 1], [], []>} : vector<8x12xf32>, vector<12x8xf32>, vector<8x8xf32> -> vector<8x8xf32>
    %cst_199 = arith.constant dense<0.000000e+00> : vector<8xf32>
    %403 = vector.multi_reduction <add>, %401, %cst_199 [1] : vector<8x12xf32> to vector<8xf32>
    %404 = vector.shape_cast %403 : vector<8xf32> to vector<8x1xf32>
    %405 = tpu.reciprocal %404 {approx = true} : vector<8x1xf32> -> vector<8x1xf32>
    %406 = vector.broadcast %405 : vector<8x1xf32> to vector<8x8xf32>
    %407 = arith.mulf %402, %406 : vector<8x8xf32>
    %c8_200 = arith.constant 8 : index
    %c8_201 = arith.constant 8 : index
    %408 = vector.load %arg43[%c8_200, %c8_201] : memref<16x32xf32, #tpu.memory_space<vmem>>, vector<8x8xf32>
    tpu.vector_store %arg43[%c8_200, %c8_201], %407 {strides = array<i32>} : memref<16x32xf32, #tpu.memory_space<vmem>>, vector<8x8xf32>,
    %409 = vector.extract_strided_slice %368 {offsets = [0, 16], sizes = [8, 8], strides = [1, 1]} : vector<8x32xf32> to vector<8x8xf32>
    %410 = vector.extract_strided_slice %369 {offsets = [0, 16], sizes = [12, 8], strides = [1, 1]} : vector<12x32xf32> to vector<12x8xf32>
    %411 = vector.extract_strided_slice %370 {offsets = [0, 16], sizes = [12, 8], strides = [1, 1]} : vector<12x32xf32> to vector<12x8xf32>
    %cst_202 = arith.constant dense<0.000000e+00> : vector<8x12xf32>
    %412 = tpu.matmul %409, %410, %cst_202 {dimension_numbers = #tpu.dot_dimension_numbers<[1], [1], [0], [0], [0, 0, 1, 0], [], []>} : vector<8x8xf32>, vector<12x8xf32>, vector<8x12xf32> -> vector<8x12xf32>
    %cst_203 = arith.constant 0.353553385 : f32
    %413 = vector.broadcast %cst_203 : f32 to vector<8x12xf32>
    %414 = arith.mulf %412, %413 : vector<8x12xf32>
    %415 = arith.addf %414, %1 : vector<8x12xf32>
    %cst_204 = arith.constant dense<0xFF800000> : vector<8xf32>
    %416 = vector.multi_reduction <maximumf>, %415, %cst_204 [1] : vector<8x12xf32> to vector<8xf32>
    %417 = vector.shape_cast %416 : vector<8xf32> to vector<8x1xf32>
    %418 = vector.broadcast %417 : vector<8x1xf32> to vector<8x12xf32>
    %419 = arith.subf %415, %418 : vector<8x12xf32>
    %420 = math.exp %419 : vector<8x12xf32>
    %cst_205 = arith.constant dense<0.000000e+00> : vector<8x8xf32>
    %421 = tpu.matmul %420, %411, %cst_205 {dimension_numbers = #tpu.dot_dimension_numbers<[1], [0], [0], [1], [0, 0, 1, 1], [], []>} : vector<8x12xf32>, vector<12x8xf32>, vector<8x8xf32> -> vector<8x8xf32>
    %cst_206 = arith.constant dense<0.000000e+00> : vector<8xf32>
    %422 = vector.multi_reduction <add>, %420, %cst_206 [1] : vector<8x12xf32> to vector<8xf32>
    %423 = vector.shape_cast %422 : vector<8xf32> to vector<8x1xf32>
    %424 = tpu.reciprocal %423 {approx = true} : vector<8x1xf32> -> vector<8x1xf32>
    %425 = vector.broadcast %424 : vector<8x1xf32> to vector<8x8xf32>
    %426 = arith.mulf %421, %425 : vector<8x8xf32>
    %c8_207 = arith.constant 8 : index
    %c16_208 = arith.constant 16 : index
    %427 = vector.load %arg43[%c8_207, %c16_208] : memref<16x32xf32, #tpu.memory_space<vmem>>, vector<8x8xf32>
    tpu.vector_store %arg43[%c8_207, %c16_208], %426 {strides = array<i32>} : memref<16x32xf32, #tpu.memory_space<vmem>>, vector<8x8xf32>,
    %428 = vector.extract_strided_slice %368 {offsets = [0, 24], sizes = [8, 8], strides = [1, 1]} : vector<8x32xf32> to vector<8x8xf32>
    %429 = vector.extract_strided_slice %369 {offsets = [0, 24], sizes = [12, 8], strides = [1, 1]} : vector<12x32xf32> to vector<12x8xf32>
    %430 = vector.extract_strided_slice %370 {offsets = [0, 24], sizes = [12, 8], strides = [1, 1]} : vector<12x32xf32> to vector<12x8xf32>
    %cst_209 = arith.constant dense<0.000000e+00> : vector<8x12xf32>
    %431 = tpu.matmul %428, %429, %cst_209 {dimension_numbers = #tpu.dot_dimension_numbers<[1], [1], [0], [0], [0, 0, 1, 0], [], []>} : vector<8x8xf32>, vector<12x8xf32>, vector<8x12xf32> -> vector<8x12xf32>
    %cst_210 = arith.constant 0.353553385 : f32
    %432 = vector.broadcast %cst_210 : f32 to vector<8x12xf32>
    %433 = arith.mulf %431, %432 : vector<8x12xf32>
    %434 = arith.addf %433, %1 : vector<8x12xf32>
    %cst_211 = arith.constant dense<0xFF800000> : vector<8xf32>
    %435 = vector.multi_reduction <maximumf>, %434, %cst_211 [1] : vector<8x12xf32> to vector<8xf32>
    %436 = vector.shape_cast %435 : vector<8xf32> to vector<8x1xf32>
    %437 = vector.broadcast %436 : vector<8x1xf32> to vector<8x12xf32>
    %438 = arith.subf %434, %437 : vector<8x12xf32>
    %439 = math.exp %438 : vector<8x12xf32>
    %cst_212 = arith.constant dense<0.000000e+00> : vector<8x8xf32>
    %440 = tpu.matmul %439, %430, %cst_212 {dimension_numbers = #tpu.dot_dimension_numbers<[1], [0], [0], [1], [0, 0, 1, 1], [], []>} : vector<8x12xf32>, vector<12x8xf32>, vector<8x8xf32> -> vector<8x8xf32>
    %cst_213 = arith.constant dense<0.000000e+00> : vector<8xf32>
    %441 = vector.multi_reduction <add>, %439, %cst_213 [1] : vector<8x12xf32> to vector<8xf32>
    %442 = vector.shape_cast %441 : vector<8xf32> to vector<8x1xf32>
    %443 = tpu.reciprocal %442 {approx = true} : vector<8x1xf32> -> vector<8x1xf32>
    %444 = vector.broadcast %443 : vector<8x1xf32> to vector<8x8xf32>
    %445 = arith.mulf %440, %444 : vector<8x8xf32>
    %c8_214 = arith.constant 8 : index
    %c24_215 = arith.constant 24 : index
    %446 = vector.load %arg43[%c8_214, %c24_215] : memref<16x32xf32, #tpu.memory_space<vmem>>, vector<8x8xf32>
    tpu.vector_store %arg43[%c8_214, %c24_215], %445 {strides = array<i32>} : memref<16x32xf32, #tpu.memory_space<vmem>>, vector<8x8xf32>,
    %c0_216 = arith.constant 0 : index
    %c0_217 = arith.constant 0 : index
    %447 = vector.load %arg43[%c0_216, %c0_217] : memref<16x32xf32, #tpu.memory_space<vmem>>, vector<16x32xf32>
    %c0_218 = arith.constant 0 : index
    %c0_219 = arith.constant 0 : index
    %448 = vector.load %arg27[%c0_218, %c0_219] : memref<32x32xf32, #tpu.memory_space<vmem>>, vector<32x32xf32>
    %cst_220 = arith.constant dense<0.000000e+00> : vector<16x32xf32>
    %449 = tpu.matmul %447, %448, %cst_220 {dimension_numbers = #tpu.dot_dimension_numbers<[1], [0], [0], [1], [0, 0, 1, 1], [], []>} : vector<16x32xf32>, vector<32x32xf32>, vector<16x32xf32> -> vector<16x32xf32>
    %c0_221 = arith.constant 0 : index
    %c0_222 = arith.constant 0 : index
    %450 = vector.load %arg28[%c0_221, %c0_222] : memref<1x32xf32, #tpu.memory_space<vmem>>, vector<1x32xf32>
    %451 = vector.broadcast %450 : vector<1x32xf32> to vector<16x32xf32>
    %452 = arith.addf %449, %451 : vector<16x32xf32>
    %453 = arith.addf %258, %452 : vector<16x32xf32>
    %c0_223 = arith.constant 0 : index
    %c0_224 = arith.constant 0 : index
    %454 = vector.load %arg33[%c0_223, %c0_224] : memref<1x32xf32, #tpu.memory_space<vmem>>, vector<1x32xf32>
    %c0_225 = arith.constant 0 : index
    %c0_226 = arith.constant 0 : index
    %455 = vector.load %arg34[%c0_225, %c0_226] : memref<1x32xf32, #tpu.memory_space<vmem>>, vector<1x32xf32>
    %cst_227 = arith.constant dense<0.000000e+00> : vector<16xf32>
    %456 = vector.multi_reduction <add>, %453, %cst_227 [1] : vector<16x32xf32> to vector<16xf32>
    %457 = vector.shape_cast %456 : vector<16xf32> to vector<16x1xf32>
    %cst_228 = arith.constant 3.200000e+01 : f32
    %458 = vector.broadcast %cst_228 : f32 to vector<16x1xf32>
    %459 = arith.divf %457, %458 : vector<16x1xf32>
    %460 = vector.broadcast %459 : vector<16x1xf32> to vector<16x32xf32>
    %461 = arith.subf %453, %460 : vector<16x32xf32>
    %462 = arith.mulf %461, %461 : vector<16x32xf32>
    %cst_229 = arith.constant dense<0.000000e+00> : vector<16xf32>
    %463 = vector.multi_reduction <add>, %462, %cst_229 [1] : vector<16x32xf32> to vector<16xf32>
    %464 = vector.shape_cast %463 : vector<16xf32> to vector<16x1xf32>
    %cst_230 = arith.constant 3.200000e+01 : f32
    %465 = vector.broadcast %cst_230 : f32 to vector<16x1xf32>
    %466 = arith.divf %464, %465 : vector<16x1xf32>
    %467 = vector.broadcast %459 : vector<16x1xf32> to vector<16x32xf32>
    %468 = arith.subf %453, %467 : vector<16x32xf32>
    %cst_231 = arith.constant 9.99999974E-6 : f32
    %469 = vector.broadcast %cst_231 : f32 to vector<16x1xf32>
    %470 = arith.addf %466, %469 : vector<16x1xf32>
    %471 = math.rsqrt %470 : vector<16x1xf32>
    %472 = vector.broadcast %471 : vector<16x1xf32> to vector<16x32xf32>
    %473 = arith.mulf %468, %472 : vector<16x32xf32>
    %474 = vector.broadcast %454 : vector<1x32xf32> to vector<16x32xf32>
    %475 = arith.mulf %473, %474 : vector<16x32xf32>
    %476 = vector.broadcast %455 : vector<1x32xf32> to vector<16x32xf32>
    %477 = arith.addf %475, %476 : vector<16x32xf32>
    %c0_232 = arith.constant 0 : index
    %c0_233 = arith.constant 0 : index
    %478 = vector.load %arg29[%c0_232, %c0_233] : memref<32x64xf32, #tpu.memory_space<vmem>>, vector<32x64xf32>
    %cst_234 = arith.constant dense<0.000000e+00> : vector<16x64xf32>
    %479 = tpu.matmul %477, %478, %cst_234 {dimension_numbers = #tpu.dot_dimension_numbers<[1], [0], [0], [1], [0, 0, 1, 1], [], []>} : vector<16x32xf32>, vector<32x64xf32>, vector<16x64xf32> -> vector<16x64xf32>
    %c0_235 = arith.constant 0 : index
    %c0_236 = arith.constant 0 : index
    %480 = vector.load %arg30[%c0_235, %c0_236] : memref<1x64xf32, #tpu.memory_space<vmem>>, vector<1x64xf32>
    %481 = vector.broadcast %480 : vector<1x64xf32> to vector<16x64xf32>
    %482 = arith.addf %479, %481 : vector<16x64xf32>
    %cst_237 = arith.constant 0.000000e+00 : f32
    %483 = vector.broadcast %cst_237 : f32 to vector<16x64xf32>
    %484 = arith.maximumf %482, %483 : vector<16x64xf32>
    %c0_238 = arith.constant 0 : index
    %c0_239 = arith.constant 0 : index
    %485 = vector.load %arg31[%c0_238, %c0_239] : memref<64x32xf32, #tpu.memory_space<vmem>>, vector<64x32xf32>
    %cst_240 = arith.constant dense<0.000000e+00> : vector<16x32xf32>
    %486 = tpu.matmul %484, %485, %cst_240 {dimension_numbers = #tpu.dot_dimension_numbers<[1], [0], [0], [1], [0, 0, 1, 1], [], []>} : vector<16x64xf32>, vector<64x32xf32>, vector<16x32xf32> -> vector<16x32xf32>
    %c0_241 = arith.constant 0 : index
    %c0_242 = arith.constant 0 : index
    %487 = vector.load %arg32[%c0_241, %c0_242] : memref<1x32xf32, #tpu.memory_space<vmem>>, vector<1x32xf32>
    %488 = vector.broadcast %487 : vector<1x32xf32> to vector<16x32xf32>
    %489 = arith.addf %486, %488 : vector<16x32xf32>
    %490 = arith.addf %477, %489 : vector<16x32xf32>
    %c0_243 = arith.constant 0 : index
    %c0_244 = arith.constant 0 : index
    %491 = vector.load %arg35[%c0_243, %c0_244] : memref<1x32xf32, #tpu.memory_space<vmem>>, vector<1x32xf32>
    %c0_245 = arith.constant 0 : index
    %c0_246 = arith.constant 0 : index
    %492 = vector.load %arg36[%c0_245, %c0_246] : memref<1x32xf32, #tpu.memory_space<vmem>>, vector<1x32xf32>
    %cst_247 = arith.constant dense<0.000000e+00> : vector<16xf32>
    %493 = vector.multi_reduction <add>, %490, %cst_247 [1] : vector<16x32xf32> to vector<16xf32>
    %494 = vector.shape_cast %493 : vector<16xf32> to vector<16x1xf32>
    %cst_248 = arith.constant 3.200000e+01 : f32
    %495 = vector.broadcast %cst_248 : f32 to vector<16x1xf32>
    %496 = arith.divf %494, %495 : vector<16x1xf32>
    %497 = vector.broadcast %496 : vector<16x1xf32> to vector<16x32xf32>
    %498 = arith.subf %490, %497 : vector<16x32xf32>
    %499 = arith.mulf %498, %498 : vector<16x32xf32>
    %cst_249 = arith.constant dense<0.000000e+00> : vector<16xf32>
    %500 = vector.multi_reduction <add>, %499, %cst_249 [1] : vector<16x32xf32> to vector<16xf32>
    %501 = vector.shape_cast %500 : vector<16xf32> to vector<16x1xf32>
    %cst_250 = arith.constant 3.200000e+01 : f32
    %502 = vector.broadcast %cst_250 : f32 to vector<16x1xf32>
    %503 = arith.divf %501, %502 : vector<16x1xf32>
    %504 = vector.broadcast %496 : vector<16x1xf32> to vector<16x32xf32>
    %505 = arith.subf %490, %504 : vector<16x32xf32>
    %cst_251 = arith.constant 9.99999974E-6 : f32
    %506 = vector.broadcast %cst_251 : f32 to vector<16x1xf32>
    %507 = arith.addf %503, %506 : vector<16x1xf32>
    %508 = math.rsqrt %507 : vector<16x1xf32>
    %509 = vector.broadcast %508 : vector<16x1xf32> to vector<16x32xf32>
    %510 = arith.mulf %505, %509 : vector<16x32xf32>
    %511 = vector.broadcast %491 : vector<1x32xf32> to vector<16x32xf32>
    %512 = arith.mulf %510, %511 : vector<16x32xf32>
    %513 = vector.broadcast %492 : vector<1x32xf32> to vector<16x32xf32>
    %514 = arith.addf %512, %513 : vector<16x32xf32>
    %c0_252 = arith.constant 0 : index
    %c0_253 = arith.constant 0 : index
    %515 = vector.load %arg37[%c0_252, %c0_253] : memref<1x32xf32, #tpu.memory_space<vmem>>, vector<1x32xf32>
    %c0_254 = arith.constant 0 : index
    %c0_255 = arith.constant 0 : index
    %516 = vector.load %arg38[%c0_254, %c0_255] : memref<1x32xf32, #tpu.memory_space<vmem>>, vector<1x32xf32>
    %cst_256 = arith.constant dense<0.000000e+00> : vector<16xf32>
    %517 = vector.multi_reduction <add>, %514, %cst_256 [1] : vector<16x32xf32> to vector<16xf32>
    %518 = vector.shape_cast %517 : vector<16xf32> to vector<16x1xf32>
    %cst_257 = arith.constant 3.200000e+01 : f32
    %519 = vector.broadcast %cst_257 : f32 to vector<16x1xf32>
    %520 = arith.divf %518, %519 : vector<16x1xf32>
    %521 = vector.broadcast %520 : vector<16x1xf32> to vector<16x32xf32>
    %522 = arith.subf %514, %521 : vector<16x32xf32>
    %523 = arith.mulf %522, %522 : vector<16x32xf32>
    %cst_258 = arith.constant dense<0.000000e+00> : vector<16xf32>
    %524 = vector.multi_reduction <add>, %523, %cst_258 [1] : vector<16x32xf32> to vector<16xf32>
    %525 = vector.shape_cast %524 : vector<16xf32> to vector<16x1xf32>
    %cst_259 = arith.constant 3.200000e+01 : f32
    %526 = vector.broadcast %cst_259 : f32 to vector<16x1xf32>
    %527 = arith.divf %525, %526 : vector<16x1xf32>
    %528 = vector.broadcast %520 : vector<16x1xf32> to vector<16x32xf32>
    %529 = arith.subf %514, %528 : vector<16x32xf32>
    %cst_260 = arith.constant 9.99999974E-6 : f32
    %530 = vector.broadcast %cst_260 : f32 to vector<16x1xf32>
    %531 = arith.addf %527, %530 : vector<16x1xf32>
    %532 = math.rsqrt %531 : vector<16x1xf32>
    %533 = vector.broadcast %532 : vector<16x1xf32> to vector<16x32xf32>
    %534 = arith.mulf %529, %533 : vector<16x32xf32>
    %535 = vector.broadcast %515 : vector<1x32xf32> to vector<16x32xf32>
    %536 = arith.mulf %534, %535 : vector<16x32xf32>
    %537 = vector.broadcast %516 : vector<1x32xf32> to vector<16x32xf32>
    %538 = arith.addf %536, %537 : vector<16x32xf32>
    %c0_261 = arith.constant 0 : index
    %c0_262 = arith.constant 0 : index
    %539 = vector.load %arg39[%c0_261, %c0_262] : memref<16x32xf32, #tpu.memory_space<vmem>>, vector<16x32xf32>
    tpu.vector_store %arg39[%c0_261, %c0_262], %538 {strides = array<i32>} : memref<16x32xf32, #tpu.memory_space<vmem>>, vector<16x32xf32>,
    return
  }
}

</mosaic_0001>

<bundles_post_ra>
// kernel: transformer_encoder_forward.1
= control target key start
LH: loop header
LB: loop body
LE: loop exit
PB: predicated region body
PF: predicated region fallthrough
CT: control target
= control target key end

     0   :  { %s6094_s6 = smov 1   ;;  %s6095_s10 = smov 2   ;;  %s7147_s0 = inlined_call_operand.smem [shape: u32[42], index: -1, kind: input, shape index: {}] }
   0x1   :  { %s6173_s5 = sld [smem:[%s7147_s0]]   ;;  %s6096_s14 = smov 3  }
   0x2   :  { %s6178_s9 = sld [smem:[%s7147_s0 + %s6094_s6]]   ;;  %s6097_s18 = smov 4  }
   0x3   :  { %s6183_s13 = sld [smem:[%s7147_s0 + %s6095_s10]]   ;;  %s6098_s22 = smov 5  }
   0x4   :  { %s6188_s17 = sld [smem:[%s7147_s0 + %s6096_s14]]   ;;  %s6099_s26 = smov 6  }
   0x5   :  { %s6193_s21 = sld [smem:[%s7147_s0 + %s6097_s18]]   ;;  %s6100_s30 = smov 7  }
   0x6   :  { %s6198_s25 = sld [smem:[%s7147_s0 + %s6098_s22]]   ;;  %s6101_s4 = smov 8  }
   0x7   :  { %7162 = sst [smem:[#allocation50_spill]] %s6173_s5  ;;  %s6102_s10 = smov 9  }
   0x8   :  { %7163 = sst [smem:[#allocation51_spill]] %s6178_s9  ;;  %s6103_s15 = smov 10  }
   0x9   :  { %s6203_s29 = sld [smem:[%s7147_s0 + %s6099_s26]]   ;;  %s6104_s20 = smov 11  }
   0xa   :  { %7164 = sst [smem:[#allocation52_spill]] %s6188_s17  ;;  %s6105_s26 = smov 12  }
   0xb   :  { %7165 = sst [smem:[#allocation53_spill]] %s6193_s21  ;;  %s6106_s1 = smov 13  }
   0xc   :  { %7166 = sst [smem:[#allocation54_spill]] %s6198_s25  ;;  %s6107_s7 = smov 14  }
   0xd   :  { %s6208_s3 = sld [smem:[%s7147_s0 + %s6100_s30]]   ;;  %s6109_s22 = smov 16  }
   0xe   :  { %s6213_s8 = sld [smem:[%s7147_s0 + %s6101_s4]]   ;;  %s6110_s28 = smov 17  }
   0xf   :  { %s6218_s14 = sld [smem:[%s7147_s0 + %s6102_s10]]  }
  0x10   :  { %s6223_s19 = sld [smem:[%s7147_s0 + %s6103_s15]]   ;;  %s6108_s15 = smov 15  }
  0x11   :  { %s6228_s24 = sld [smem:[%s7147_s0 + %s6104_s20]]  }
  0x12   :  { %s6233_s30 = sld [smem:[%s7147_s0 + %s6105_s26]]  }
  0x13   :  { %7167 = sst [smem:[#allocation55_spill]] %s6208_s3 }
  0x14   :  { %s6238_s6 = sld [smem:[%s7147_s0 + %s6106_s1]]  }
  0x15   :  { %7168 = sst [smem:[#allocation56_spill]] %s6218_s14 }
  0x16   :  { %s6243_s12 = sld [smem:[%s7147_s0 + %s6107_s7]]   ;;  %s6111_s7 = smov 18  }
  0x17   :  { %7169 = sst [smem:[#allocation57_spill]] %s6228_s24 }
  0x18   :  { %s6248_s20 = sld [smem:[%s7147_s0 + %s6108_s15]]   ;;  %s6112_s15 = smov 19  }
  0x19   :  { %s6253_s27 = sld [smem:[%s7147_s0 + %s6109_s22]]   ;;  %s6113_s22 = smov 20  }
  0x1a   :  { %7170 = sst [smem:[#allocation58_spill]] %s6238_s6 }
  0x1b   :  { %s6258_s4 = sld [smem:[%s7147_s0 + %s6110_s28]]   ;;  %s6114_s28 = smov 21  }
  0x1c   :  { %s6263_s6 = sld [smem:[%s7147_s0 + %s6111_s7]]   ;;  %s6115_s7 = smov 22  }
  0x1d   :  { %s6273_s24 = sld [smem:[%s7147_s0 + %s6113_s22]]   ;;  %s6117_s22 = smov 24  }
  0x1e   :  { %7171 = sst [smem:[#allocation59_spill]] %s6248_s20 }
  0x1f   :  { %s6268_s20 = sld [smem:[%s7147_s0 + %s6112_s15]]   ;;  %s6116_s15 = smov 23  }
  0x20   :  { %s6278_s14 = sld [smem:[%s7147_s0 + %s6114_s28]]   ;;  %s6118_s28 = smov 25  }
  0x21   :  { %s6283_s9 = sld [smem:[%s7147_s0 + %s6115_s7]]   ;;  %s6119_s7 = smov 26  }
  0x22   :  { %7172 = sst [smem:[#allocation60_spill]] %s6263_s6 }
  0x23   :  { %7173 = sst [smem:[#allocation61_spill]] %s6273_s24 }
  0x24   :  { %s6288_s21 = sld [smem:[%s7147_s0 + %s6116_s15]]   ;;  %s6120_s15 = smov 27  }
  0x25   :  { %s6293_s3 = sld [smem:[%s7147_s0 + %s6117_s22]]   ;;  %s6121_s22 = smov 28  }
  0x26   :  { %7174 = sst [smem:[#allocation62_spill]] %s6278_s14 }
  0x27   :  { %s6298_s14 = sld [smem:[%s7147_s0 + %s6118_s28]]   ;;  %s6122_s28 = smov 29  }
  0x28   :  { %s6303_s17 = sld [smem:[%s7147_s0 + %s6119_s7]]   ;;  %s6123_s7 = smov 30  }
  0x29   :  { %s6313_s5 = sld [smem:[%s7147_s0 + %s6121_s22]]   ;;  %s6125_s22 = smov 32  }
  0x2a   :  { %7175 = sst [smem:[#allocation63_spill]] %s6288_s21 }
  0x2b   :  { %7176 = sst [smem:[#allocation64_spill]] %s6293_s3 }
  0x2c   :  { %s6308_s21 = sld [smem:[%s7147_s0 + %s6120_s15]]   ;;  %s6124_s15 = smov 31  }
  0x2d   :  { %7177 = sst [smem:[#allocation65_spill]] %s6298_s14 }
  0x2e   :  { %s6318_s14 = sld [smem:[%s7147_s0 + %s6122_s28]]   ;;  %s6126_s28 = smov 33  }
  0x2f   :  { %7179 = sst [smem:[#allocation67_spill]] %s6313_s5 }
  0x30   :  { %s6323_s25 = sld [smem:[%s7147_s0 + %s6123_s7]]   ;;  %s6127_s7 = smov 34  }
  0x31   :  { %s6333_s5 = sld [smem:[%s7147_s0 + %s6125_s22]]   ;;  %s6129_s22 = smov 36  }
  0x32   :  { %7178 = sst [smem:[#allocation66_spill]] %s6308_s21 }
  0x33   :  { %s6328_s21 = sld [smem:[%s7147_s0 + %s6124_s15]]   ;;  %s6128_s15 = smov 35  }
  0x34   :  { %7180 = sst [smem:[#allocation68_spill]] %s6318_s14 }
  0x35   :  { %s6338_s14 = sld [smem:[%s7147_s0 + %s6126_s28]]   ;;  %s6130_s28 = smov 37  }
  0x36   :  { %s6343_s3 = sld [smem:[%s7147_s0 + %s6127_s7]]   ;;  %s6131_s7 = smov 38  }
  0x37   :  { %7182 = sst [smem:[#allocation70_spill]] %s6333_s5 }
  0x38   :  { %s6353_s5 = sld [smem:[%s7147_s0 + %s6129_s22]]   ;;  %s6133_s22 = smov 40  }
  0x39   :  { %7181 = sst [smem:[#allocation69_spill]] %s6328_s21 }
  0x3a   :  { %s6348_s21 = sld [smem:[%s7147_s0 + %s6128_s15]]   ;;  %s6132_s15 = smov 39  }
  0x3b   :  { %s6358_s24 = sld [smem:[%s7147_s0 + %s6130_s28]]   ;;  %s6134_s28 = smov 41  }
  0x3c   :  { %7183 = sst [smem:[#allocation71_spill]] %s6343_s3 }
  0x3d   :  { %s6363_s3 = sld [smem:[%s7147_s0 + %s6131_s7]]  }
  0x3e   :  { %7184 = sst [smem:[#allocation72_spill]] %s6353_s5 }
  0x3f   :  { %s6368_s6 = sld [smem:[%s7147_s0 + %s6132_s15]]  }
  0x40   :  { %s6373_s5 = sld [smem:[%s7147_s0 + %s6133_s22]]  }
  0x41   :  { %7185 = sst [smem:[#allocation73_spill]] %s6358_s24 }
  0x42   :  { %s6378_s24 = sld [smem:[%s7147_s0 + %s6134_s28]]  }
  0x43   :  { %89 = vsyncpa [#allocation5], 0 }
  0x44   :  { %90 = vsyncpa [#allocation7], 0 }
  0x45   :  { %91 = vsyncpa [#allocation10], 0 }
  0x46   :  { %92 = vsyncpa [#allocation13], 0 }
  0x47   :  { %93 = vsyncpa [#allocation16], 0 }
  0x48   :  { %94 = vsyncpa [#allocation19], 0 }
  0x49   :  { %95 = vsyncpa [#allocation22], 0 }
  0x4a   :  { %96 = vsyncpa [#allocation25], 0 }
  0x4b   :  { %97 = vsyncpa [#allocation28], 0 }
  0x4c   :  { %98 = vsyncpa [#allocation31], 0 }
  0x4d   :  { %99 = vsyncpa [#allocation34], 0 }
  0x4e   :  { %100 = vsyncpa [#allocation37], 0  ;;  %s6135_s7 = smov [#allocation6]   ;;  %s6136_s11 = smov [#allocation9]  }
  0x4f   :  { %s127_s10 = sshll.u32 %s6135_s7, 4  ;;  %s151_s15 = sshll.u32 %s6136_s11, 4  ;;  %s128_s10 = int_to_ptr.vmem [resolvable:$true] %s127_s10  ;;  %s152_s15 = int_to_ptr.vmem [resolvable:$true] %s151_s15 }
  0x50   :  { %s5638_s0 = scalar_lea.vmem %s128_s10, 16  ;;  %s5642_s16 = scalar_lea.vmem %s128_s10, 32 }
  0x51   :  { %p5639_p0 = scmp.ne.s32.totalorder %s128_s10, %s5638_s0  ;;  %p5643_p1 = scmp.lt.s32.totalorder %s128_s10, %s128_s10 }
  0x52   :  { %p5644_p2 = scmp.lt.s32.totalorder %s5642_s16, %s5638_s0 }
  0x54   :  { %p5645_p3 = por %p5644_p2, %p5643_p1 }
  0x56   :  { %p5646_p4 = pnand %p5645_p3, %p5639_p0 }
  0x58   :  { %5649 = shalt.err (!%p5646_p4)
}
  0x59   :  { %130 = dma.hbm_to_vmem [thread:$0]  %s6203_s29, 16, %s128_s10, [#allocation7]  }
  0x5a   :  { %s5658_s18 = scalar_lea.vmem %s152_s15, 16  ;;  %s5662_s22 = scalar_lea.vmem %s152_s15, 32 }
  0x5b   :  { %p5659_p5 = scmp.ne.s32.totalorder %s152_s15, %s5658_s18  ;;  %p5663_p6 = scmp.lt.s32.totalorder %s152_s15, %s152_s15 }
  0x5c   :  { %p5664_p7 = scmp.lt.s32.totalorder %s5662_s22, %s5658_s18 }
  0x5e   :  { %p5665_p8 = por %p5664_p7, %p5663_p6 }
  0x60   :  { %p5666_p9 = pnand %p5665_p8, %p5659_p5 }
  0x62   :  { %5669 = shalt.err (!%p5666_p9)
}
  0x63   :  { %154 = dma.hbm_to_vmem [thread:$0]  %s6223_s19, 16, %s152_s15, [#allocation10]  }
  0x64   :  { %s6137_s23 = smov [#allocation12]   ;;  %s6138_s28 = smov [#allocation15]  }
  0x65   :  { %s175_s26 = sshll.u32 %s6137_s23, 4  ;;  %s197_s1 = sshll.u32 %s6138_s28, 4  ;;  %s176_s26 = int_to_ptr.vmem [resolvable:$true] %s175_s26  ;;  %s198_s1 = int_to_ptr.vmem [resolvable:$true] %s197_s1 }
  0x66   :  { %s5678_s2 = scalar_lea.vmem %s176_s26, 16  ;;  %s5682_s7 = scalar_lea.vmem %s176_s26, 32 }
  0x67   :  { %p5679_p10 = scmp.ne.s32.totalorder %s176_s26, %s5678_s2  ;;  %p5683_p11 = scmp.lt.s32.totalorder %s176_s26, %s176_s26 }
  0x68   :  { %p5684_p12 = scmp.lt.s32.totalorder %s5682_s7, %s5678_s2 }
  0x6a   :  { %p5685_p13 = por %p5684_p12, %p5683_p11 }
  0x6c   :  { %p5686_p0 = pnand %p5685_p13, %p5679_p10 }
  0x6e   :  { %5689 = shalt.err (!%p5686_p0)
}
  0x6f   :  { %178 = dma.hbm_to_vmem [thread:$0]  %s6243_s12, 16, %s176_s26, [#allocation13]  }
  0x70   :  { %s5698_s29 = scalar_lea.vmem %s198_s1, 16  ;;  %s5702_s10 = scalar_lea.vmem %s198_s1, 32 }
  0x71   :  { %p5699_p1 = scmp.ne.s32.totalorder %s198_s1, %s5698_s29  ;;  %p5703_p2 = scmp.lt.s32.totalorder %s198_s1, %s198_s1 }
  0x72   :  { %p5704_p3 = scmp.lt.s32.totalorder %s5702_s10, %s5698_s29 }
  0x74   :  { %p5705_p4 = por %p5704_p3, %p5703_p2 }
  0x76   :  { %p5706_p5 = pnand %p5705_p4, %p5699_p1 }
  0x78   :  { %5709 = shalt.err (!%p5706_p5)
}
  0x79   :  { %200 = dma.hbm_to_vmem [thread:$0]  %s6258_s4, 16, %s198_s1, [#allocation16]  }
  0x7a   :  { %s6139_s19 = smov [#allocation18]   ;;  %s6140_s15 = smov [#allocation21]  }
  0x7b   :  { %s217_s11 = sshll.u32 %s6139_s19, 4  ;;  %s239_s0 = sshll.u32 %s6140_s15, 4  ;;  %s218_s11 = int_to_ptr.vmem [resolvable:$true] %s217_s11  ;;  %s240_s0 = int_to_ptr.vmem [resolvable:$true] %s239_s0 }
  0x7c   :  { %s5718_s16 = scalar_lea.vmem %s218_s11, 16  ;;  %s5722_s18 = scalar_lea.vmem %s218_s11, 32 }
  0x7d   :  { %p5719_p6 = scmp.ne.s32.totalorder %s218_s11, %s5718_s16  ;;  %p5723_p7 = scmp.lt.s32.totalorder %s218_s11, %s218_s11 }
  0x7e   :  { %p5724_p8 = scmp.lt.s32.totalorder %s5722_s18, %s5718_s16 }
  0x80   :  { %p5725_p9 = por %p5724_p8, %p5723_p7 }
  0x82   :  { %p5726_p10 = pnand %p5725_p9, %p5719_p6 }
  0x84   :  { %5729 = shalt.err (!%p5726_p10)
}
  0x85   :  { %220 = dma.hbm_to_vmem [thread:$0]  %s6268_s20, 16, %s218_s11, [#allocation19]  }
  0x86   :  { %s5738_s12 = scalar_lea.vmem %s240_s0, 16  ;;  %s5742_s22 = scalar_lea.vmem %s240_s0, 32 }
  0x87   :  { %p5739_p11 = scmp.ne.s32.totalorder %s240_s0, %s5738_s12  ;;  %p5743_p12 = scmp.lt.s32.totalorder %s240_s0, %s240_s0 }
  0x88   :  { %p5744_p13 = scmp.lt.s32.totalorder %s5742_s22, %s5738_s12 }
  0x8a   :  { %p5745_p0 = por %p5744_p13, %p5743_p12 }
  0x8c   :  { %p5746_p1 = pnand %p5745_p0, %p5739_p11 }
  0x8e   :  { %5749 = shalt.err (!%p5746_p1)
}
  0x8f   :  { %242 = dma.hbm_to_vmem [thread:$0]  %s6283_s9, 16, %s240_s0, [#allocation22]  }
  0x90   :  { %s6141_s4 = smov [#allocation24]   ;;  %s6142_s26 = smov [#allocation27]  }
  0x91   :  { %s263_s23 = sshll.u32 %s6141_s4, 4  ;;  %s287_s28 = sshll.u32 %s6142_s26, 4  ;;  %s264_s23 = int_to_ptr.vmem [resolvable:$true] %s263_s23  ;;  %s288_s28 = int_to_ptr.vmem [resolvable:$true] %s287_s28 }
  0x92   :  { %s5758_s1 = scalar_lea.vmem %s264_s23, 16  ;;  %s5762_s2 = scalar_lea.vmem %s264_s23, 32 }
  0x93   :  { %p5759_p2 = scmp.ne.s32.totalorder %s264_s23, %s5758_s1  ;;  %p5763_p3 = scmp.lt.s32.totalorder %s264_s23, %s264_s23 }
  0x94   :  { %p5764_p4 = scmp.lt.s32.totalorder %s5762_s2, %s5758_s1 }
  0x96   :  { %p5765_p5 = por %p5764_p4, %p5763_p3 }
  0x98   :  { %p5766_p6 = pnand %p5765_p5, %p5759_p2 }
  0x9a   :  { %5769 = shalt.err (!%p5766_p6)
}
  0x9b   :  { %266 = dma.hbm_to_vmem [thread:$0]  %s6303_s17, 16, %s264_s23, [#allocation25]  }
  0x9c   :  { %s5778_s20 = scalar_lea.vmem %s288_s28, 16  ;;  %s5782_s7 = scalar_lea.vmem %s288_s28, 32 }
  0x9d   :  { %p5779_p7 = scmp.ne.s32.totalorder %s288_s28, %s5778_s20  ;;  %p5783_p8 = scmp.lt.s32.totalorder %s288_s28, %s288_s28 }
  0x9e   :  { %p5784_p9 = scmp.lt.s32.totalorder %s5782_s7, %s5778_s20 }
  0xa0   :  { %p5785_p10 = por %p5784_p9, %p5783_p8 }
  0xa2   :  { %p5786_p11 = pnand %p5785_p10, %p5779_p7 }
  0xa4   :  { %5789 = shalt.err (!%p5786_p11)
}
  0xa5   :  { %290 = dma.hbm_to_vmem [thread:$0]  %s6323_s25, 16, %s288_s28, [#allocation28]  }
  0xa6   :  { %s6143_s9 = smov [#allocation30]   ;;  %s6144_s10 = smov [#allocation33]  }
  0xa7   :  { %s309_s29 = sshll.u32 %s6143_s9, 4  ;;  %s329_s19 = sshll.u32 %s6144_s10, 4  ;;  %s310_s29 = int_to_ptr.vmem [resolvable:$true] %s309_s29  ;;  %s330_s19 = int_to_ptr.vmem [resolvable:$true] %s329_s19 }
  0xa8   :  { %s5798_s11 = scalar_lea.vmem %s310_s29, 16  ;;  %s5802_s15 = scalar_lea.vmem %s310_s29, 32 }
  0xa9   :  { %p5799_p12 = scmp.ne.s32.totalorder %s310_s29, %s5798_s11  ;;  %p5803_p13 = scmp.lt.s32.totalorder %s310_s29, %s310_s29 }
  0xaa   :  { %p5804_p0 = scmp.lt.s32.totalorder %s5802_s15, %s5798_s11 }
  0xac   :  { %p5805_p1 = por %p5804_p0, %p5803_p13 }
  0xae   :  { %p5806_p2 = pnand %p5805_p1, %p5799_p12 }
  0xb0   :  { %5809 = shalt.err (!%p5806_p2)
}
  0xb1   :  { %312 = dma.hbm_to_vmem [thread:$0]  %s6338_s14, 16, %s310_s29, [#allocation31]  }
  0xb2   :  { %s5818_s17 = scalar_lea.vmem %s330_s19, 16  ;;  %s5822_s0 = scalar_lea.vmem %s330_s19, 32 }
  0xb3   :  { %p5819_p3 = scmp.ne.s32.totalorder %s330_s19, %s5818_s17  ;;  %p5823_p4 = scmp.lt.s32.totalorder %s330_s19, %s330_s19 }
  0xb4   :  { %p5824_p5 = scmp.lt.s32.totalorder %s5822_s0, %s5818_s17 }
  0xb6   :  { %p5825_p6 = por %p5824_p5, %p5823_p4 }
  0xb8   :  { %p5826_p7 = pnand %p5825_p6, %p5819_p3 }
  0xba   :  { %5829 = shalt.err (!%p5826_p7)
}
  0xbb   :  { %332 = dma.hbm_to_vmem [thread:$0]  %s6348_s21, 16, %s330_s19, [#allocation34]  }
  0xbc   :  { %s6145_s25 = smov [#allocation4]   ;;  %s6146_s18 = smov [#allocation8]  }
  0xbd   :  { %s111_s16 = sshll.u32 %s6145_s25, 4  ;;  %s139_s12 = sshll.u32 %s6146_s18, 4  ;;  %s112_s16 = int_to_ptr.vmem [resolvable:$true] %s111_s16  ;;  %s140_s12 = int_to_ptr.vmem [resolvable:$true] %s139_s12 }
  0xbe   :  { %s5838_s22 = scalar_lea.vmem %s112_s16, 128  ;;  %p5843_p9 = scmp.lt.s32.totalorder %s112_s16, %s112_s16 }
  0xbf   :  { %p5839_p8 = scmp.ne.s32.totalorder %s112_s16, %s5838_s22  ;;  %p5844_p10 = scmp.lt.s32.totalorder %s5838_s22, %s5838_s22 }
  0xc1   :  { %p5845_p11 = por %p5844_p10, %p5843_p9 }
  0xc3   :  { %p5846_p12 = pnand %p5845_p11, %p5839_p8 }
  0xc5   :  { %5849 = shalt.err (!%p5846_p12)
}
  0xc6   :  { %114 = dma.hbm_to_vmem [thread:$0]  %s6183_s13, 128, %s112_s16, [#allocation5]  }
  0xc7   :  { %s5858_s14 = scalar_lea.vmem %s140_s12, 16  ;;  %s5862_s4 = scalar_lea.vmem %s140_s12, 32 }
  0xc8   :  { %p5859_p13 = scmp.ne.s32.totalorder %s140_s12, %s5858_s14  ;;  %p5863_p0 = scmp.lt.s32.totalorder %s140_s12, %s140_s12 }
  0xc9   :  { %p5864_p1 = scmp.lt.s32.totalorder %s5862_s4, %s5858_s14 }
  0xcb   :  { %p5865_p2 = por %p5864_p1, %p5863_p0 }
  0xcd   :  { %p5866_p3 = pnand %p5865_p2, %p5859_p13 }
  0xcf   :  { %5869 = shalt.err (!%p5866_p3)
}
  0xd0   :  { %142 = dma.hbm_to_vmem [thread:$0]  %s6213_s8, 16, %s140_s12, [#allocation7]  }
  0xd1   :  { %s6147_s21 = smov [#allocation11]   ;;  %s6148_s26 = smov [#allocation14]  }
  0xd2   :  { %s163_s23 = sshll.u32 %s6147_s21, 4  ;;  %s187_s28 = sshll.u32 %s6148_s26, 4  ;;  %s164_s23 = int_to_ptr.vmem [resolvable:$true] %s163_s23  ;;  %s188_s28 = int_to_ptr.vmem [resolvable:$true] %s187_s28 }
  0xd3   :  { %s5878_s1 = scalar_lea.vmem %s164_s23, 16  ;;  %s5882_s2 = scalar_lea.vmem %s164_s23, 32 }
  0xd4   :  { %p5879_p4 = scmp.ne.s32.totalorder %s164_s23, %s5878_s1  ;;  %p5883_p5 = scmp.lt.s32.totalorder %s164_s23, %s164_s23 }
  0xd5   :  { %p5884_p6 = scmp.lt.s32.totalorder %s5882_s2, %s5878_s1 }
  0xd7   :  { %p5885_p7 = por %p5884_p6, %p5883_p5 }
  0xd9   :  { %p5886_p8 = pnand %p5885_p7, %p5879_p4 }
  0xdb   :  { %5889 = shalt.err (!%p5886_p8)
}
  0xdc   :  { %166 = dma.hbm_to_vmem [thread:$0]  %s6233_s30, 16, %s164_s23, [#allocation10]  }
  0xdd   :  { %s5898_s13 = scalar_lea.vmem %s188_s28, 16  ;;  %s5902_s20 = scalar_lea.vmem %s188_s28, 32 }
  0xde   :  { %p5899_p9 = scmp.ne.s32.totalorder %s188_s28, %s5898_s13  ;;  %p5903_p10 = scmp.lt.s32.totalorder %s188_s28, %s188_s28 }
  0xdf   :  { %p5904_p11 = scmp.lt.s32.totalorder %s5902_s20, %s5898_s13 }
  0xe1   :  { %p5905_p12 = por %p5904_p11, %p5903_p10 }
  0xe3   :  { %p5906_p13 = pnand %p5905_p12, %p5899_p9 }
  0xe5   :  { %5909 = shalt.err (!%p5906_p13)
}
  0xe6   :  { %190 = dma.hbm_to_vmem [thread:$0]  %s6253_s27, 16, %s188_s28, [#allocation13]  }
  0xe7   :  { %s6149_s8 = smov [#allocation17]   ;;  %s6150_s9 = smov [#allocation20]  }
  0xe8   :  { %s207_s7 = sshll.u32 %s6149_s8, 4  ;;  %s227_s29 = sshll.u32 %s6150_s9, 4  ;;  %s208_s7 = int_to_ptr.vmem [resolvable:$true] %s207_s7  ;;  %s228_s29 = int_to_ptr.vmem [resolvable:$true] %s227_s29 }
  0xe9   :  { %s5918_s10 = scalar_lea.vmem %s208_s7, 16  ;;  %s5922_s19 = scalar_lea.vmem %s208_s7, 32 }
  0xea   :  { %p5919_p0 = scmp.ne.s32.totalorder %s208_s7, %s5918_s10  ;;  %p5923_p1 = scmp.lt.s32.totalorder %s208_s7, %s208_s7 }
  0xeb   :  { %p5924_p2 = scmp.lt.s32.totalorder %s5922_s19, %s5918_s10 }
  0xed   :  { %p5925_p3 = por %p5924_p2, %p5923_p1 }
  0xef   :  { %p5926_p4 = pnand %p5925_p3, %p5919_p0 }
  0xf1   :  { %5929 = shalt.err (!%p5926_p4)
}
  0xf2   :  { %s7186_s30 = sld [smem:[#allocation60_spill]]  ;;  %s5938_s11 = scalar_lea.vmem %s228_s29, 16 }
  0xf3   :  { %p5939_p5 = scmp.ne.s32.totalorder %s228_s29, %s5938_s11  ;;  %s5942_s15 = scalar_lea.vmem %s228_s29, 32 }
  0xf4   :  { %p5943_p6 = scmp.lt.s32.totalorder %s228_s29, %s228_s29  ;;  %p5944_p7 = scmp.lt.s32.totalorder %s5942_s15, %s5938_s11 }
  0xf6   :  { %p5945_p8 = por %p5944_p7, %p5943_p6 }
  0xf8   :  { %210 = dma.hbm_to_vmem [thread:$0]  %s7186_s30, 16, %s208_s7, [#allocation16]  }
  0xf9   :  { %p5946_p9 = pnand %p5945_p8, %p5939_p5 }
  0xfb   :  { %5949 = shalt.err (!%p5946_p9)
}
  0xfc   :  { %s7187_s27 = sld [smem:[#allocation61_spill]]  ;;  %s6151_s17 = smov [#allocation23]  }
  0xfd   :  { %s251_s0 = sshll.u32 %s6151_s17, 4  ;;  %s6152_s25 = smov [#allocation26]   ;;  %s252_s0 = int_to_ptr.vmem [resolvable:$true] %s251_s0 }
  0xfe   :  { %s275_s16 = sshll.u32 %s6152_s25, 4  ;;  %s5958_s18 = scalar_lea.vmem %s252_s0, 16  ;;  %s276_s16 = int_to_ptr.vmem [resolvable:$true] %s275_s16 }
  0xff   :  { %p5959_p10 = scmp.ne.s32.totalorder %s252_s0, %s5958_s18  ;;  %s5962_s12 = scalar_lea.vmem %s252_s0, 32 }
 0x100   :  { %p5963_p11 = scmp.lt.s32.totalorder %s252_s0, %s252_s0  ;;  %p5964_p12 = scmp.lt.s32.totalorder %s5962_s12, %s5958_s18 }
 0x102   :  { %230 = dma.hbm_to_vmem [thread:$0]  %s7187_s27, 16, %s228_s29, [#allocation19]  }
 0x103   :  { %p5965_p13 = por %p5964_p12, %p5963_p11 }
 0x105   :  { %p5966_p0 = pnand %p5965_p13, %p5959_p10 }
 0x107   :  { %5969 = shalt.err (!%p5966_p0)
}
 0x108   :  { %s7188_s22 = sld [smem:[#allocation64_spill]]  ;;  %s5978_s14 = scalar_lea.vmem %s276_s16, 16 }
 0x109   :  { %p5979_p1 = scmp.ne.s32.totalorder %s276_s16, %s5978_s14  ;;  %s5982_s4 = scalar_lea.vmem %s276_s16, 32 }
 0x10a   :  { %p5983_p2 = scmp.lt.s32.totalorder %s276_s16, %s276_s16  ;;  %p5984_p3 = scmp.lt.s32.totalorder %s5982_s4, %s5978_s14 }
 0x10c   :  { %p5985_p4 = por %p5984_p3, %p5983_p2 }
 0x10e   :  { %254 = dma.hbm_to_vmem [thread:$0]  %s7188_s22, 16, %s252_s0, [#allocation22]  }
 0x10f   :  { %p5986_p5 = pnand %p5985_p4, %p5979_p1 }
 0x111   :  { %5989 = shalt.err (!%p5986_p5)
}
 0x112   :  { %s7189_s21 = sld [smem:[#allocation67_spill]]  ;;  %s6153_s23 = smov [#allocation29]  }
 0x113   :  { %s299_s26 = sshll.u32 %s6153_s23, 4  ;;  %s6154_s28 = smov [#allocation32]   ;;  %s300_s26 = int_to_ptr.vmem [resolvable:$true] %s299_s26 }
 0x114   :  { %s319_s1 = sshll.u32 %s6154_s28, 4  ;;  %s5998_s2 = scalar_lea.vmem %s300_s26, 16  ;;  %s320_s1 = int_to_ptr.vmem [resolvable:$true] %s319_s1 }
 0x115   :  { %p5999_p6 = scmp.ne.s32.totalorder %s300_s26, %s5998_s2  ;;  %s6002_s13 = scalar_lea.vmem %s300_s26, 32 }
 0x116   :  { %p6003_p7 = scmp.lt.s32.totalorder %s300_s26, %s300_s26  ;;  %p6004_p8 = scmp.lt.s32.totalorder %s6002_s13, %s5998_s2 }
 0x118   :  { %278 = dma.hbm_to_vmem [thread:$0]  %s7189_s21, 16, %s276_s16, [#allocation25]  }
 0x119   :  { %p6005_p9 = por %p6004_p8, %p6003_p7 }
 0x11b   :  { %p6006_p10 = pnand %p6005_p9, %p5999_p6 }
 0x11d   :  { %6009 = shalt.err (!%p6006_p10)
}
 0x11e   :  { %s7190_s20 = sld [smem:[#allocation70_spill]]  ;;  %s6018_s8 = scalar_lea.vmem %s320_s1, 16 }
 0x11f   :  { %p6019_p11 = scmp.ne.s32.totalorder %s320_s1, %s6018_s8  ;;  %s6022_s7 = scalar_lea.vmem %s320_s1, 32 }
 0x120   :  { %p6023_p12 = scmp.lt.s32.totalorder %s320_s1, %s320_s1  ;;  %p6024_p13 = scmp.lt.s32.totalorder %s6022_s7, %s6018_s8 }
 0x122   :  { %p6025_p0 = por %p6024_p13, %p6023_p12 }
 0x124   :  { %302 = dma.hbm_to_vmem [thread:$0]  %s7190_s20, 16, %s300_s26, [#allocation28]  }
 0x125   :  { %p6026_p1 = pnand %p6025_p0, %p6019_p11 }
 0x127   :  { %6029 = shalt.err (!%p6026_p1)
}
 0x128   :  { %s7191_s9 = sld [smem:[#allocation71_spill]]  ;;  %s6155_s29 = smov [#allocation35]  }
 0x129   :  { %s339_s10 = sshll.u32 %s6155_s29, 4  ;;  %s6156_s19 = smov [#allocation36]   ;;  %s340_s10 = int_to_ptr.vmem [resolvable:$true] %s339_s10 }
 0x12a   :  { %s351_s30 = sshll.u32 %s6156_s19, 4  ;;  %s6038_s11 = scalar_lea.vmem %s340_s10, 16  ;;  %s352_s30 = int_to_ptr.vmem [resolvable:$true] %s351_s30 }
 0x12b   :  { %p6039_p2 = scmp.ne.s32.totalorder %s340_s10, %s6038_s11  ;;  %s6042_s15 = scalar_lea.vmem %s340_s10, 32 }
 0x12c   :  { %p6043_p3 = scmp.lt.s32.totalorder %s340_s10, %s340_s10  ;;  %p6044_p4 = scmp.lt.s32.totalorder %s6042_s15, %s6038_s11 }
 0x12e   :  { %322 = dma.hbm_to_vmem [thread:$0]  %s7191_s9, 16, %s320_s1, [#allocation31]  }
 0x12f   :  { %p6045_p5 = por %p6044_p4, %p6043_p3 }
 0x131   :  { %p6046_p6 = pnand %p6045_p5, %p6039_p2 }
 0x133   :  { %6049 = shalt.err (!%p6046_p6)
}
 0x134   :  { %s7192_s27 = sld [smem:[#allocation72_spill]]  ;;  %s6058_s17 = scalar_lea.vmem %s352_s30, 16 }
 0x135   :  { %p6059_p7 = scmp.ne.s32.totalorder %s352_s30, %s6058_s17  ;;  %s6062_s0 = scalar_lea.vmem %s352_s30, 32 }
 0x136   :  { %p6063_p8 = scmp.lt.s32.totalorder %s352_s30, %s352_s30  ;;  %p6064_p9 = scmp.lt.s32.totalorder %s6062_s0, %s6058_s17 }
 0x138   :  { %p6065_p10 = por %p6064_p9, %p6063_p8 }
 0x13a   :  { %342 = dma.hbm_to_vmem [thread:$0]  %s7192_s27, 16, %s340_s10, [#allocation34]  }
 0x13b   :  { %p6066_p11 = pnand %p6065_p10, %p6059_p7 }
 0x13d   :  { %6069 = shalt.err (!%p6066_p11)
}
 0x13e   :  { %354 = dma.hbm_to_vmem [thread:$0]  %s6363_s3, 16, %s352_s30, [#allocation37]  }
 0x13f   :  { %6070 = dma.done.wait [#allocation5], 128  }
 0x140   :  { %6071 = vsyncadd [#allocation5], 4294967168 }
 0x141   :  { %6072 = dma.done.wait [#allocation7], 32  }
 0x142   :  { %6073 = vsyncadd [#allocation7], 4294967264 }
 0x143   :  { %6074 = dma.done.wait [#allocation10], 32  }
 0x144   :  { %6075 = vsyncadd [#allocation10], 4294967264 }
 0x145   :  { %6076 = dma.done.wait [#allocation13], 32  }
 0x146   :  { %6077 = vsyncadd [#allocation13], 4294967264 }
 0x147   :  { %6078 = dma.done.wait [#allocation16], 32  }
 0x148   :  { %6079 = vsyncadd [#allocation16], 4294967264 }
 0x149   :  { %6080 = dma.done.wait [#allocation19], 32  }
 0x14a   :  { %6081 = vsyncadd [#allocation19], 4294967264 }
 0x14b   :  { %6082 = dma.done.wait [#allocation22], 32  }
 0x14c   :  { %6083 = vsyncadd [#allocation22], 4294967264 }
 0x14d   :  { %6084 = dma.done.wait [#allocation25], 32  }
 0x14e   :  { %6085 = vsyncadd [#allocation25], 4294967264 }
 0x14f   :  { %6086 = dma.done.wait [#allocation28], 32  }
 0x150   :  { %6087 = vsyncadd [#allocation28], 4294967264 }
 0x151   :  { %6088 = dma.done.wait [#allocation31], 32  }
 0x152   :  { %6089 = vsyncadd [#allocation31], 4294967264 }
 0x153   :  { %6090 = dma.done.wait [#allocation34], 32  }
 0x154   :  { %6091 = vsyncadd [#allocation34], 4294967264 }
 0x155   :  { %6092 = dma.done.wait [#allocation37], 16  }
 0x156   :  { %6093 = vsyncadd [#allocation37], 4294967280  ;;  %s7193_s3 = sld [smem:[#allocation54_spill]]  ;;  %v6157_v0 = vmov 0.0   ;;  %vm6158_vm0 = vmmov 0   ;;  %vm430_vm1 = vcmask 261120  }
 0x157   :  { %s7194_s25 = sld [smem:[#allocation50_spill]]  ;;  %5103 = vmatprep.subr.mxu0 %v6157_v0  ;;  %5111 = vmatprep.mubr.msk.f32.mxu0 %vm6158_vm0, %v6157_v0  ;;  %vm428_vm2 = vcmask 257024   ;;  %vm434_vm3 = vcmask 261124   ;;  %v4765_v27 = vld [vmem:[#allocation6] ss:$0 sm:$0xff]  ;;  %s6159_s4 = smov 120  }
 0x158   :  { %s7195_s16 = sld [smem:[#allocation52_spill]]  ;;  %v4768_v34 = vld [vmem:[#allocation8] ss:$0 sm:$0xff]  ;;  %vm737_vm4 = vcmask 64512   ;;  %s6160_s21 = smov 112   ;;  %vm829_vm5 = vcmask 1043456  }
 0x159   :  { %s7196_s18 = sld [smem:[#allocation55_spill]]  ;;  %v4772_v42 = vld [vmem:[#allocation9] ss:$0 sm:$0xff]  ;;  %v6528_v59 = vld [vmem:[#allocation4] sm:$0xff]  ;;  %vm819_vm6 = vcmask 97280   ;;  %s6161_s23 = smov 104  }
 0x15a   :  { %s7197_s12 = sld [smem:[#allocation53_spill]]  ;;  %s6162_s26 = smov 8   ;;  %vm1089_vm7 = vcmask 130112   ;;  %vm1270_vm8 = vcmask 195712   ;;  %vm1451_vm9 = vcmask 261312   ;;  %vm2418_vm10 = vcmask 523264  }
 0x15b   :  { %s7198_s22 = sld [smem:[#allocation51_spill]]  ;;  %s6163_s28 = smov 24  }
 0x15c   :  { %v448_v1 = vld [vmem:[%s7193_s3 + $0x18] sm:$0xff]  ;;  %v447_v2 = vld [vmem:[%s7193_s3 + $0x10] sm:$0xff]  ;;  %v446_v5 = vld [vmem:[%s7193_s3 + $0x8] sm:$0xff]  ;;  %s7199_s14 = sld [smem:[#allocation56_spill]]  ;;  %s6164_s1 = smov 16  }
 0x15d   :  { %5075 = vmatprep.subr.mxu1 %v448_v1  ;;  %v6408_v3 = vld [vmem:[%s7194_s25] sm:$0xff]  ;;  %v6411_v4 = vld [vmem:[%s7194_s25 + $0x8] sm:$0xff]  ;;  %s7200_s2 = sld [smem:[#allocation57_spill]] }
 0x15e   :  { %5076 = vmatpush3.msra.mxu1 %v448_v1  ;;  %431 = vst.msk [vmem:[#allocation2 + $0x4] sm:$0xff] %vm430_vm1, %v6408_v3  ;;  %5083 = vmatprep.mubr.msk.f32.mxu1 %vm430_vm1, %v6408_v3  ;;  %436 = vst.msk [vmem:[#allocation2 + $0x10] sm:$0xff] %vm430_vm1, %v6411_v4  ;;  %v427_v6 = vld [vmem:[%s7195_s16] sm:$0xff]  ;;  %s7201_s13 = sld [smem:[#allocation58_spill]] }
 0x15f   :  { %5077 = vmatprep.subr.mxu1 %v447_v2  ;;  %v445_v7 = vld [vmem:[%s7193_s3] sm:$0xff]  ;;  %429 = vst.msk [vmem:[#allocation2] sm:$0xf] %vm428_vm2, %v427_v6  ;;  %v540_v8 = vld [vmem:[%s7196_s18 + $0x18] sm:$0xff]  ;;  %v539_v10 = vld [vmem:[%s7196_s18 + $0x10] sm:$0xff]  ;;  %s7202_s20 = sld [smem:[#allocation59_spill]] }
 0x160   :  { %5078 = vmatpush3.msra.mxu1 %v447_v2  ;;  %435 = vst.msk [vmem:[#allocation2 + $0x8] sm:$0xf0] %vm434_vm3, %v427_v6  ;;  %v2546_v11 = vld [vmem:[%s7197_s12] sm:$0xff]  ;;  %v538_v13 = vld [vmem:[%s7196_s18 + $0x8] sm:$0xff]  ;;  %s7203_s8 = sld [smem:[#allocation62_spill]] }
 0x161   :  { %5079 = vmatprep.subr.mxu1 %v446_v5  ;;  %v421_v12 = vld [vmem:[%s7198_s22] sm:$0xff]  ;;  %v422_v18 = vld [vmem:[%s7198_s22 + $0x8] sm:$0xff]  ;;  %v423_v20 = vld [vmem:[%s7198_s22 + $0x10] sm:$0xff]  ;;  %s7204_s7 = sld [smem:[#allocation65_spill]] }
 0x162   :  { %5080 = vmatpush3.msra.mxu1 %v446_v5  ;;  %v537_v16 = vld [vmem:[%s7196_s18] sm:$0xff]  ;;  %v640_v23 = vld [vmem:[%s7199_s14 + $0x18] sm:$0xff]  ;;  %v639_v24 = vld [vmem:[%s7199_s14 + $0x10] sm:$0xff]  ;;  %s7207_s9 = sld [smem:[#allocation68_spill]] }
 0x163   :  { %5081 = vmatprep.subr.mxu1 %v445_v7  ;;  %5104 = vmatpush3.msra.mxu0 %v640_v23  ;;  %v638_v25 = vld [vmem:[%s7199_s14 + $0x8] sm:$0xff]  ;;  %v637_v26 = vld [vmem:[%s7199_s14] sm:$0xff]  ;;  %s7208_s29 = sld [smem:[#allocation69_spill]] }
 0x164   :  { %5082 = vmatpush3.msra.mxu1 %v445_v7  ;;  %5105 = vmatprep.subr.mxu0 %v6157_v0  ;;  %s7209_s10 = sld [smem:[#allocation73_spill]] }
 0x165   :  { %v432_v9 = vld [vmem:[#allocation2 + $0x8] sm:$0xf]  ;;  %5084 = vmatmul.mubr.msk.f32.vlgmr.msra.gmra.mxu1 %vm430_vm1, %v6411_v4  ;;  %5086 = vmatprep.subr.mxu1 %v6157_v0  ;;  %v441_v21 = vld [vmem:[#allocation2 + $0x10] sm:$0xff] }
 0x166   :  { %5087 = vmatpush3.msra.mxu1 %v540_v8  ;;  %5094 = vmatprep.mubr.msk.f32.mxu1 %vm6158_vm0, %v6157_v0  ;;  %433 = vst.msk [vmem:[%s6373_s5] sm:$0xf] %vm428_vm2, %v432_v9  ;;  %v439_v14 = vld [vmem:[#allocation2] sm:$0xff]  ;;  %v444_v22 = vadd.f32 %v441_v21, %v423_v20 }
 0x167   :  { %5088 = vmatprep.subr.mxu1 %v6157_v0  ;;  %v440_v15 = vld [vmem:[#allocation2 + $0x8] sm:$0xff]  ;;  %2547 = vst.msk [vmem:[#allocation2] sm:$0xf] %vm428_vm2, %v2546_v11  ;;  %v442_v17 = vadd.f32 %v439_v14, %v421_v12  ;;  %5106 = vmatpush3.msra.mxu0 %v639_v24 }
 0x168   :  { %5089 = vmatpush3.msra.mxu1 %v539_v10  ;;  %2551 = vst.msk [vmem:[#allocation2 + $0x8] sm:$0xf0] %vm434_vm3, %v2546_v11  ;;  %v443_v19 = vadd.f32 %v440_v15, %v422_v18  ;;  %5107 = vmatprep.subr.mxu0 %v6157_v0 }
 0x169   :  { %5090 = vmatprep.subr.mxu1 %v6157_v0  ;;  %5108 = vmatpush3.msra.mxu0 %v638_v25 }
 0x16a   :  { %5091 = vmatpush3.msra.mxu1 %v538_v13  ;;  %5109 = vmatprep.subr.mxu0 %v6157_v0 }
 0x16b   :  { %5092 = vmatprep.subr.mxu1 %v6157_v0  ;;  %5110 = vmatpush3.msra.mxu0 %v637_v26 }
 0x16c   :  { %5093 = vmatpush3.msra.mxu1 %v537_v16  ;;  %5112 = vmatmul.mubr.msk.f32.vlgmr.msra.gmra.mxu0 %vm430_vm1, %v439_v14 }
 0x16d   :  { %5095 = vmatmul.mubr.msk.f32.vlgmr.msra.gmra.mxu1 %vm430_vm1, %v442_v17  ;;  %5120 = vmatprep.subr.mxu1 %v6157_v0 }
 0x16e   :  { %5097 = vmatprep.mubr.msk.f32.mxu1 %vm6158_vm0, %v6157_v0  ;;  %5134 = vmatprep.subr.mxu0 %v6157_v0 }
 0x16f   :  { %5114 = vmatprep.mubr.msk.f32.mxu0 %vm6158_vm0, %v6157_v0 }
 0x170   :  { %5115 = vmatmul.mubr.msk.f32.gmra.mxu0 %vm430_vm1, %v440_v15 }
 0x171   :  { %5098 = vmatmul.mubr.msk.f32.gmra.mxu1 %vm430_vm1, %v443_v19  ;;  %5117 = vmatprep.mubr.msk.f32.mxu0 %vm6158_vm0, %v6157_v0 }
 0x172   :  { %5100 = vmatprep.mubr.msk.f32.mxu1 %vm6158_vm0, %v6157_v0 }
 0x174   :  { %5118 = vmatmul.mubr.msk.f32.gmra.mxu0 %vm430_vm1, %v441_v21 }
 0x175   :  { %5101 = vmatmul.mubr.msk.f32.gmra.mxu1 %vm430_vm1, %v444_v22  ;;  %5138 = vmatprep.mubr.msk.f32.mxu0 %vm6158_vm0, %v6157_v0 }
 0x176   :  { %5124 = vmatprep.mubr.msk.f32.mxu1 %vm6158_vm0, %v6157_v0 }
 0x225   :  { %v5085_v28 = vpop.f32.mrf.mxu1 }
 0x226   :  { %v6471_v29 = vadd.f32 %v5085_v28, %v4765_v27 }
 0x227   :  { %v528_v30 = vpop.f32.mrf.mxu1 }
 0x228   :  { %v6473_v31 = vadd.f32 %v4765_v27, %v528_v30 }
 0x22a   :  { %909 = vrot.lane.b32.xlu1 %v6473_v31, %s6159_s4 }
 0x22c   :  { %v723_v43 = vpop.f32.mrf.mxu0 }
 0x22d   :  { %v623_v32 = vpop.f32.mrf.mxu1  ;;  %v724_v44 = vadd.f32 %v4772_v42, %v723_v43 }
 0x22e   :  { %v6485_v39 = vadd.f32 %v4768_v34, %v623_v32  ;;  %v5113_v45 = vpop.f32.mrf.mxu0 }
 0x22f   :  { %v5096_v33 = vpop.f32.mrf.mxu1 }
 0x230   :  { %v728_v46 = vpop.f32.mrf.mxu0 }
 0x231   :  { %v628_v35 = vpop.f32.mrf.mxu1  ;;  %v6504_v47 = vadd.f32 %v4772_v42, %v728_v46 }
 0x232   :  { %v6477_v36 = vadd.f32 %v4768_v34, %v628_v35  ;;  %v5116_v48 = vpop.f32.mrf.mxu0 }
 0x233   :  { %v5099_v37 = vpop.f32.mrf.mxu1 }
 0x234   :  { %1095 = vrot.lane.b32.xlu1 %v6477_v36, %s6160_s21  ;;  %913 = vrot.lane.b32.xlu0 %v6477_v36, %s6159_s4  ;;  %v733_v49 = vpop.f32.mrf.mxu0  ;;  %v1543_v37 = vrot.slane %v6504_v47, 4 }
 0x235   :  { %5121 = vmatpush3.xpose.msk.msra.mxu1 %vm737_vm4, %v6477_v36  ;;  %v633_v38 = vpop.f32.mrf.mxu1  ;;  %v6512_v50 = vadd.f32 %v4772_v42, %v733_v49 }
 0x236   :  { %v6487_v40 = vadd.f32 %v4768_v34, %v633_v38  ;;  %5122 = vmatprep.subr.mxu1 %v6157_v0  ;;  %v5119_v51 = vpop.f32.mrf.mxu0 }
 0x237   :  { %v5102_v41 = vpop.f32.mrf.mxu1  ;;  %v6579_v35 = vrot.slane %v6512_v50, 4 }
 0x238   :  { %1091 = vrot.lane.b32.xlu1 %v6473_v31, %s6160_s21  ;;  %911 = vrot.lane.b32.xlu0 %v6485_v39, %s6159_s4  ;;  %v6604_v51 = vrot.slane %v6487_v40, 4  ;;  %v1454_v40 = vrot.slane %v6477_v36, 4 }
 0x239   :  { %5123 = vmatpush3.xpose.msk.msra.mxu1 %vm737_vm4, %v6485_v39  ;;  %v6591_v38 = vsel %vm829_vm5, %v1543_v37, %v6579_v35 }
 0x23a   :  { %5127 = vmatprep.subr.mxu1 %v6157_v0 }
 0x23c   :  { %5125 = vmatmul.mubr.msk.f32.vlgmr.msra.gmra.mxu1 %vm737_vm4, %v6473_v31  ;;  %1093 = vrot.lane.b32.xlu0 %v6485_v39, %s6160_s21 }
 0x23d   :  { %5131 = vmatprep.mubr.msk.f32.mxu1 %vm6158_vm0, %v6157_v0  ;;  %1000 = vrot.lane.b32.xlu1 %v724_v44, %s6159_s4 }
 0x23e   :  { %5128 = vmatpush3.msk.msra.mxu1 %vm829_vm5, %v6504_v47 }
 0x23f   :  { %5129 = vmatprep.subr.mxu1 %v6157_v0 }
 0x240   :  { %5130 = vmatpush3.msra.mxu1 %v724_v44 }
 0x241   :  { %1183 = vrot.lane.b32.xlu1 %v6504_v47, %s6160_s21  ;;  %5141 = vmatprep.subr.mxu1 %v6157_v0 }
 0x29c   :  { %v910_v53 = vpop.permute.xlu1 %909 }
 0x2a6   :  { %v914_v52 = vpop.permute.xlu0 %913  ;;  %v1096_v55 = vpop.permute.xlu1 %1095 }
 0x2a7   :  { %5135 = vmatpush3.xpose.msk.msra.mxu0 %vm737_vm4, %v914_v52 }
 0x2a8   :  { %5136 = vmatprep.subr.mxu0 %v6157_v0 }
 0x2aa   :  { %v912_v54 = vpop.permute.xlu0 %911  ;;  %v1092_v57 = vpop.permute.xlu1 %1091 }
 0x2ab   :  { %5137 = vmatpush3.xpose.msk.msra.mxu0 %vm737_vm4, %v912_v54 }
 0x2ac   :  { %5148 = vmatprep.subr.mxu0 %v6157_v0 }
 0x2ae   :  { %5139 = vmatmul.mubr.msk.f32.vlgmr.msra.gmra.mxu0 %vm737_vm4, %v910_v53  ;;  %v1094_v56 = vpop.permute.xlu0 %1093 }
 0x2af   :  { %5149 = vmatpush3.xpose.msk.msra.mxu0 %vm737_vm4, %v1096_v55  ;;  %5152 = vmatprep.mubr.msk.f32.mxu0 %vm6158_vm0, %v6157_v0  ;;  %v1001_v18 = vpop.permute.xlu1 %1000 }
 0x2b0   :  { %5150 = vmatprep.subr.mxu0 %v6157_v0 }
 0x2b3   :  { %5151 = vmatpush3.xpose.msk.msra.mxu0 %vm737_vm4, %v1094_v56  ;;  %v1184_v19 = vpop.permute.xlu1 %1183  ;;  %v6622_v56 = vsel %vm829_vm5, %v1454_v40, %v6604_v51 }
 0x2b4   :  { %5169 = vmatprep.subr.mxu0 %v6157_v0 }
 0x2b6   :  { %5153 = vmatmul.mubr.msk.f32.vlgmr.msra.gmra.mxu0 %vm737_vm4, %v1092_v57 }
 0x2b7   :  { %5173 = vmatprep.mubr.msk.f32.mxu0 %vm6158_vm0, %v6157_v0 }
 0x2fc   :  { %v813_v58 = vpop.f32.mrf.mxu1 }
 0x2fd   :  { %v817_v60 = vmul.f32 0.35355338, %v813_v58 }
 0x2fe   :  { %v5126_v61 = vpop.f32.mrf.mxu1 }
 0x2ff   :  { %v818_v62 = vadd.f32 %v817_v60, %v6528_v59 }
 0x301   :  { %v820_v63 = vsel %vm819_vm6, %v818_v62, -inf }
 0x302   :  { %821 = vmax.xlane.f32.xlu0 %v820_v63 }
 0x318   :  { %1002 = vrot.lane.b32.xlu0 %v6504_v47, %s6159_s4 }
 0x36e   :  { %v987_v1 = vpop.f32.mrf.mxu0 }
 0x36f   :  { %v991_v2 = vmul.f32 0.35355338, %v987_v1 }
 0x370   :  { %v5140_v5 = vpop.f32.mrf.mxu0 }
 0x371   :  { %v992_v6 = vadd.f32 %v991_v2, %v6528_v59 }
 0x373   :  { %v993_v7 = vsel %vm819_vm6, %v992_v6, -inf }
 0x374   :  { %994 = vmax.xlane.f32.xlu1 %v993_v7 }
 0x376   :  { %v1169_v8 = vpop.f32.mrf.mxu0 }
 0x377   :  { %v1173_v9 = vmul.f32 0.35355338, %v1169_v8 }
 0x378   :  { %v5154_v10 = vpop.f32.mrf.mxu0 }
 0x379   :  { %v1174_v11 = vadd.f32 %v1173_v9, %v6528_v59 }
 0x37b   :  { %v1175_v12 = vsel %vm819_vm6, %v1174_v11, -inf }
 0x37c   :  { %1176 = vmax.xlane.f32.xlu0 %v1175_v12 }
 0x385   :  { %1276 = vrot.lane.b32.xlu1 %v6477_v36, %s6161_s23 }
 0x389   :  { %1272 = vrot.lane.b32.xlu1 %v6473_v31, %s6161_s23 }
 0x38b   :  { %v822_v13 = vpop.xlane.xlu0 %821 }
 0x38c   :  { %v823_v14 = vsub.f32 %v818_v62, %v822_v13 }
 0x38d   :  { %1364 = vrot.lane.b32.xlu1 %v6504_v47, %s6161_s23 }
 0x38e   :  { %v824_v15 = vmul.f32 1.442695, %v823_v14 }
 0x38f   :  { %v1003_v16 = vpop.permute.xlu0 %1002 }
 0x390   :  { %5542 = vpow2.f32 %v824_v15 }
 0x391   :  { %1362 = vrot.lane.b32.xlu1 %v724_v44, %s6161_s23 }
 0x392   :  { %1181 = vrot.lane.b32.xlu0 %v724_v44, %s6160_s21 }
 0x396   :  { %1274 = vrot.lane.b32.xlu0 %v6485_v39, %s6161_s23 }
 0x39d   :  { %v6548_v17 = vpop.eup %5542 }
 0x39e   :  { %5132 = vmatmul.mubr.msk.f32.vlgmr.msra.gmra.mxu1 %vm819_vm6, %v6548_v17 }
 0x39f   :  { %5142 = vmatpush3.msk.msra.mxu1 %vm829_vm5, %v1003_v16  ;;  %5145 = vmatprep.mubr.msk.f32.mxu1 %vm6158_vm0, %v6157_v0 }
 0x3a0   :  { %5143 = vmatprep.subr.mxu1 %v6157_v0 }
 0x3a1   :  { %5144 = vmatpush3.msra.mxu1 %v1001_v18 }
 0x3a2   :  { %5155 = vmatprep.subr.mxu1 %v6157_v0 }
 0x3fd   :  { %v995_v20 = vpop.xlane.xlu1 %994 }
 0x3fe   :  { %v996_v21 = vsub.f32 %v992_v6, %v995_v20 }
 0x400   :  { %v997_v22 = vmul.f32 1.442695, %v996_v21 }
 0x401   :  { %v1277_v23 = vpop.permute.xlu1 %1276 }
 0x402   :  { %5544 = vpow2.f32 %v997_v22 }
 0x405   :  { %v1273_v24 = vpop.permute.xlu1 %1272  ;;  %v1177_v25 = vpop.xlane.xlu0 %1176 }
 0x406   :  { %v1178_v26 = vsub.f32 %v1174_v11, %v1177_v25 }
 0x408   :  { %v1179_v27 = vmul.f32 1.442695, %v1178_v26 }
 0x409   :  { %v1365_v28 = vpop.permute.xlu1 %1364  ;;  %v1182_v32 = vpop.permute.xlu0 %1181 }
 0x40a   :  { %5546 = vpow2.f32 %v1179_v27  ;;  %5170 = vmatpush3.msk.msra.mxu0 %vm829_vm5, %v1365_v28 }
 0x40b   :  { %5171 = vmatprep.subr.mxu0 %v6157_v0 }
 0x40d   :  { %v1363_v30 = vpop.permute.xlu1 %1362  ;;  %v1275_v34 = vpop.permute.xlu0 %1274 }
 0x40e   :  { %5172 = vmatpush3.msra.mxu0 %v1363_v30 }
 0x40f   :  { %v6559_v31 = vpop.eup %5544  ;;  %5176 = vmatprep.subr.mxu0 %v6157_v0 }
 0x410   :  { %5146 = vmatmul.mubr.msk.f32.vlgmr.msra.gmra.mxu1 %vm819_vm6, %v6559_v31 }
 0x411   :  { %5156 = vmatpush3.msk.msra.mxu1 %vm829_vm5, %v1184_v19  ;;  %5159 = vmatprep.mubr.msk.f32.mxu1 %vm6158_vm0, %v6157_v0 }
 0x412   :  { %5157 = vmatprep.subr.mxu1 %v6157_v0 }
 0x413   :  { %5158 = vmatpush3.msra.mxu1 %v1182_v32 }
 0x414   :  { %5162 = vmatprep.subr.mxu1 %v6157_v0 }
 0x417   :  { %v6569_v33 = vpop.eup %5546 }
 0x418   :  { %5160 = vmatmul.mubr.msk.f32.vlgmr.msra.gmra.mxu1 %vm819_vm6, %v6569_v33 }
 0x419   :  { %5163 = vmatpush3.xpose.msk.msra.mxu1 %vm737_vm4, %v1277_v23  ;;  %5166 = vmatprep.mubr.msk.f32.mxu1 %vm6158_vm0, %v6157_v0 }
 0x41a   :  { %5164 = vmatprep.subr.mxu1 %v6157_v0 }
 0x41d   :  { %5165 = vmatpush3.xpose.msk.msra.mxu1 %vm737_vm4, %v1275_v34 }
 0x41e   :  { %5183 = vmatprep.subr.mxu1 %v6157_v0 }
 0x420   :  { %5167 = vmatmul.mubr.msk.f32.vlgmr.msra.gmra.mxu1 %vm737_vm4, %v1273_v24 }
 0x421   :  { %5184 = vmatpush3.msk.msra.mxu1 %vm829_vm5, %v6579_v35  ;;  %5187 = vmatprep.mubr.msk.f32.mxu1 %vm6158_vm0, %v6157_v0 }
 0x422   :  { %5185 = vmatprep.subr.mxu1 %v6157_v0 }
 0x423   :  { %5186 = vmatpush3.msra.mxu1 %v6591_v38 }
 0x424   :  { %5190 = vmatprep.subr.mxu1 %v6157_v0 }
 0x45e   :  { %v6595_v39 = vpop.f32.mrf.mxu1 }
 0x460   :  { %v5133_v41 = vpop.f32.mrf.mxu1 }
 0x4d0   :  { %v6597_v42 = vpop.f32.mrf.mxu1 }
 0x4d2   :  { %v5147_v43 = vpop.f32.mrf.mxu1 }
 0x4d8   :  { %v6599_v44 = vpop.f32.mrf.mxu1 }
 0x4da   :  { %v5161_v45 = vpop.f32.mrf.mxu1 }
 0x4db   :  { %v1080_v45 = vsel %vm819_vm6, %v6559_v31, 0.0 }
 0x4e0   :  { %v1350_v46 = vpop.f32.mrf.mxu1 }
 0x4e1   :  { %v1354_v47 = vmul.f32 0.35355338, %v1350_v46 }
 0x4e2   :  { %v5168_v48 = vpop.f32.mrf.mxu1 }
 0x4e3   :  { %v1355_v49 = vadd.f32 %v1354_v47, %v6528_v59 }
 0x4e5   :  { %v1356_v50 = vsel %vm819_vm6, %v1355_v49, -inf }
 0x4e6   :  { %1357 = vmax.xlane.f32.xlu0 %v1356_v50 }
 0x4fc   :  { %1632 = vrot.lane.b32.xlu0 %v6604_v51, %s6159_s4 }
 0x500   :  { %1628 = vrot.lane.b32.xlu0 %v6471_v29, %s6159_s4 }
 0x56f   :  { %v1358_v52 = vpop.xlane.xlu0 %1357 }
 0x570   :  { %v1359_v53 = vsub.f32 %v1355_v49, %v1358_v52 }
 0x572   :  { %v1360_v54 = vmul.f32 1.442695, %v1359_v53 }
 0x573   :  { %v1633_v10 = vpop.permute.xlu0 %1632 }
 0x574   :  { %5548 = vpow2.f32 %v1360_v54 }
 0x577   :  { %v1629_v11 = vpop.permute.xlu0 %1628 }
 0x581   :  { %v6610_v55 = vpop.eup %5548 }
 0x582   :  { %5174 = vmatmul.mubr.msk.f32.vlgmr.msra.gmra.mxu0 %vm819_vm6, %v6610_v55 }
 0x583   :  { %5177 = vmatpush3.xpose.msk.msra.mxu0 %vm737_vm4, %v6604_v51  ;;  %5180 = vmatprep.mubr.msk.f32.mxu0 %vm6158_vm0, %v6157_v0 }
 0x584   :  { %5178 = vmatprep.subr.mxu0 %v6157_v0 }
 0x587   :  { %5179 = vmatpush3.xpose.msk.msra.mxu0 %vm737_vm4, %v6622_v56 }
 0x588   :  { %5197 = vmatprep.subr.mxu0 %v6157_v0 }
 0x58a   :  { %5181 = vmatmul.mubr.msk.f32.vlgmr.msra.gmra.mxu0 %vm737_vm4, %v6471_v29 }
 0x58b   :  { %5201 = vmatprep.mubr.msk.f32.mxu0 %vm6158_vm0, %v6157_v0 }
 0x642   :  { %v6631_v57 = vpop.f32.mrf.mxu0 }
 0x644   :  { %v5175_v58 = vpop.f32.mrf.mxu0 }
 0x64a   :  { %v1530_v60 = vpop.f32.mrf.mxu0 }
 0x64b   :  { %v1534_v36 = vmul.f32 0.35355338, %v1530_v60 }
 0x64c   :  { %v5182_v61 = vpop.f32.mrf.mxu0 }
 0x64d   :  { %v1535_v62 = vadd.f32 %v1534_v36, %v6528_v59 }
 0x64f   :  { %v1536_v63 = vsel %vm819_vm6, %v1535_v62, -inf }
 0x650   :  { %1537 = vmax.xlane.f32.xlu1 %v1536_v63  ;;  %v1261_v63 = vsel %vm819_vm6, %v6569_v33, 0.0 }
 0x661   :  { %1630 = vrot.lane.b32.xlu1 %v6622_v56, %s6159_s4 }
 0x665   :  { %1720 = vrot.lane.b32.xlu1 %v6579_v35, %s6159_s4 }
 0x669   :  { %1718 = vrot.lane.b32.xlu1 %v6591_v38, %s6159_s4 }
 0x66d   :  { %1812 = vrot.lane.b32.xlu1 %v6604_v51, %s6160_s21 }
 0x671   :  { %1810 = vrot.lane.b32.xlu1 %v6622_v56, %s6160_s21 }
 0x675   :  { %1808 = vrot.lane.b32.xlu1 %v6471_v29, %s6160_s21 }
 0x6d9   :  { %v1538_v1 = vpop.xlane.xlu1 %1537 }
 0x6da   :  { %v1539_v2 = vsub.f32 %v1535_v62, %v1538_v1 }
 0x6dc   :  { %v1540_v5 = vmul.f32 1.442695, %v1539_v2 }
 0x6dd   :  { %v1631_v6 = vpop.permute.xlu1 %1630 }
 0x6de   :  { %5550 = vpow2.f32 %v1540_v5 }
 0x6e1   :  { %v1721_v7 = vpop.permute.xlu1 %1720 }
 0x6e2   :  { %5198 = vmatpush3.msk.msra.mxu0 %vm829_vm5, %v1721_v7 }
 0x6e3   :  { %5199 = vmatprep.subr.mxu0 %v6157_v0 }
 0x6e5   :  { %v1719_v8 = vpop.permute.xlu1 %1718 }
 0x6e6   :  { %5200 = vmatpush3.msra.mxu0 %v1719_v8 }
 0x6e7   :  { %5204 = vmatprep.subr.mxu0 %v6157_v0 }
 0x6e9   :  { %v1813_v25 = vpop.permute.xlu1 %1812 }
 0x6eb   :  { %v6650_v9 = vpop.eup %5550 }
 0x6ec   :  { %5188 = vmatmul.mubr.msk.f32.vlgmr.msra.gmra.mxu1 %vm819_vm6, %v6650_v9 }
 0x6ed   :  { %5191 = vmatpush3.xpose.msk.msra.mxu1 %vm737_vm4, %v1633_v10  ;;  %5194 = vmatprep.mubr.msk.f32.mxu1 %vm6158_vm0, %v6157_v0  ;;  %v1811_v27 = vpop.permute.xlu1 %1810 }
 0x6ee   :  { %5192 = vmatprep.subr.mxu1 %v6157_v0 }
 0x6f1   :  { %5193 = vmatpush3.xpose.msk.msra.mxu1 %vm737_vm4, %v1631_v6 }
 0x6f2   :  { %5211 = vmatprep.subr.mxu1 %v6157_v0 }
 0x6f4   :  { %5195 = vmatmul.mubr.msk.f32.vlgmr.msra.gmra.mxu1 %vm737_vm4, %v1629_v11 }
 0x6f5   :  { %5215 = vmatprep.mubr.msk.f32.mxu1 %vm6158_vm0, %v6157_v0 }
 0x7ac   :  { %v6663_v12 = vpop.f32.mrf.mxu1 }
 0x7ae   :  { %v5189_v13 = vpop.f32.mrf.mxu1 }
 0x7af   :  { %v903_v13 = vsel %vm819_vm6, %v6548_v17, 0.0 }
 0x7b4   :  { %v1706_v14 = vpop.f32.mrf.mxu1 }
 0x7b5   :  { %v1710_v15 = vmul.f32 0.35355338, %v1706_v14 }
 0x7b6   :  { %v5196_v16 = vpop.f32.mrf.mxu1 }
 0x7b7   :  { %v1711_v18 = vadd.f32 %v1710_v15, %v6528_v59  ;;  %v1622_v16 = vsel %vm819_vm6, %v6650_v9, 0.0 }
 0x7b9   :  { %v1712_v19 = vsel %vm819_vm6, %v1711_v18, -inf }
 0x7ba   :  { %1713 = vmax.xlane.f32.xlu0 %v1712_v19 }
 0x7d0   :  { %1900 = vrot.lane.b32.xlu0 %v6579_v35, %s6160_s21 }
 0x7d4   :  { %1898 = vrot.lane.b32.xlu0 %v6591_v38, %s6160_s21 }
 0x7d8   :  { %1992 = vrot.lane.b32.xlu0 %v6604_v51, %s6161_s23 }
 0x7dc   :  { %1988 = vrot.lane.b32.xlu0 %v6471_v29, %s6161_s23  ;;  %v1809_v29 = vpop.permute.xlu1 %1808 }
 0x843   :  { %v1714_v20 = vpop.xlane.xlu0 %1713 }
 0x844   :  { %v1715_v21 = vsub.f32 %v1711_v18, %v1714_v20 }
 0x846   :  { %v1716_v22 = vmul.f32 1.442695, %v1715_v21 }
 0x847   :  { %v1901_v23 = vpop.permute.xlu0 %1900 }
 0x848   :  { %5552 = vpow2.f32 %v1716_v22  ;;  %5212 = vmatpush3.msk.msra.mxu1 %vm829_vm5, %v1901_v23 }
 0x849   :  { %5213 = vmatprep.subr.mxu1 %v6157_v0 }
 0x84b   :  { %v1899_v24 = vpop.permute.xlu0 %1898 }
 0x84c   :  { %5214 = vmatpush3.msra.mxu1 %v1899_v24 }
 0x84d   :  { %5218 = vmatprep.subr.mxu1 %v6157_v0 }
 0x84f   :  { %v1993_v52 = vpop.permute.xlu0 %1992 }
 0x853   :  { %v1989_v31 = vpop.permute.xlu0 %1988 }
 0x855   :  { %v5553_v26 = vpop.eup %5552 }
 0x856   :  { %5202 = vmatmul.mubr.msk.f32.vlgmr.msra.gmra.mxu0 %vm819_vm6, %v5553_v26  ;;  %v1798_v1 = vsel %vm819_vm6, %v5553_v26, 0.0 }
 0x857   :  { %5205 = vmatpush3.xpose.msk.msra.mxu0 %vm737_vm4, %v1813_v25  ;;  %5208 = vmatprep.mubr.msk.f32.mxu0 %vm6158_vm0, %v6157_v0 }
 0x858   :  { %5206 = vmatprep.subr.mxu0 %v6157_v0 }
 0x85b   :  { %5207 = vmatpush3.xpose.msk.msra.mxu0 %vm737_vm4, %v1811_v27 }
 0x85c   :  { %5225 = vmatprep.subr.mxu0 %v6157_v0 }
 0x85e   :  { %5209 = vmatmul.mubr.msk.f32.vlgmr.msra.gmra.mxu0 %vm737_vm4, %v1809_v29 }
 0x85f   :  { %5229 = vmatprep.mubr.msk.f32.mxu0 %vm6158_vm0, %v6157_v0 }
 0x916   :  { %v6688_v28 = vpop.f32.mrf.mxu0 }
 0x918   :  { %v5203_v30 = vpop.f32.mrf.mxu0 }
 0x91e   :  { %v1886_v32 = vpop.f32.mrf.mxu0 }
 0x91f   :  { %v1890_v34 = vmul.f32 0.35355338, %v1886_v32 }
 0x920   :  { %v5210_v37 = vpop.f32.mrf.mxu0 }
 0x921   :  { %v1891_v41 = vadd.f32 %v1890_v34, %v6528_v59  ;;  %v2173_v34 = vld [vmem:[%s7200_s2 + $0x18] sm:$0xff]  ;;  %v2172_v37 = vld [vmem:[%s7200_s2 + $0x10] sm:$0xff] }
 0x923   :  { %v1892_v43 = vsel %vm819_vm6, %v1891_v41, -inf }
 0x924   :  { %1893 = vmax.xlane.f32.xlu1 %v1892_v43 }
 0x935   :  { %1990 = vrot.lane.b32.xlu1 %v6622_v56, %s6161_s23 }
 0x939   :  { %2080 = vrot.lane.b32.xlu1 %v6579_v35, %s6161_s23 }
 0x93d   :  { %2078 = vrot.lane.b32.xlu1 %v6591_v38, %s6161_s23 }
 0x961   :  { %1081 = vadd.xlane.f32.xlu1 %v1080_v45 }
 0x9ad   :  { %v1894_v46 = vpop.xlane.xlu1 %1893 }
 0x9ae   :  { %v1895_v47 = vsub.f32 %v1891_v41, %v1894_v46  ;;  %v2170_v41 = vld [vmem:[%s7200_s2] sm:$0xff] }
 0x9b0   :  { %v1896_v48 = vmul.f32 1.442695, %v1895_v47 }
 0x9b1   :  { %v1991_v49 = vpop.permute.xlu1 %1990 }
 0x9b2   :  { %5554 = vpow2.f32 %v1896_v48 }
 0x9b5   :  { %v2081_v50 = vpop.permute.xlu1 %2080 }
 0x9b6   :  { %5226 = vmatpush3.msk.msra.mxu0 %vm829_vm5, %v2081_v50  ;;  %v4816_v50 = vld [vmem:[#allocation11] ss:$0 sm:$0xff] }
 0x9b7   :  { %5227 = vmatprep.subr.mxu0 %v6157_v0 }
 0x9b9   :  { %v2079_v51 = vpop.permute.xlu1 %2078 }
 0x9ba   :  { %5228 = vmatpush3.msra.mxu0 %v2079_v51 }
 0x9bb   :  { %5232 = vmatprep.subr.mxu0 %v2173_v34 }
 0x9bf   :  { %v5555_v35 = vpop.eup %5554 }
 0x9c0   :  { %5216 = vmatmul.mubr.msk.f32.vlgmr.msra.gmra.mxu1 %vm819_vm6, %v5555_v35  ;;  %v1978_v2 = vsel %vm819_vm6, %v5555_v35, 0.0 }
 0x9c1   :  { %5219 = vmatpush3.xpose.msk.msra.mxu1 %vm737_vm4, %v1993_v52  ;;  %5222 = vmatprep.mubr.msk.f32.mxu1 %vm6158_vm0, %v6157_v0 }
 0x9c2   :  { %5220 = vmatprep.subr.mxu1 %v6157_v0 }
 0x9c5   :  { %5221 = vmatpush3.xpose.msk.msra.mxu1 %vm737_vm4, %v1991_v49 }
 0x9c8   :  { %5223 = vmatmul.mubr.msk.f32.vlgmr.msra.gmra.mxu1 %vm737_vm4, %v1989_v31 }
 0x9ea   :  { %v1082_v38 = vpop.xlane.xlu1 %1081 }
 0x9eb   :  { %5556 = vrcp.f32 %v1082_v38 }
 0x9f8   :  { %v5557_v53 = vpop.eup %5556 }
 0x9f9   :  { %v1084_v54 = vmul.f32 %v5557_v53, %v6597_v42  ;;  %v1442_v42 = vsel %vm819_vm6, %v6610_v55, 0.0 }
 0x9fb   :  { %1086 = vrot.lane.b32.xlu1 %v1084_v54, %s6162_s26 }
 0xa6d   :  { %v1087_v24 = vpop.permute.xlu1 %1086 }
 0xa80   :  { %v1974_v40 = vpop.f32.mrf.mxu1 }
 0xa82   :  { %v5217_v56 = vpop.f32.mrf.mxu1 }
 0xa88   :  { %v2066_v58 = vpop.f32.mrf.mxu1 }
 0xa89   :  { %v2070_v60 = vmul.f32 0.35355338, %v2066_v58 }
 0xa8a   :  { %v5224_v36 = vpop.f32.mrf.mxu1 }
 0xa8b   :  { %v2071_v61 = vadd.f32 %v2070_v60, %v6528_v59 }
 0xa8d   :  { %v2072_v62 = vsel %vm819_vm6, %v2071_v61, -inf }
 0xa8e   :  { %2073 = vmax.xlane.f32.xlu0 %v2072_v62 }
 0xa92   :  { %1262 = vadd.xlane.f32.xlu0 %v1261_v63 }
 0xa96   :  { %1799 = vadd.xlane.f32.xlu0 %v1798_v1 }
 0xa9a   :  { %1443 = vadd.xlane.f32.xlu0 %v1442_v42  ;;  %v2312_v42 = vld [vmem:[%s7201_s13 + $0x18] sm:$0xff] }
 0xa9b   :  { %5243 = vmatprep.subr.mxu1 %v2312_v42 }
 0xa9c   :  { %5244 = vmatpush3.msra.mxu1 %v2312_v42 }
 0xa9e   :  { %1979 = vadd.xlane.f32.xlu0 %v1978_v2  ;;  %v2311_v2 = vld [vmem:[%s7201_s13 + $0x10] sm:$0xff] }
 0xa9f   :  { %5245 = vmatprep.subr.mxu1 %v2311_v2 }
 0xaa0   :  { %5246 = vmatpush3.msra.mxu1 %v2311_v2 }
 0xb17   :  { %v2074_v5 = vpop.xlane.xlu0 %2073 }
 0xb18   :  { %v2075_v6 = vsub.f32 %v2071_v61, %v2074_v5  ;;  %v2310_v5 = vld [vmem:[%s7201_s13 + $0x8] sm:$0xff] }
 0xb19   :  { %5247 = vmatprep.subr.mxu1 %v2310_v5 }
 0xb1a   :  { %v2076_v59 = vmul.f32 1.442695, %v2075_v6  ;;  %5248 = vmatpush3.msra.mxu1 %v2310_v5  ;;  %v2309_v6 = vld [vmem:[%s7201_s13] sm:$0xff] }
 0xb1b   :  { %v1263_v7 = vpop.xlane.xlu0 %1262  ;;  %5249 = vmatprep.subr.mxu1 %v2309_v6 }
 0xb1c   :  { %5558 = vpow2.f32 %v2076_v59  ;;  %5250 = vmatpush3.msra.mxu1 %v2309_v6  ;;  %v2410_v59 = vld [vmem:[%s7202_s20 + $0x38] sm:$0xff] }
 0xb1f   :  { %v1800_v8 = vpop.xlane.xlu0 %1799 }
 0xb20   :  { %5560 = vrcp.f32 %v1800_v8  ;;  %v2408_v8 = vld [vmem:[%s7202_s20 + $0x28] sm:$0xff] }
 0xb23   :  { %v1444_v10 = vpop.xlane.xlu0 %1443 }
 0xb24   :  { %5562 = vrcp.f32 %v1444_v10  ;;  %v2407_v10 = vld [vmem:[%s7202_s20 + $0x20] sm:$0xff] }
 0xb25   :  { %5564 = vrcp.f32 %v1263_v7  ;;  %v2409_v7 = vld [vmem:[%s7202_s20 + $0x30] sm:$0xff] }
 0xb27   :  { %v1980_v19 = vpop.xlane.xlu0 %1979 }
 0xb28   :  { %5566 = vrcp.f32 %v1980_v19 }
 0xb29   :  { %v5559_v33 = vpop.eup %5558 }
 0xb2a   :  { %5230 = vmatmul.mubr.msk.f32.vlgmr.msra.gmra.mxu0 %vm819_vm6, %v5559_v33  ;;  %v2158_v11 = vsel %vm819_vm6, %v5559_v33, 0.0 }
 0xb2b   :  { %2159 = vadd.xlane.f32.xlu0 %v2158_v11  ;;  %5233 = vmatpush3.msra.mxu0 %v2173_v34 }
 0xb2c   :  { %5234 = vmatprep.subr.mxu0 %v2172_v37 }
 0xb2d   :  { %v5561_v55 = vpop.eup %5560  ;;  %5235 = vmatpush3.msra.mxu0 %v2172_v37  ;;  %v4824_v37 = vld [vmem:[#allocation14] ss:$0 sm:$0xff] }
 0xb2e   :  { %v1802_v14 = vmul.f32 %v5561_v55, %v6688_v28 }
 0xb2f   :  { %904 = vadd.xlane.f32.xlu0 %v903_v13 }
 0xb30   :  { %1804 = vrot.lane.b32.xlu1 %v1802_v14, %s6162_s26 }
 0xb31   :  { %v5563_v15 = vpop.eup %5562 }
 0xb32   :  { %v1446_v18 = vmul.f32 %v5563_v15, %v6631_v57  ;;  %v5565_v20 = vpop.eup %5564 }
 0xb33   :  { %1623 = vadd.xlane.f32.xlu0 %v1622_v16  ;;  %v1265_v17 = vmul.f32 %v5565_v20, %v6599_v44  ;;  %v4820_v20 = vld [vmem:[#allocation17] ss:$0 sm:$0xff] }
 0xb34   :  { %1448 = vrot.lane.b32.xlu1 %v1446_v18, %s6163_s28  ;;  %v4819_v18 = vld [vmem:[#allocation15] ss:$0 sm:$0xff] }
 0xb35   :  { %v5567_v21 = vpop.eup %5566 }
 0xb36   :  { %v1982_v22 = vmul.f32 %v5567_v21, %v1974_v40 }
 0xb49   :  { %1267 = vrot.lane.b32.xlu0 %v1265_v17, %s6164_s1 }
 0xb4d   :  { %1984 = vrot.lane.b32.xlu0 %v1982_v22, %s6164_s1 }
 0xba2   :  { %v1805_v25 = vpop.permute.xlu1 %1804 }
 0xba6   :  { %v1449_v28 = vpop.permute.xlu1 %1448 }
 0xbb4   :  { %v2160_v9 = vpop.xlane.xlu0 %2159 }
 0xbb8   :  { %v905_v23 = vpop.xlane.xlu0 %904 }
 0xbb9   :  { %5568 = vrcp.f32 %v905_v23 }
 0xbbc   :  { %v1624_v57 = vpop.xlane.xlu0 %1623 }
 0xbbd   :  { %5570 = vrcp.f32 %v1624_v57 }
 0xbbe   :  { %5572 = vrcp.f32 %v2160_v9 }
 0xbc0   :  { %v1268_v44 = vpop.permute.xlu0 %1267 }
 0xbc6   :  { %v5569_v26 = vpop.eup %5568 }
 0xbc7   :  { %v907_v27 = vmul.f32 %v5569_v26, %v6595_v39  ;;  %v1985_v39 = vpop.permute.xlu0 %1984  ;;  %v2404_v26 = vld [vmem:[%s7202_s20 + $0x8] sm:$0xff] }
 0xbc9   :  { %908 = vst.msk [vmem:[#allocation3] sm:$0xff] %vm737_vm4, %v907_v27  ;;  %v2403_v27 = vld [vmem:[%s7202_s20] sm:$0xff] }
 0xbca   :  { %v5571_v29 = vpop.eup %5570  ;;  %1090 = vst.msk [vmem:[#allocation3] sm:$0xff] %vm1089_vm7, %v1087_v24  ;;  %v2406_v24 = vld [vmem:[%s7202_s20 + $0x18] sm:$0xff] }
 0xbcb   :  { %v1626_v30 = vmul.f32 %v5571_v29, %v6663_v12  ;;  %1271 = vst.msk [vmem:[#allocation3] sm:$0xff] %vm1270_vm8, %v1268_v44  ;;  %v2171_v12 = vld [vmem:[%s7200_s2 + $0x8] sm:$0xff]  ;;  %v5573_v43 = vpop.eup %5572  ;;  %v4821_v44 = vld [vmem:[#allocation12] ss:$0 sm:$0xff] }
 0xbcc   :  { %1452 = vst.msk [vmem:[#allocation3] sm:$0xff] %vm1451_vm9, %v1449_v28  ;;  %5236 = vmatprep.subr.mxu0 %v2171_v12 }
 0xbcd   :  { %1627 = vst.msk [vmem:[#allocation3 + $0x8] sm:$0xff] %vm737_vm4, %v1626_v30  ;;  %5237 = vmatpush3.msra.mxu0 %v2171_v12 }
 0xbce   :  { %1807 = vst.msk [vmem:[#allocation3 + $0x8] sm:$0xff] %vm1089_vm7, %v1805_v25  ;;  %5238 = vmatprep.subr.mxu0 %v2170_v41  ;;  %v2405_v25 = vld [vmem:[%s7202_s20 + $0x10] sm:$0xff] }
 0xbcf   :  { %1987 = vst.msk [vmem:[#allocation3 + $0x8] sm:$0xff] %vm1270_vm8, %v1985_v39  ;;  %5239 = vmatpush3.msra.mxu0 %v2170_v41 }
 0xbd0   :  { %5254 = vmatprep.subr.mxu0 %v2410_v59 }
 0xbd3   :  { %v2168_v32 = vld [vmem:[#allocation3] sm:$0xff] }
 0xbd4   :  { %5240 = vmatprep.mubr.msk.f32.mxu0 %vm430_vm1, %v2168_v32 }
 0xbea   :  { %v2154_v45 = vpop.f32.mrf.mxu0 }
 0xbeb   :  { %v2162_v46 = vmul.f32 %v5573_v43, %v2154_v45 }
 0xbec   :  { %v5231_v47 = vpop.f32.mrf.mxu0 }
 0xbed   :  { %2164 = vrot.lane.b32.xlu1 %v2162_v46, %s6163_s28 }
 0xc5f   :  { %v2165_v48 = vpop.permute.xlu1 %2164 }
 0xc60   :  { %2167 = vst.msk [vmem:[#allocation3 + $0x8] sm:$0xff] %vm1451_vm9, %v2165_v48 }
 0xc67   :  { %v2169_v49 = vld [vmem:[#allocation3 + $0x8] sm:$0xff] }
 0xc68   :  { %5241 = vmatmul.mubr.msk.f32.vlgmr.msra.gmra.mxu0 %vm430_vm1, %v2169_v49 }
 0xc69   :  { %5255 = vmatpush3.msra.mxu0 %v2410_v59 }
 0xc6a   :  { %5256 = vmatprep.subr.mxu0 %v2409_v7 }
 0xc6b   :  { %5257 = vmatpush3.msra.mxu0 %v2409_v7 }
 0xc6c   :  { %5258 = vmatprep.subr.mxu0 %v2408_v8 }
 0xc6d   :  { %5259 = vmatpush3.msra.mxu0 %v2408_v8 }
 0xc6e   :  { %5260 = vmatprep.subr.mxu0 %v2407_v10 }
 0xc6f   :  { %5261 = vmatpush3.msra.mxu0 %v2407_v10  ;;  %v4827_v10 = vld [vmem:[#allocation18] ss:$0 sm:$0xff] }
 0xc70   :  { %5262 = vmatprep.subr.mxu0 %v2406_v24 }
 0xc71   :  { %5263 = vmatpush3.msra.mxu0 %v2406_v24 }
 0xc72   :  { %5264 = vmatprep.subr.mxu0 %v2405_v25 }
 0xc73   :  { %5265 = vmatpush3.msra.mxu0 %v2405_v25 }
 0xc74   :  { %5266 = vmatprep.subr.mxu0 %v2404_v26 }
 0xc75   :  { %5267 = vmatpush3.msra.mxu0 %v2404_v26  ;;  %v5627_v26 = vld [vmem:[%s7198_s22 + $0x8] sm:$0xff] }
 0xc76   :  { %5268 = vmatprep.subr.mxu0 %v2403_v27 }
 0xc77   :  { %5269 = vmatpush3.msra.mxu0 %v2403_v27 }
 0xc78   :  { %5301 = vmatprep.subr.mxu0 %v6157_v0 }
 0xd28   :  { %v5242_v51 = vpop.f32.mrf.mxu0 }
 0xd29   :  { %v2259_v35 = vadd.f32 %v5242_v51, %v4816_v50 }
 0xd2a   :  { %v2253_v52 = vpop.f32.mrf.mxu0 }
 0xd2b   :  { %v2254_v31 = vadd.f32 %v4816_v50, %v2253_v52  ;;  %v2263_v38 = vadd.f32 %v2259_v35, %v6411_v4 }
 0xd2d   :  { %v2269_v53 = vsel %vm430_vm1, %v2263_v38, 0.0  ;;  %v2262_v54 = vadd.f32 %v2254_v31, %v6408_v3 }
 0xd2e   :  { %2270 = vadd.xlane.f32.xlu1 %v2269_v53 }
 0xd2f   :  { %v2266_v40 = vsel %vm430_vm1, %v2262_v54, 0.0 }
 0xd30   :  { %2267 = vadd.xlane.f32.xlu0 %v2266_v40 }
 0xdb7   :  { %v2271_v56 = vpop.xlane.xlu1 %2270 }
 0xdb8   :  { %v2274_v58 = vmul.f32 0.03125, %v2271_v56 }
 0xdb9   :  { %v2268_v60 = vpop.xlane.xlu0 %2267 }
 0xdba   :  { %v2273_v36 = vmul.f32 0.03125, %v2268_v60  ;;  %v2276_v61 = vsub.f32 %v2263_v38, %v2274_v58  ;;  %v2564_v58 = vld [vmem:[%s7203_s8 + $0x18] sm:$0xff]  ;;  %v2563_v60 = vld [vmem:[%s7203_s8 + $0x10] sm:$0xff] }
 0xdbb   :  { %5273 = vmatprep.subr.mxu1 %v2564_v58 }
 0xdbc   :  { %v2275_v62 = vsub.f32 %v2262_v54, %v2273_v36  ;;  %v2278_v1 = vmul.f32 %v2276_v61, %v2276_v61  ;;  %v437_v36 = vld [vmem:[#allocation2 + $0x14] sm:$0xf] }
 0xdbd   :  { %438 = vst.msk [vmem:[%s6373_s5 + $0x4] sm:$0xf] %vm428_vm2, %v437_v36  ;;  %s7205_s5 = sld [smem:[#allocation63_spill]] }
 0xdbe   :  { %v2277_v63 = vmul.f32 %v2275_v62, %v2275_v62  ;;  %v2282_v3 = vsel %vm430_vm1, %v2278_v1, 0.0  ;;  %v2754_v1 = vld [vmem:[%s7204_s7 + $0x8] sm:$0xff] }
 0xdc0   :  { %v2279_v4 = vsel %vm430_vm1, %v2277_v63, 0.0  ;;  %v2756_v63 = vld [vmem:[%s7204_s7 + $0x18] sm:$0xff] }
 0xdc1   :  { %2280 = vadd.xlane.f32.xlu0 %v2279_v4  ;;  %v2755_v4 = vld [vmem:[%s7204_s7 + $0x10] sm:$0xff] }
 0xdc5   :  { %2283 = vadd.xlane.f32.xlu0 %v2282_v3  ;;  %v2753_v3 = vld [vmem:[%s7204_s7] sm:$0xff] }
 0xe4a   :  { %v2281_v33 = vpop.xlane.xlu0 %2280 }
 0xe4b   :  { %v2285_v11 = vmul.f32 0.03125, %v2281_v33 }
 0xe4d   :  { %v2287_v55 = vadd.f32 1e-05, %v2285_v11 }
 0xe4e   :  { %v2284_v13 = vpop.xlane.xlu0 %2283 }
 0xe4f   :  { %5574 = vrsqrt.f32 %v2287_v55  ;;  %v2286_v14 = vmul.f32 0.03125, %v2284_v13  ;;  %v4828_v55 = vld [vmem:[#allocation20] ss:$0 sm:$0xff] }
 0xe51   :  { %v2288_v15 = vadd.f32 1e-05, %v2286_v14 }
 0xe53   :  { %5576 = vrsqrt.f32 %v2288_v15 }
 0xe5c   :  { %v5575_v16 = vpop.eup %5574 }
 0xe5d   :  { %v2291_v19 = vmul.f32 %v5575_v16, %v2275_v62  ;;  %v2561_v62 = vld [vmem:[%s7203_s8] sm:$0xff] }
 0xe5f   :  { %v2299_v17 = vmul.f32 %v4819_v18, %v2291_v19  ;;  %v2656_v19 = vld [vmem:[%s7205_s5 + $0x18] sm:$0xff] }
 0xe60   :  { %v5577_v21 = vpop.eup %5576 }
 0xe61   :  { %v2292_v22 = vmul.f32 %v5577_v21, %v2276_v61  ;;  %v2307_v9 = vadd.f32 %v4820_v20, %v2299_v17  ;;  %v2562_v61 = vld [vmem:[%s7203_s8 + $0x8] sm:$0xff] }
 0xe62   :  { %v2654_v17 = vld [vmem:[%s7205_s5 + $0x8] sm:$0xff] }
 0xe63   :  { %v2300_v23 = vmul.f32 %v4819_v18, %v2292_v22  ;;  %5251 = vmatprep.mubr.msk.f32.mxu1 %vm430_vm1, %v2307_v9  ;;  %v2653_v22 = vld [vmem:[%s7205_s5] sm:$0xff] }
 0xe65   :  { %v2308_v57 = vadd.f32 %v4820_v20, %v2300_v23  ;;  %v2655_v20 = vld [vmem:[%s7205_s5 + $0x10] sm:$0xff] }
 0xe67   :  { %5252 = vmatmul.mubr.msk.f32.vlgmr.msra.gmra.mxu1 %vm430_vm1, %v2308_v57 }
 0xe68   :  { %5274 = vmatpush3.msra.mxu1 %v2564_v58 }
 0xe69   :  { %5275 = vmatprep.subr.mxu1 %v2563_v60 }
 0xe6a   :  { %5276 = vmatpush3.msra.mxu1 %v2563_v60 }
 0xe6b   :  { %5277 = vmatprep.subr.mxu1 %v2562_v61 }
 0xe6c   :  { %5278 = vmatpush3.msra.mxu1 %v2562_v61 }
 0xe6d   :  { %5279 = vmatprep.subr.mxu1 %v2561_v62 }
 0xe6e   :  { %5280 = vmatpush3.msra.mxu1 %v2561_v62 }
 0xe6f   :  { %5284 = vmatprep.subr.mxu1 %v6157_v0 }
 0xf27   :  { %v5253_v29 = vpop.f32.mrf.mxu1 }
 0xf28   :  { %v2398_v28 = vadd.f32 %v5253_v29, %v4821_v44  ;;  %v5628_v29 = vld [vmem:[%s7198_s22 + $0x10] sm:$0xff] }
 0xf29   :  { %v2392_v30 = vpop.f32.mrf.mxu1 }
 0xf2a   :  { %v2393_v39 = vadd.f32 %v4821_v44, %v2392_v30  ;;  %v2402_v34 = vmax.f32 %v2398_v28, 0.0  ;;  %v4829_v30 = vld [vmem:[#allocation21] ss:$0 sm:$0xff] }
 0xf2c   :  { %v2401_v32 = vmax.f32 %v2393_v39, 0.0 }
 0xf2e   :  { %5270 = vmatprep.mubr.msk.f32.mxu0 %vm2418_vm10, %v2401_v32 }
 0xf2f   :  { %5271 = vmatmul.mubr.msk.f32.vlgmr.msra.gmra.mxu0 %vm2418_vm10, %v2402_v34 }
 0xf30   :  { %5309 = vmatprep.mubr.msk.f32.mxu0 %vm6158_vm0, %v6157_v0  ;;  %5302 = vmatpush3.msra.mxu0 %v2756_v63 }
 0xf31   :  { %5303 = vmatprep.subr.mxu0 %v6157_v0 }
 0xf32   :  { %5304 = vmatpush3.msra.mxu0 %v2755_v4 }
 0xf33   :  { %5305 = vmatprep.subr.mxu0 %v6157_v0 }
 0xf34   :  { %5306 = vmatpush3.msra.mxu0 %v2754_v1 }
 0xf35   :  { %5307 = vmatprep.subr.mxu0 %v6157_v0 }
 0xf36   :  { %5308 = vmatpush3.msra.mxu0 %v2753_v3 }
 0xf37   :  { %5332 = vmatprep.subr.mxu0 %v6157_v0 }
 0xfef   :  { %v5272_v12 = vpop.f32.mrf.mxu0 }
 0xff0   :  { %v2497_v41 = vadd.f32 %v5272_v12, %v4824_v37  ;;  %v4832_v12 = vld [vmem:[#allocation23] ss:$0 sm:$0xff] }
 0xff1   :  { %v2491_v43 = vpop.f32.mrf.mxu0 }
 0xff2   :  { %v2492_v45 = vadd.f32 %v4824_v37, %v2491_v43  ;;  %v2501_v46 = vadd.f32 %v2497_v41, %v2308_v57  ;;  %v5626_v57 = vld [vmem:[%s7198_s22] sm:$0xff] }
 0xff4   :  { %v2507_v47 = vsel %vm430_vm1, %v2501_v46, 0.0  ;;  %v2500_v48 = vadd.f32 %v2492_v45, %v2307_v9 }
 0xff5   :  { %2508 = vadd.xlane.f32.xlu0 %v2507_v47 }
 0xff6   :  { %v2504_v49 = vsel %vm430_vm1, %v2500_v48, 0.0 }
 0xff7   :  { %2505 = vadd.xlane.f32.xlu1 %v2504_v49 }
0x107e   :  { %v2509_v50 = vpop.xlane.xlu0 %2508 }
0x107f   :  { %v2511_v51 = vmul.f32 0.03125, %v2509_v50 }
0x1080   :  { %v2506_v35 = vpop.xlane.xlu1 %2505 }
0x1081   :  { %v2513_v52 = vsub.f32 %v2501_v46, %v2511_v51  ;;  %v2510_v31 = vmul.f32 0.03125, %v2506_v35  ;;  %v4836_v51 = vld [vmem:[#allocation24] ss:$0 sm:$0xff] }
0x1083   :  { %v2512_v38 = vsub.f32 %v2500_v48, %v2510_v31  ;;  %v2515_v53 = vmul.f32 %v2513_v52, %v2513_v52 }
0x1085   :  { %v2519_v54 = vsel %vm430_vm1, %v2515_v53, 0.0  ;;  %v2514_v40 = vmul.f32 %v2512_v38, %v2512_v38 }
0x1086   :  { %2520 = vadd.xlane.f32.xlu0 %v2519_v54 }
0x1087   :  { %v2516_v56 = vsel %vm430_vm1, %v2514_v40, 0.0 }
0x1088   :  { %2517 = vadd.xlane.f32.xlu1 %v2516_v56 }
0x110f   :  { %v2521_v42 = vpop.xlane.xlu0 %2520 }
0x1110   :  { %v2523_v2 = vmul.f32 0.03125, %v2521_v42 }
0x1111   :  { %v2518_v5 = vpop.xlane.xlu1 %2517 }
0x1112   :  { %v2525_v6 = vadd.f32 1e-05, %v2523_v2  ;;  %v2522_v59 = vmul.f32 0.03125, %v2518_v5  ;;  %v6892_v5 = vld [vmem:[#allocation4] sm:$0xff] }
0x1114   :  { %5578 = vrsqrt.f32 %v2525_v6  ;;  %v2524_v7 = vadd.f32 1e-05, %v2522_v59 }
0x1116   :  { %5580 = vrsqrt.f32 %v2524_v7 }
0x1121   :  { %v5579_v8 = vpop.eup %5578 }
0x1122   :  { %v2529_v33 = vmul.f32 %v5579_v8, %v2513_v52 }
0x1123   :  { %v5581_v11 = vpop.eup %5580 }
0x1124   :  { %v2528_v13 = vmul.f32 %v5581_v11, %v2512_v38  ;;  %v2537_v14 = vmul.f32 %v4827_v10, %v2529_v33 }
0x1126   :  { %v2536_v15 = vmul.f32 %v4827_v10, %v2528_v13  ;;  %v6793_v16 = vadd.f32 %v4828_v55, %v2537_v14 }
0x1128   :  { %v6795_v18 = vadd.f32 %v4828_v55, %v2536_v15  ;;  %2552 = vst.msk [vmem:[#allocation2 + $0x10] sm:$0xff] %vm430_vm1, %v6793_v16 }
0x112a   :  { %2548 = vst.msk [vmem:[#allocation2 + $0x4] sm:$0xff] %vm430_vm1, %v6795_v18  ;;  %5281 = vmatprep.mubr.msk.f32.mxu1 %vm430_vm1, %v6795_v18 }
0x112b   :  { %5282 = vmatmul.mubr.msk.f32.vlgmr.msra.gmra.mxu1 %vm430_vm1, %v6793_v16 }
0x112c   :  { %5285 = vmatpush3.msra.mxu1 %v2656_v19  ;;  %5292 = vmatprep.mubr.msk.f32.mxu1 %vm6158_vm0, %v6157_v0 }
0x112d   :  { %5286 = vmatprep.subr.mxu1 %v6157_v0 }
0x112e   :  { %5287 = vmatpush3.msra.mxu1 %v2655_v20 }
0x112f   :  { %v2553_v21 = vld [vmem:[#allocation2 + $0x14] sm:$0xf]  ;;  %5288 = vmatprep.subr.mxu1 %v6157_v0 }
0x1130   :  { %2554 = vst.msk [vmem:[%s6378_s24 + $0x4] sm:$0xf] %vm428_vm2, %v2553_v21  ;;  %5289 = vmatpush3.msra.mxu1 %v2654_v17  ;;  %v2557_v44 = vld [vmem:[#allocation2 + $0x10] sm:$0xff] }
0x1131   :  { %v2549_v9 = vld [vmem:[#allocation2 + $0x8] sm:$0xf]  ;;  %5290 = vmatprep.subr.mxu1 %v6157_v0  ;;  %v2555_v23 = vld [vmem:[#allocation2] sm:$0xff]  ;;  %v2560_v28 = vadd.f32 %v5628_v29, %v2557_v44 }
0x1132   :  { %2550 = vst.msk [vmem:[%s6378_s24] sm:$0xf] %vm428_vm2, %v2549_v9  ;;  %v2558_v24 = vadd.f32 %v5626_v57, %v2555_v23  ;;  %5310 = vmatmul.mubr.msk.f32.vlgmr.msra.gmra.mxu0 %vm430_vm1, %v2555_v23  ;;  %5291 = vmatpush3.msra.mxu1 %v2653_v22  ;;  %v2556_v25 = vld [vmem:[#allocation2 + $0x8] sm:$0xff]  ;;  %s7206_s24 = sld [smem:[#allocation66_spill]] }
0x1133   :  { %5312 = vmatprep.mubr.msk.f32.mxu0 %vm6158_vm0, %v6157_v0  ;;  %5318 = vmatprep.subr.mxu1 %v6157_v0  ;;  %v2559_v27 = vadd.f32 %v5627_v26, %v2556_v25 }
0x1134   :  { %5293 = vmatmul.mubr.msk.f32.vlgmr.msra.gmra.mxu1 %vm430_vm1, %v2558_v24 }
0x1135   :  { %5295 = vmatprep.mubr.msk.f32.mxu1 %vm6158_vm0, %v6157_v0 }
0x1136   :  { %5313 = vmatmul.mubr.msk.f32.gmra.mxu0 %vm430_vm1, %v2556_v25 }
0x1137   :  { %5315 = vmatprep.mubr.msk.f32.mxu0 %vm6158_vm0, %v6157_v0 }
0x1138   :  { %5296 = vmatmul.mubr.msk.f32.gmra.mxu1 %vm430_vm1, %v2559_v27 }
0x1139   :  { %5298 = vmatprep.mubr.msk.f32.mxu1 %vm6158_vm0, %v6157_v0 }
0x113a   :  { %5316 = vmatmul.mubr.msk.f32.gmra.mxu0 %vm430_vm1, %v2557_v44 }
0x113b   :  { %5336 = vmatprep.mubr.msk.f32.mxu0 %vm6158_vm0, %v6157_v0 }
0x113c   :  { %5299 = vmatmul.mubr.msk.f32.gmra.mxu1 %vm430_vm1, %v2560_v28 }
0x113d   :  { %5322 = vmatprep.mubr.msk.f32.mxu1 %vm6158_vm0, %v6157_v0 }
0x11eb   :  { %v5283_v39 = vpop.f32.mrf.mxu1 }
0x11ec   :  { %v6840_v32 = vadd.f32 %v5283_v39, %v4829_v30 }
0x11ed   :  { %v2644_v34 = vpop.f32.mrf.mxu1 }
0x11ee   :  { %v2645_v54 = vadd.f32 %v4829_v30, %v2644_v34 }
0x11f2   :  { %v2839_v37 = vpop.f32.mrf.mxu0 }
0x11f3   :  { %v2840_v60 = vadd.f32 %v4836_v51, %v2839_v37 }
0x11f4   :  { %v2739_v41 = vpop.f32.mrf.mxu1  ;;  %v5311_v43 = vpop.f32.mrf.mxu0 }
0x11f5   :  { %v6842_v45 = vadd.f32 %v4832_v12, %v2739_v41 }
0x11f6   :  { %v5294_v46 = vpop.f32.mrf.mxu1  ;;  %v2844_v47 = vpop.f32.mrf.mxu0 }
0x11f7   :  { %3024 = vrot.lane.b32.xlu0 %v6842_v45, %s6159_s4  ;;  %v6863_v58 = vadd.f32 %v4836_v51, %v2844_v47 }
0x11f8   :  { %v2744_v48 = vpop.f32.mrf.mxu1  ;;  %v5314_v49 = vpop.f32.mrf.mxu0 }
0x11f9   :  { %v6846_v50 = vadd.f32 %v4832_v12, %v2744_v48  ;;  %v3653_v46 = vrot.slane %v6863_v58, 4 }
0x11fa   :  { %v5297_v35 = vpop.f32.mrf.mxu1  ;;  %v2849_v52 = vpop.f32.mrf.mxu0 }
0x11fb   :  { %v6848_v31 = vadd.f32 %v4836_v51, %v2849_v52  ;;  %3205 = vrot.lane.b32.xlu0 %v6842_v45, %s6160_s21  ;;  %3026 = vrot.lane.b32.xlu1 %v6846_v50, %s6159_s4 }
0x11fc   :  { %5319 = vmatpush3.xpose.msk.msra.mxu1 %vm737_vm4, %v6846_v50  ;;  %v2749_v38 = vpop.f32.mrf.mxu1  ;;  %v5317_v53 = vpop.f32.mrf.mxu0 }
0x11fd   :  { %v6856_v40 = vadd.f32 %v4832_v12, %v2749_v38  ;;  %5320 = vmatprep.subr.mxu1 %v6157_v0 }
0x11fe   :  { %v5300_v56 = vpop.f32.mrf.mxu1 }
0x11ff   :  { %3022 = vrot.lane.b32.xlu1 %v2645_v54, %s6159_s4 }
0x1200   :  { %5321 = vmatpush3.xpose.msk.msra.mxu1 %vm737_vm4, %v6842_v45 }
0x1201   :  { %5325 = vmatprep.subr.mxu1 %v6157_v0 }
0x1203   :  { %5323 = vmatmul.mubr.msk.f32.vlgmr.msra.gmra.mxu1 %vm737_vm4, %v2645_v54  ;;  %3207 = vrot.lane.b32.xlu1 %v6846_v50, %s6160_s21 }
0x1204   :  { %5326 = vmatpush3.msk.msra.mxu1 %vm829_vm5, %v6863_v58  ;;  %5329 = vmatprep.mubr.msk.f32.mxu1 %vm6158_vm0, %v6157_v0 }
0x1205   :  { %5327 = vmatprep.subr.mxu1 %v6157_v0 }
0x1206   :  { %5328 = vmatpush3.msra.mxu1 %v2840_v60 }
0x1207   :  { %3203 = vrot.lane.b32.xlu1 %v2645_v54, %s6160_s21  ;;  %5339 = vmatprep.subr.mxu1 %v6157_v0 }
0x120b   :  { %3113 = vrot.lane.b32.xlu1 %v2840_v60, %s6159_s4 }
0x120f   :  { %3295 = vrot.lane.b32.xlu1 %v6863_v58, %s6160_s21 }
0x1269   :  { %v3025_v61 = vpop.permute.xlu0 %3024 }
0x126d   :  { %v3027_v36 = vpop.permute.xlu1 %3026  ;;  %v3206_v4 = vpop.permute.xlu0 %3205 }
0x126e   :  { %5333 = vmatpush3.xpose.msk.msra.mxu0 %vm737_vm4, %v3027_v36 }
0x126f   :  { %5334 = vmatprep.subr.mxu0 %v6157_v0 }
0x1271   :  { %v3023_v62 = vpop.permute.xlu1 %3022 }
0x1272   :  { %5335 = vmatpush3.xpose.msk.msra.mxu0 %vm737_vm4, %v3025_v61 }
0x1273   :  { %5346 = vmatprep.subr.mxu0 %v6157_v0 }
0x1275   :  { %5337 = vmatmul.mubr.msk.f32.vlgmr.msra.gmra.mxu0 %vm737_vm4, %v3023_v62  ;;  %v3208_v63 = vpop.permute.xlu1 %3207 }
0x1276   :  { %5347 = vmatpush3.xpose.msk.msra.mxu0 %vm737_vm4, %v3208_v63  ;;  %5350 = vmatprep.mubr.msk.f32.mxu0 %vm6158_vm0, %v6157_v0 }
0x1277   :  { %5348 = vmatprep.subr.mxu0 %v6157_v0 }
0x1279   :  { %v3204_v1 = vpop.permute.xlu1 %3203 }
0x127a   :  { %5349 = vmatpush3.xpose.msk.msra.mxu0 %vm737_vm4, %v3206_v4 }
0x127b   :  { %5367 = vmatprep.subr.mxu0 %v6157_v0 }
0x127d   :  { %5351 = vmatmul.mubr.msk.f32.vlgmr.msra.gmra.mxu0 %vm737_vm4, %v3204_v1  ;;  %v3114_v23 = vpop.permute.xlu1 %3113 }
0x127e   :  { %5371 = vmatprep.mubr.msk.f32.mxu0 %vm6158_vm0, %v6157_v0 }
0x1281   :  { %v3296_v57 = vpop.permute.xlu1 %3295 }
0x12c3   :  { %v2928_v3 = vpop.f32.mrf.mxu1 }
0x12c4   :  { %v2932_v42 = vmul.f32 0.35355338, %v2928_v3 }
0x12c5   :  { %v5324_v2 = vpop.f32.mrf.mxu1 }
0x12c6   :  { %v2933_v6 = vadd.f32 %v6892_v5, %v2932_v42 }
0x12c8   :  { %v2934_v59 = vsel %vm819_vm6, %v2933_v6, -inf }
0x12c9   :  { %2935 = vmax.xlane.f32.xlu0 %v2934_v59 }
0x12df   :  { %3115 = vrot.lane.b32.xlu0 %v6863_v58, %s6159_s4 }
0x1335   :  { %v3100_v7 = vpop.f32.mrf.mxu0 }
0x1336   :  { %v3104_v8 = vmul.f32 0.35355338, %v3100_v7 }
0x1337   :  { %v5338_v10 = vpop.f32.mrf.mxu0 }
0x1338   :  { %v3105_v33 = vadd.f32 %v6892_v5, %v3104_v8 }
0x133a   :  { %v3106_v11 = vsel %vm819_vm6, %v3105_v33, -inf }
0x133b   :  { %3107 = vmax.xlane.f32.xlu1 %v3106_v11 }
0x133d   :  { %v3281_v55 = vpop.f32.mrf.mxu0 }
0x133e   :  { %v3285_v13 = vmul.f32 0.35355338, %v3281_v55 }
0x133f   :  { %v5352_v14 = vpop.f32.mrf.mxu0 }
0x1340   :  { %v3286_v15 = vadd.f32 %v6892_v5, %v3285_v13 }
0x1342   :  { %v3287_v19 = vsel %vm819_vm6, %v3286_v15, -inf }
0x1343   :  { %3288 = vmax.xlane.f32.xlu0 %v3287_v19 }
0x134c   :  { %3387 = vrot.lane.b32.xlu1 %v6846_v50, %s6161_s23 }
0x1350   :  { %3383 = vrot.lane.b32.xlu1 %v2645_v54, %s6161_s23 }
0x1352   :  { %v2936_v20 = vpop.xlane.xlu0 %2935 }
0x1353   :  { %v2937_v17 = vsub.f32 %v2933_v6, %v2936_v20 }
0x1354   :  { %3475 = vrot.lane.b32.xlu1 %v6863_v58, %s6161_s23 }
0x1355   :  { %v2938_v21 = vmul.f32 1.442695, %v2937_v17 }
0x1356   :  { %v3116_v9 = vpop.permute.xlu0 %3115 }
0x1357   :  { %5582 = vpow2.f32 %v2938_v21 }
0x1358   :  { %3473 = vrot.lane.b32.xlu1 %v2840_v60, %s6161_s23 }
0x1359   :  { %3293 = vrot.lane.b32.xlu0 %v2840_v60, %s6160_s21  ;;  %v6967_v60 = vrot.slane %v6856_v40, 4  ;;  %v3564_v40 = vrot.slane %v6846_v50, 4 }
0x135b   :  { %v6985_v4 = vsel %vm829_vm5, %v3564_v40, %v6967_v60 }
0x135d   :  { %3385 = vrot.lane.b32.xlu0 %v6842_v45, %s6161_s23  ;;  %v6942_v45 = vrot.slane %v6848_v31, 4 }
0x135f   :  { %v6954_v47 = vsel %vm829_vm5, %v3653_v46, %v6942_v45 }
0x1364   :  { %v6911_v22 = vpop.eup %5582 }
0x1365   :  { %5330 = vmatmul.mubr.msk.f32.vlgmr.msra.gmra.mxu1 %vm819_vm6, %v6911_v22 }
0x1366   :  { %5340 = vmatpush3.msk.msra.mxu1 %vm829_vm5, %v3116_v9  ;;  %5343 = vmatprep.mubr.msk.f32.mxu1 %vm6158_vm0, %v6157_v0 }
0x1367   :  { %5341 = vmatprep.subr.mxu1 %v6157_v0 }
0x1368   :  { %5342 = vmatpush3.msra.mxu1 %v3114_v23 }
0x1369   :  { %5353 = vmatprep.subr.mxu1 %v6157_v0 }
0x13c4   :  { %v3108_v24 = vpop.xlane.xlu1 %3107 }
0x13c5   :  { %v3109_v25 = vsub.f32 %v3105_v33, %v3108_v24 }
0x13c7   :  { %v3110_v26 = vmul.f32 1.442695, %v3109_v25 }
0x13c8   :  { %v3388_v27 = vpop.permute.xlu1 %3387 }
0x13c9   :  { %5584 = vpow2.f32 %v3110_v26 }
0x13cc   :  { %v3384_v44 = vpop.permute.xlu1 %3383  ;;  %v3289_v29 = vpop.xlane.xlu0 %3288 }
0x13cd   :  { %v3290_v28 = vsub.f32 %v3286_v15, %v3289_v29 }
0x13cf   :  { %v3291_v30 = vmul.f32 1.442695, %v3290_v28 }
0x13d0   :  { %v3476_v39 = vpop.permute.xlu1 %3475  ;;  %v3294_v12 = vpop.permute.xlu0 %3293 }
0x13d1   :  { %5586 = vpow2.f32 %v3291_v30  ;;  %5368 = vmatpush3.msk.msra.mxu0 %vm829_vm5, %v3476_v39 }
0x13d2   :  { %5369 = vmatprep.subr.mxu0 %v6157_v0 }
0x13d4   :  { %v3474_v34 = vpop.permute.xlu1 %3473  ;;  %v3386_v43 = vpop.permute.xlu0 %3385 }
0x13d5   :  { %5370 = vmatpush3.msra.mxu0 %v3474_v34 }
0x13d6   :  { %v6922_v37 = vpop.eup %5584  ;;  %5374 = vmatprep.subr.mxu0 %v6157_v0 }
0x13d7   :  { %5344 = vmatmul.mubr.msk.f32.vlgmr.msra.gmra.mxu1 %vm819_vm6, %v6922_v37 }
0x13d8   :  { %5354 = vmatpush3.msk.msra.mxu1 %vm829_vm5, %v3296_v57  ;;  %5357 = vmatprep.mubr.msk.f32.mxu1 %vm6158_vm0, %v6157_v0 }
0x13d9   :  { %5355 = vmatprep.subr.mxu1 %v6157_v0 }
0x13da   :  { %5356 = vmatpush3.msra.mxu1 %v3294_v12 }
0x13db   :  { %5360 = vmatprep.subr.mxu1 %v6157_v0 }
0x13de   :  { %v6932_v41 = vpop.eup %5586 }
0x13df   :  { %5358 = vmatmul.mubr.msk.f32.vlgmr.msra.gmra.mxu1 %vm819_vm6, %v6932_v41 }
0x13e0   :  { %5361 = vmatpush3.xpose.msk.msra.mxu1 %vm737_vm4, %v3388_v27  ;;  %5364 = vmatprep.mubr.msk.f32.mxu1 %vm6158_vm0, %v6157_v0 }
0x13e1   :  { %5362 = vmatprep.subr.mxu1 %v6157_v0 }
0x13e4   :  { %5363 = vmatpush3.xpose.msk.msra.mxu1 %vm737_vm4, %v3386_v43 }
0x13e5   :  { %5381 = vmatprep.subr.mxu1 %v6157_v0 }
0x13e7   :  { %5365 = vmatmul.mubr.msk.f32.vlgmr.msra.gmra.mxu1 %vm737_vm4, %v3384_v44 }
0x13e8   :  { %5382 = vmatpush3.msk.msra.mxu1 %vm829_vm5, %v6942_v45  ;;  %5385 = vmatprep.mubr.msk.f32.mxu1 %vm6158_vm0, %v6157_v0 }
0x13e9   :  { %5383 = vmatprep.subr.mxu1 %v6157_v0 }
0x13ea   :  { %5384 = vmatpush3.msra.mxu1 %v6954_v47 }
0x13eb   :  { %5388 = vmatprep.subr.mxu1 %v6157_v0 }
0x1425   :  { %v6958_v48 = vpop.f32.mrf.mxu1 }
0x1427   :  { %v5331_v49 = vpop.f32.mrf.mxu1 }
0x1497   :  { %v6960_v51 = vpop.f32.mrf.mxu1 }
0x1499   :  { %v5345_v35 = vpop.f32.mrf.mxu1 }
0x149f   :  { %v6962_v52 = vpop.f32.mrf.mxu1 }
0x14a1   :  { %v5359_v31 = vpop.f32.mrf.mxu1 }
0x14a2   :  { %v3193_v31 = vsel %vm819_vm6, %v6922_v37, 0.0 }
0x14a7   :  { %v3461_v38 = vpop.f32.mrf.mxu1 }
0x14a8   :  { %v3465_v53 = vmul.f32 0.35355338, %v3461_v38 }
0x14a9   :  { %v5366_v54 = vpop.f32.mrf.mxu1 }
0x14aa   :  { %v3466_v56 = vadd.f32 %v6892_v5, %v3465_v53 }
0x14ac   :  { %v3467_v58 = vsel %vm819_vm6, %v3466_v56, -inf }
0x14ad   :  { %3468 = vmax.xlane.f32.xlu0 %v3467_v58 }
0x14c3   :  { %3742 = vrot.lane.b32.xlu0 %v6967_v60, %s6159_s4 }
0x14c7   :  { %3738 = vrot.lane.b32.xlu0 %v6840_v32, %s6159_s4 }
0x1536   :  { %v3469_v36 = vpop.xlane.xlu0 %3468 }
0x1537   :  { %v3470_v61 = vsub.f32 %v3466_v56, %v3469_v36 }
0x1539   :  { %v3471_v62 = vmul.f32 1.442695, %v3470_v61 }
0x153a   :  { %v3743_v14 = vpop.permute.xlu0 %3742 }
0x153b   :  { %5588 = vpow2.f32 %v3471_v62 }
0x153e   :  { %v3739_v15 = vpop.permute.xlu0 %3738 }
0x1548   :  { %v6973_v63 = vpop.eup %5588 }
0x1549   :  { %5372 = vmatmul.mubr.msk.f32.vlgmr.msra.gmra.mxu0 %vm819_vm6, %v6973_v63 }
0x154a   :  { %5375 = vmatpush3.xpose.msk.msra.mxu0 %vm737_vm4, %v6967_v60  ;;  %5378 = vmatprep.mubr.msk.f32.mxu0 %vm6158_vm0, %v6157_v0 }
0x154b   :  { %5376 = vmatprep.subr.mxu0 %v6157_v0 }
0x154e   :  { %5377 = vmatpush3.xpose.msk.msra.mxu0 %vm737_vm4, %v6985_v4 }
0x154f   :  { %5395 = vmatprep.subr.mxu0 %v6157_v0 }
0x1551   :  { %5379 = vmatmul.mubr.msk.f32.vlgmr.msra.gmra.mxu0 %vm737_vm4, %v6840_v32 }
0x1552   :  { %5399 = vmatprep.mubr.msk.f32.mxu0 %vm6158_vm0, %v6157_v0 }
0x1609   :  { %v6994_v1 = vpop.f32.mrf.mxu0 }
0x160b   :  { %v5373_v3 = vpop.f32.mrf.mxu0 }
0x1611   :  { %v3640_v42 = vpop.f32.mrf.mxu0 }
0x1612   :  { %v3644_v50 = vmul.f32 0.35355338, %v3640_v42 }
0x1613   :  { %v5380_v2 = vpop.f32.mrf.mxu0 }
0x1614   :  { %v3645_v6 = vadd.f32 %v6892_v5, %v3644_v50 }
0x1616   :  { %v3646_v59 = vsel %vm819_vm6, %v3645_v6, -inf }
0x1617   :  { %3647 = vmax.xlane.f32.xlu1 %v3646_v59 }
0x1628   :  { %3740 = vrot.lane.b32.xlu1 %v6985_v4, %s6159_s4 }
0x162c   :  { %3830 = vrot.lane.b32.xlu1 %v6942_v45, %s6159_s4 }
0x1630   :  { %3828 = vrot.lane.b32.xlu1 %v6954_v47, %s6159_s4 }
0x1634   :  { %3922 = vrot.lane.b32.xlu1 %v6967_v60, %s6160_s21 }
0x1638   :  { %3920 = vrot.lane.b32.xlu1 %v6985_v4, %s6160_s21 }
0x163c   :  { %3918 = vrot.lane.b32.xlu1 %v6840_v32, %s6160_s21 }
0x16a0   :  { %v3648_v7 = vpop.xlane.xlu1 %3647 }
0x16a1   :  { %v3649_v8 = vsub.f32 %v3645_v6, %v3648_v7  ;;  %v3373_v6 = vsel %vm819_vm6, %v6932_v41, 0.0 }
0x16a3   :  { %v3650_v10 = vmul.f32 1.442695, %v3649_v8 }
0x16a4   :  { %v3741_v33 = vpop.permute.xlu1 %3740 }
0x16a5   :  { %5590 = vpow2.f32 %v3650_v10 }
0x16a8   :  { %v3831_v11 = vpop.permute.xlu1 %3830 }
0x16a9   :  { %5396 = vmatpush3.msk.msra.mxu0 %vm829_vm5, %v3831_v11 }
0x16aa   :  { %5397 = vmatprep.subr.mxu0 %v6157_v0 }
0x16ac   :  { %v3829_v55 = vpop.permute.xlu1 %3828 }
0x16ad   :  { %5398 = vmatpush3.msra.mxu0 %v3829_v55 }
0x16ae   :  { %5402 = vmatprep.subr.mxu0 %v6157_v0 }
0x16b0   :  { %v3923_v29 = vpop.permute.xlu1 %3922 }
0x16b2   :  { %v7013_v13 = vpop.eup %5590 }
0x16b3   :  { %5386 = vmatmul.mubr.msk.f32.vlgmr.msra.gmra.mxu1 %vm819_vm6, %v7013_v13 }
0x16b4   :  { %5389 = vmatpush3.xpose.msk.msra.mxu1 %vm737_vm4, %v3743_v14  ;;  %5392 = vmatprep.mubr.msk.f32.mxu1 %vm6158_vm0, %v6157_v0  ;;  %v3921_v30 = vpop.permute.xlu1 %3920 }
0x16b5   :  { %5390 = vmatprep.subr.mxu1 %v6157_v0 }
0x16b8   :  { %5391 = vmatpush3.xpose.msk.msra.mxu1 %vm737_vm4, %v3741_v33 }
0x16b9   :  { %5409 = vmatprep.subr.mxu1 %v6157_v0 }
0x16bb   :  { %5393 = vmatmul.mubr.msk.f32.vlgmr.msra.gmra.mxu1 %vm737_vm4, %v3739_v15  ;;  %v3016_v15 = vsel %vm819_vm6, %v6911_v22, 0.0 }
0x16bc   :  { %5413 = vmatprep.mubr.msk.f32.mxu1 %vm6158_vm0, %v6157_v0 }
0x1773   :  { %v7026_v19 = vpop.f32.mrf.mxu1 }
0x1775   :  { %v5387_v20 = vpop.f32.mrf.mxu1 }
0x177b   :  { %v3816_v17 = vpop.f32.mrf.mxu1 }
0x177c   :  { %v3820_v21 = vmul.f32 0.35355338, %v3816_v17 }
0x177d   :  { %v5394_v9 = vpop.f32.mrf.mxu1 }
0x177e   :  { %v3821_v23 = vadd.f32 %v6892_v5, %v3820_v21  ;;  %v3732_v21 = vsel %vm819_vm6, %v7013_v13, 0.0 }
0x1780   :  { %v3822_v57 = vsel %vm819_vm6, %v3821_v23, -inf }
0x1781   :  { %3823 = vmax.xlane.f32.xlu0 %v3822_v57 }
0x1797   :  { %4010 = vrot.lane.b32.xlu0 %v6942_v45, %s6160_s21 }
0x179b   :  { %4008 = vrot.lane.b32.xlu0 %v6954_v47, %s6160_s21 }
0x179f   :  { %4102 = vrot.lane.b32.xlu0 %v6967_v60, %s6161_s23 }
0x17a3   :  { %4098 = vrot.lane.b32.xlu0 %v6840_v32, %s6161_s23  ;;  %v3919_v32 = vpop.permute.xlu1 %3918 }
0x180a   :  { %v3824_v24 = vpop.xlane.xlu0 %3823 }
0x180b   :  { %v3825_v25 = vsub.f32 %v3821_v23, %v3824_v24 }
0x180d   :  { %v3826_v26 = vmul.f32 1.442695, %v3825_v25 }
0x180e   :  { %v4011_v27 = vpop.permute.xlu0 %4010 }
0x180f   :  { %5592 = vpow2.f32 %v3826_v26  ;;  %5410 = vmatpush3.msk.msra.mxu1 %vm829_vm5, %v4011_v27 }
0x1810   :  { %5411 = vmatprep.subr.mxu1 %v6157_v0 }
0x1812   :  { %v4009_v44 = vpop.permute.xlu0 %4008 }
0x1813   :  { %5412 = vmatpush3.msra.mxu1 %v4009_v44 }
0x1814   :  { %5416 = vmatprep.subr.mxu1 %v6157_v0 }
0x1816   :  { %v4103_v36 = vpop.permute.xlu0 %4102 }
0x181a   :  { %v4099_v37 = vpop.permute.xlu0 %4098 }
0x181c   :  { %v5593_v28 = vpop.eup %5592 }
0x181d   :  { %5400 = vmatmul.mubr.msk.f32.vlgmr.msra.gmra.mxu0 %vm819_vm6, %v5593_v28  ;;  %v3908_v59 = vsel %vm819_vm6, %v5593_v28, 0.0 }
0x181e   :  { %5403 = vmatpush3.xpose.msk.msra.mxu0 %vm737_vm4, %v3923_v29  ;;  %5406 = vmatprep.mubr.msk.f32.mxu0 %vm6158_vm0, %v6157_v0 }
0x181f   :  { %5404 = vmatprep.subr.mxu0 %v6157_v0 }
0x1822   :  { %5405 = vmatpush3.xpose.msk.msra.mxu0 %vm737_vm4, %v3921_v30 }
0x1823   :  { %5423 = vmatprep.subr.mxu0 %v6157_v0 }
0x1825   :  { %5407 = vmatmul.mubr.msk.f32.vlgmr.msra.gmra.mxu0 %vm737_vm4, %v3919_v32 }
0x1826   :  { %5427 = vmatprep.mubr.msk.f32.mxu0 %vm6158_vm0, %v6157_v0 }
0x18dd   :  { %v7051_v39 = vpop.f32.mrf.mxu0 }
0x18df   :  { %v5401_v34 = vpop.f32.mrf.mxu0 }
0x18e5   :  { %v3996_v12 = vpop.f32.mrf.mxu0 }
0x18e6   :  { %v4000_v43 = vmul.f32 0.35355338, %v3996_v12  ;;  %v4283_v12 = vld [vmem:[%s7206_s24 + $0x18] sm:$0xff] }
0x18e7   :  { %v5408_v46 = vpop.f32.mrf.mxu0 }
0x18e8   :  { %v4001_v49 = vadd.f32 %v6892_v5, %v4000_v43  ;;  %v4282_v43 = vld [vmem:[%s7206_s24 + $0x10] sm:$0xff]  ;;  %v4280_v46 = vld [vmem:[%s7206_s24] sm:$0xff] }
0x18ea   :  { %v4002_v35 = vsel %vm819_vm6, %v4001_v49, -inf }
0x18eb   :  { %4003 = vmax.xlane.f32.xlu1 %v4002_v35 }
0x18fc   :  { %4100 = vrot.lane.b32.xlu1 %v6985_v4, %s6161_s23 }
0x1900   :  { %4190 = vrot.lane.b32.xlu1 %v6942_v45, %s6161_s23 }
0x1904   :  { %4188 = vrot.lane.b32.xlu1 %v6954_v47, %s6161_s23 }
0x1928   :  { %3194 = vadd.xlane.f32.xlu1 %v3193_v31 }
0x1974   :  { %v4004_v38 = vpop.xlane.xlu1 %4003 }
0x1975   :  { %v4005_v53 = vsub.f32 %v4001_v49, %v4004_v38 }
0x1977   :  { %v4006_v54 = vmul.f32 1.442695, %v4005_v53 }
0x1978   :  { %v4101_v56 = vpop.permute.xlu1 %4100 }
0x1979   :  { %5594 = vpow2.f32 %v4006_v54 }
0x197c   :  { %v4191_v58 = vpop.permute.xlu1 %4190 }
0x197d   :  { %5424 = vmatpush3.msk.msra.mxu0 %vm829_vm5, %v4191_v58 }
0x197e   :  { %5425 = vmatprep.subr.mxu0 %v6157_v0 }
0x1980   :  { %v4189_v60 = vpop.permute.xlu1 %4188 }
0x1981   :  { %5426 = vmatpush3.msra.mxu0 %v4189_v60 }
0x1982   :  { %5430 = vmatprep.subr.mxu0 %v4283_v12 }
0x1986   :  { %v5595_v45 = vpop.eup %5594 }
0x1987   :  { %5414 = vmatmul.mubr.msk.f32.vlgmr.msra.gmra.mxu1 %vm819_vm6, %v5595_v45  ;;  %v4088_v7 = vsel %vm819_vm6, %v5595_v45, 0.0 }
0x1988   :  { %5417 = vmatpush3.xpose.msk.msra.mxu1 %vm737_vm4, %v4103_v36  ;;  %5420 = vmatprep.mubr.msk.f32.mxu1 %vm6158_vm0, %v6157_v0 }
0x1989   :  { %5418 = vmatprep.subr.mxu1 %v6157_v0 }
0x198c   :  { %5419 = vmatpush3.xpose.msk.msra.mxu1 %vm737_vm4, %v4101_v56  ;;  %v4880_v56 = vld [vmem:[#allocation26] ss:$0 sm:$0xff] }
0x198f   :  { %5421 = vmatmul.mubr.msk.f32.vlgmr.msra.gmra.mxu1 %vm737_vm4, %v4099_v37 }
0x19b1   :  { %v3195_v47 = vpop.xlane.xlu1 %3194 }
0x19b2   :  { %5596 = vrcp.f32 %v3195_v47 }
0x19bf   :  { %v5597_v61 = vpop.eup %5596 }
0x19c0   :  { %v3197_v62 = vmul.f32 %v5597_v61, %v6960_v51  ;;  %v3553_v51 = vsel %vm819_vm6, %v6973_v63, 0.0 }
0x19c2   :  { %3199 = vrot.lane.b32.xlu1 %v3197_v62, %s6162_s26 }
0x1a47   :  { %v4084_v40 = vpop.f32.mrf.mxu1 }
0x1a49   :  { %v5415_v4 = vpop.f32.mrf.mxu1 }
0x1a4f   :  { %v4176_v3 = vpop.f32.mrf.mxu1 }
0x1a50   :  { %v4180_v42 = vmul.f32 0.35355338, %v4176_v3 }
0x1a51   :  { %v5422_v50 = vpop.f32.mrf.mxu1 }
0x1a52   :  { %v4181_v2 = vadd.f32 %v6892_v5, %v4180_v42 }
0x1a54   :  { %v4182_v0 = vsel %vm819_vm6, %v4181_v2, -inf }
0x1a55   :  { %4183 = vmax.xlane.f32.xlu0 %v4182_v0 }
0x1a59   :  { %3374 = vadd.xlane.f32.xlu0 %v3373_v6 }
0x1a5d   :  { %3909 = vadd.xlane.f32.xlu0 %v3908_v59  ;;  %v4421_v59 = vld [vmem:[%s7207_s9 + $0x18] sm:$0xff] }
0x1a5e   :  { %5441 = vmatprep.subr.mxu1 %v4421_v59 }
0x1a5f   :  { %5442 = vmatpush3.msra.mxu1 %v4421_v59  ;;  %v4892_v59 = vld [vmem:[#allocation35] ss:$0 sm:$0xff] }
0x1a61   :  { %3554 = vadd.xlane.f32.xlu0 %v3553_v51  ;;  %v4420_v51 = vld [vmem:[%s7207_s9 + $0x10] sm:$0xff] }
0x1a62   :  { %5443 = vmatprep.subr.mxu1 %v4420_v51 }
0x1a63   :  { %5444 = vmatpush3.msra.mxu1 %v4420_v51 }
0x1a65   :  { %4089 = vadd.xlane.f32.xlu0 %v4088_v7  ;;  %v4419_v7 = vld [vmem:[%s7207_s9 + $0x8] sm:$0xff] }
0x1a66   :  { %5445 = vmatprep.subr.mxu1 %v4419_v7 }
0x1a67   :  { %5446 = vmatpush3.msra.mxu1 %v4419_v7 }
0x1ade   :  { %v4184_v8 = vpop.xlane.xlu0 %4183 }
0x1adf   :  { %v4185_v10 = vsub.f32 %v4181_v2, %v4184_v8  ;;  %v4418_v8 = vld [vmem:[%s7207_s9] sm:$0xff] }
0x1ae0   :  { %5447 = vmatprep.subr.mxu1 %v4418_v8 }
0x1ae1   :  { %v4186_v5 = vmul.f32 1.442695, %v4185_v10  ;;  %5448 = vmatpush3.msra.mxu1 %v4418_v8  ;;  %v4519_v10 = vld [vmem:[%s7208_s29 + $0x38] sm:$0xff] }
0x1ae2   :  { %v3375_v33 = vpop.xlane.xlu0 %3374 }
0x1ae3   :  { %5598 = vpow2.f32 %v4186_v5  ;;  %v4518_v5 = vld [vmem:[%s7208_s29 + $0x30] sm:$0xff] }
0x1ae6   :  { %v3910_v11 = vpop.xlane.xlu0 %3909 }
0x1ae7   :  { %5600 = vrcp.f32 %v3910_v11  ;;  %v4516_v11 = vld [vmem:[%s7208_s29 + $0x20] sm:$0xff] }
0x1aea   :  { %v3555_v55 = vpop.xlane.xlu0 %3554 }
0x1aeb   :  { %5602 = vrcp.f32 %v3555_v55 }
0x1aec   :  { %5604 = vrcp.f32 %v3375_v33  ;;  %v4517_v33 = vld [vmem:[%s7208_s29 + $0x28] sm:$0xff] }
0x1aee   :  { %v4090_v23 = vpop.xlane.xlu0 %4089 }
0x1aef   :  { %5606 = vrcp.f32 %v4090_v23  ;;  %v4884_v23 = vld [vmem:[#allocation32] ss:$0 sm:$0xff] }
0x1af0   :  { %v5599_v41 = vpop.eup %5598 }
0x1af1   :  { %5428 = vmatmul.mubr.msk.f32.vlgmr.msra.gmra.mxu0 %vm819_vm6, %v5599_v41  ;;  %v4268_v14 = vsel %vm819_vm6, %v5599_v41, 0.0 }
0x1af2   :  { %4269 = vadd.xlane.f32.xlu0 %v4268_v14  ;;  %5431 = vmatpush3.msra.mxu0 %v4283_v12  ;;  %v4888_v12 = vld [vmem:[#allocation29] ss:$0 sm:$0xff] }
0x1af3   :  { %5432 = vmatprep.subr.mxu0 %v4282_v43 }
0x1af4   :  { %v5601_v63 = vpop.eup %5600  ;;  %5433 = vmatpush3.msra.mxu0 %v4282_v43 }
0x1af5   :  { %v3912_v20 = vmul.f32 %v5601_v63, %v7051_v39 }
0x1af6   :  { %3017 = vadd.xlane.f32.xlu0 %v3016_v15 }
0x1af7   :  { %3914 = vrot.lane.b32.xlu1 %v3912_v20, %s6162_s26 }
0x1af8   :  { %v5603_v17 = vpop.eup %5602 }
0x1af9   :  { %v3557_v9 = vmul.f32 %v5603_v17, %v6994_v1  ;;  %v5605_v57 = vpop.eup %5604  ;;  %v3200_v1 = vpop.permute.xlu1 %3199 }
0x1afa   :  { %3733 = vadd.xlane.f32.xlu0 %v3732_v21  ;;  %v3377_v22 = vmul.f32 %v5605_v57, %v6962_v52  ;;  %v4883_v21 = vld [vmem:[#allocation30] ss:$0 sm:$0xff] }
0x1afb   :  { %3559 = vrot.lane.b32.xlu1 %v3557_v9, %s6163_s28 }
0x1afc   :  { %v5607_v24 = vpop.eup %5606 }
0x1afd   :  { %v4092_v25 = vmul.f32 %v5607_v24, %v4084_v40 }
0x1b10   :  { %3379 = vrot.lane.b32.xlu0 %v3377_v22, %s6164_s1 }
0x1b14   :  { %4094 = vrot.lane.b32.xlu0 %v4092_v25, %s6164_s1 }
0x1b69   :  { %v3915_v44 = vpop.permute.xlu1 %3914 }
0x1b6d   :  { %v3560_v32 = vpop.permute.xlu1 %3559 }
0x1b7b   :  { %v4270_v26 = vpop.xlane.xlu0 %4269 }
0x1b7f   :  { %v3018_v27 = vpop.xlane.xlu0 %3017 }
0x1b80   :  { %5608 = vrcp.f32 %v3018_v27 }
0x1b83   :  { %v3734_v13 = vpop.xlane.xlu0 %3733 }
0x1b84   :  { %5610 = vrcp.f32 %v3734_v13  ;;  %v4515_v13 = vld [vmem:[%s7208_s29 + $0x18] sm:$0xff] }
0x1b85   :  { %5612 = vrcp.f32 %v4270_v26 }
0x1b87   :  { %v3380_v30 = vpop.permute.xlu0 %3379 }
0x1b8d   :  { %v5609_v29 = vpop.eup %5608 }
0x1b8e   :  { %v3020_v28 = vmul.f32 %v5609_v29, %v6958_v48  ;;  %v4095_v48 = vpop.permute.xlu0 %4094  ;;  %v4512_v29 = vld [vmem:[%s7208_s29] sm:$0xff] }
0x1b90   :  { %3021 = vst.msk [vmem:[#allocation3] sm:$0xff] %vm737_vm4, %v3020_v28  ;;  %v4885_v28 = vld [vmem:[#allocation27] ss:$0 sm:$0xff] }
0x1b91   :  { %v5611_v52 = vpop.eup %5610  ;;  %3202 = vst.msk [vmem:[#allocation3] sm:$0xff] %vm1089_vm7, %v3200_v1  ;;  %v4514_v1 = vld [vmem:[%s7208_s29 + $0x10] sm:$0xff] }
0x1b92   :  { %v3736_v39 = vmul.f32 %v5611_v52, %v7026_v19  ;;  %3382 = vst.msk [vmem:[#allocation3] sm:$0xff] %vm1270_vm8, %v3380_v30  ;;  %v4281_v19 = vld [vmem:[%s7206_s24 + $0x8] sm:$0xff]  ;;  %v5613_v49 = vpop.eup %5612 }
0x1b93   :  { %3562 = vst.msk [vmem:[#allocation3] sm:$0xff] %vm1451_vm9, %v3560_v32  ;;  %5434 = vmatprep.subr.mxu0 %v4281_v19 }
0x1b94   :  { %3737 = vst.msk [vmem:[#allocation3 + $0x8] sm:$0xff] %vm737_vm4, %v3736_v39  ;;  %5435 = vmatpush3.msra.mxu0 %v4281_v19 }
0x1b95   :  { %3917 = vst.msk [vmem:[#allocation3 + $0x8] sm:$0xff] %vm1089_vm7, %v3915_v44  ;;  %5436 = vmatprep.subr.mxu0 %v4280_v46  ;;  %v4513_v44 = vld [vmem:[%s7208_s29 + $0x8] sm:$0xff] }
0x1b96   :  { %4097 = vst.msk [vmem:[#allocation3 + $0x8] sm:$0xff] %vm1270_vm8, %v4095_v48  ;;  %5437 = vmatpush3.msra.mxu0 %v4280_v46 }
0x1b97   :  { %5452 = vmatprep.subr.mxu0 %v4519_v10 }
0x1b9a   :  { %v4278_v34 = vld [vmem:[#allocation3] sm:$0xff] }
0x1b9b   :  { %5438 = vmatprep.mubr.msk.f32.mxu0 %vm430_vm1, %v4278_v34 }
0x1bb1   :  { %v4264_v35 = vpop.f32.mrf.mxu0 }
0x1bb2   :  { %v4272_v31 = vmul.f32 %v5613_v49, %v4264_v35 }
0x1bb3   :  { %v5429_v38 = vpop.f32.mrf.mxu0 }
0x1bb4   :  { %4274 = vrot.lane.b32.xlu1 %v4272_v31, %s6163_s28 }
0x1c26   :  { %v4275_v53 = vpop.permute.xlu1 %4274 }
0x1c27   :  { %4277 = vst.msk [vmem:[#allocation3 + $0x8] sm:$0xff] %vm1451_vm9, %v4275_v53 }
0x1c2e   :  { %v4279_v54 = vld [vmem:[#allocation3 + $0x8] sm:$0xff] }
0x1c2f   :  { %5439 = vmatmul.mubr.msk.f32.vlgmr.msra.gmra.mxu0 %vm430_vm1, %v4279_v54 }
0x1c30   :  { %5453 = vmatpush3.msra.mxu0 %v4519_v10 }
0x1c31   :  { %5454 = vmatprep.subr.mxu0 %v4518_v5 }
0x1c32   :  { %5455 = vmatpush3.msra.mxu0 %v4518_v5 }
0x1c33   :  { %5456 = vmatprep.subr.mxu0 %v4517_v33 }
0x1c34   :  { %5457 = vmatpush3.msra.mxu0 %v4517_v33 }
0x1c35   :  { %5458 = vmatprep.subr.mxu0 %v4516_v11 }
0x1c36   :  { %5459 = vmatpush3.msra.mxu0 %v4516_v11 }
0x1c37   :  { %5460 = vmatprep.subr.mxu0 %v4515_v13 }
0x1c38   :  { %5461 = vmatpush3.msra.mxu0 %v4515_v13 }
0x1c39   :  { %5462 = vmatprep.subr.mxu0 %v4514_v1 }
0x1c3a   :  { %5463 = vmatpush3.msra.mxu0 %v4514_v1  ;;  %v4893_v1 = vld [vmem:[%s7209_s10] ss:$0 sm:$0xff] }
0x1c3b   :  { %5464 = vmatprep.subr.mxu0 %v4513_v44 }
0x1c3c   :  { %5465 = vmatpush3.msra.mxu0 %v4513_v44 }
0x1c3d   :  { %5466 = vmatprep.subr.mxu0 %v4512_v29 }
0x1c3e   :  { %5467 = vmatpush3.msra.mxu0 %v4512_v29 }
0x1cef   :  { %v5440_v58 = vpop.f32.mrf.mxu0 }
0x1cf0   :  { %v4369_v60 = vadd.f32 %v5440_v58, %v4880_v56 }
0x1cf1   :  { %v4363_v45 = vpop.f32.mrf.mxu0 }
0x1cf2   :  { %v4373_v36 = vadd.f32 %v4369_v60, %v6793_v16  ;;  %v4364_v37 = vadd.f32 %v4880_v56, %v4363_v45 }
0x1cf4   :  { %v4372_v47 = vadd.f32 %v4364_v37, %v6795_v18  ;;  %v4379_v61 = vsel %vm430_vm1, %v4373_v36, 0.0 }
0x1cf5   :  { %4380 = vadd.xlane.f32.xlu1 %v4379_v61 }
0x1cf6   :  { %v4376_v62 = vsel %vm430_vm1, %v4372_v47, 0.0 }
0x1cf7   :  { %4377 = vadd.xlane.f32.xlu0 %v4376_v62 }
0x1d7e   :  { %v4381_v40 = vpop.xlane.xlu1 %4380 }
0x1d7f   :  { %v4383_v4 = vmul.f32 0.03125, %v4381_v40 }
0x1d80   :  { %v4378_v3 = vpop.xlane.xlu0 %4377 }
0x1d81   :  { %v4382_v42 = vmul.f32 0.03125, %v4378_v3  ;;  %v4385_v50 = vsub.f32 %v4373_v36, %v4383_v4 }
0x1d83   :  { %v4384_v2 = vsub.f32 %v4372_v47, %v4382_v42  ;;  %v4387_v18 = vmul.f32 %v4385_v50, %v4385_v50 }
0x1d85   :  { %v4386_v16 = vmul.f32 %v4384_v2, %v4384_v2  ;;  %v4391_v6 = vsel %vm430_vm1, %v4387_v18, 0.0 }
0x1d87   :  { %v4388_v0 = vsel %vm430_vm1, %v4386_v16, 0.0 }
0x1d88   :  { %4389 = vadd.xlane.f32.xlu0 %v4388_v0  ;;  %v4891_v0 = vld [vmem:[#allocation33] ss:$0 sm:$0xff] }
0x1d8c   :  { %4392 = vadd.xlane.f32.xlu0 %v4391_v6 }
0x1e11   :  { %v4390_v55 = vpop.xlane.xlu0 %4389 }
0x1e12   :  { %v4394_v41 = vmul.f32 0.03125, %v4390_v55 }
0x1e14   :  { %v4396_v14 = vadd.f32 1e-05, %v4394_v41 }
0x1e15   :  { %v4393_v63 = vpop.xlane.xlu0 %4392 }
0x1e16   :  { %5614 = vrsqrt.f32 %v4396_v14  ;;  %v4395_v15 = vmul.f32 0.03125, %v4393_v63 }
0x1e18   :  { %v4397_v20 = vadd.f32 1e-05, %v4395_v15 }
0x1e1a   :  { %5616 = vrsqrt.f32 %v4397_v20 }
0x1e23   :  { %v5615_v17 = vpop.eup %5614 }
0x1e24   :  { %v4400_v9 = vmul.f32 %v5615_v17, %v4384_v2 }
0x1e26   :  { %v4408_v57 = vmul.f32 %v4883_v21, %v4400_v9 }
0x1e27   :  { %v5617_v22 = vpop.eup %5616 }
0x1e28   :  { %v4401_v24 = vmul.f32 %v5617_v22, %v4385_v50  ;;  %v4416_v25 = vadd.f32 %v4884_v23, %v4408_v57 }
0x1e2a   :  { %v4409_v26 = vmul.f32 %v4883_v21, %v4401_v24  ;;  %5449 = vmatprep.mubr.msk.f32.mxu1 %vm430_vm1, %v4416_v25 }
0x1e2c   :  { %v4417_v27 = vadd.f32 %v4884_v23, %v4409_v26 }
0x1e2e   :  { %5450 = vmatmul.mubr.msk.f32.vlgmr.msra.gmra.mxu1 %vm430_vm1, %v4417_v27 }
0x1eee   :  { %v5451_v30 = vpop.f32.mrf.mxu1 }
0x1eef   :  { %v4507_v52 = vadd.f32 %v5451_v30, %v4885_v28 }
0x1ef0   :  { %v4501_v32 = vpop.f32.mrf.mxu1 }
0x1ef1   :  { %v4502_v39 = vadd.f32 %v4885_v28, %v4501_v32  ;;  %v4511_v34 = vmax.f32 %v4507_v52, 0.0  ;;  %v4894_v28 = vld [vmem:[#allocation36] ss:$0 sm:$0xff] }
0x1ef3   :  { %v4510_v48 = vmax.f32 %v4502_v39, 0.0 }
0x1ef5   :  { %5468 = vmatprep.mubr.msk.f32.mxu0 %vm2418_vm10, %v4510_v48 }
0x1ef6   :  { %5469 = vmatmul.mubr.msk.f32.vlgmr.msra.gmra.mxu0 %vm2418_vm10, %v4511_v34 }
0x1fb6   :  { %v5470_v43 = vpop.f32.mrf.mxu0 }
0x1fb7   :  { %v4605_v19 = vadd.f32 %v5470_v43, %v4888_v12 }
0x1fb8   :  { %v4599_v46 = vpop.f32.mrf.mxu0 }
0x1fb9   :  { %v4609_v49 = vadd.f32 %v4605_v19, %v4417_v27  ;;  %v4600_v35 = vadd.f32 %v4888_v12, %v4599_v46 }
0x1fbb   :  { %v4608_v31 = vadd.f32 %v4600_v35, %v4416_v25  ;;  %v4615_v38 = vsel %vm430_vm1, %v4609_v49, 0.0 }
0x1fbc   :  { %4616 = vadd.xlane.f32.xlu0 %v4615_v38 }
0x1fbd   :  { %v4612_v53 = vsel %vm430_vm1, %v4608_v31, 0.0 }
0x1fbe   :  { %4613 = vadd.xlane.f32.xlu1 %v4612_v53 }
0x2045   :  { %v4617_v54 = vpop.xlane.xlu0 %4616 }
0x2046   :  { %v4619_v56 = vmul.f32 0.03125, %v4617_v54 }
0x2047   :  { %v4614_v58 = vpop.xlane.xlu1 %4613 }
0x2048   :  { %v4621_v60 = vsub.f32 %v4609_v49, %v4619_v56  ;;  %v4618_v45 = vmul.f32 0.03125, %v4614_v58 }
0x204a   :  { %v4620_v36 = vsub.f32 %v4608_v31, %v4618_v45  ;;  %v4623_v37 = vmul.f32 %v4621_v60, %v4621_v60 }
0x204c   :  { %v4627_v47 = vsel %vm430_vm1, %v4623_v37, 0.0  ;;  %v4622_v61 = vmul.f32 %v4620_v36, %v4620_v36 }
0x204d   :  { %4628 = vadd.xlane.f32.xlu0 %v4627_v47 }
0x204e   :  { %v4624_v62 = vsel %vm430_vm1, %v4622_v61, 0.0 }
0x204f   :  { %4625 = vadd.xlane.f32.xlu1 %v4624_v62 }
0x20d6   :  { %v4629_v40 = vpop.xlane.xlu0 %4628 }
0x20d7   :  { %v4631_v4 = vmul.f32 0.03125, %v4629_v40 }
0x20d8   :  { %v4626_v3 = vpop.xlane.xlu1 %4625 }
0x20d9   :  { %v4633_v42 = vadd.f32 1e-05, %v4631_v4  ;;  %v4630_v50 = vmul.f32 0.03125, %v4626_v3 }
0x20db   :  { %5618 = vrsqrt.f32 %v4633_v42  ;;  %v4632_v2 = vadd.f32 1e-05, %v4630_v50 }
0x20dd   :  { %5620 = vrsqrt.f32 %v4632_v2 }
0x20e8   :  { %v5619_v16 = vpop.eup %5618 }
0x20e9   :  { %v4637_v18 = vmul.f32 %v5619_v16, %v4621_v60 }
0x20ea   :  { %v5621_v6 = vpop.eup %5620 }
0x20eb   :  { %v4645_v51 = vmul.f32 %v4891_v0, %v4637_v18  ;;  %v4636_v7 = vmul.f32 %v5621_v6, %v4620_v36 }
0x20ed   :  { %v4653_v8 = vadd.f32 %v4892_v59, %v4645_v51  ;;  %v4644_v10 = vmul.f32 %v4891_v0, %v4636_v7 }
0x20ef   :  { %v4659_v5 = vsel %vm430_vm1, %v4653_v8, 0.0  ;;  %v4652_v33 = vadd.f32 %v4892_v59, %v4644_v10 }
0x20f0   :  { %4660 = vadd.xlane.f32.xlu0 %v4659_v5 }
0x20f1   :  { %v4656_v11 = vsel %vm430_vm1, %v4652_v33, 0.0 }
0x20f2   :  { %4657 = vadd.xlane.f32.xlu1 %v4656_v11 }
0x2179   :  { %v4661_v55 = vpop.xlane.xlu0 %4660 }
0x217a   :  { %v4663_v41 = vmul.f32 0.03125, %v4661_v55 }
0x217b   :  { %v4658_v14 = vpop.xlane.xlu1 %4657 }
0x217c   :  { %v4665_v63 = vsub.f32 %v4653_v8, %v4663_v41  ;;  %v4662_v15 = vmul.f32 0.03125, %v4658_v14 }
0x217e   :  { %v4664_v20 = vsub.f32 %v4652_v33, %v4662_v15  ;;  %v4667_v17 = vmul.f32 %v4665_v63, %v4665_v63 }
0x2180   :  { %v4671_v21 = vsel %vm430_vm1, %v4667_v17, 0.0  ;;  %v4666_v9 = vmul.f32 %v4664_v20, %v4664_v20 }
0x2181   :  { %4672 = vadd.xlane.f32.xlu0 %v4671_v21 }
0x2182   :  { %v4668_v23 = vsel %vm430_vm1, %v4666_v9, 0.0 }
0x2183   :  { %4669 = vadd.xlane.f32.xlu1 %v4668_v23 }
0x220a   :  { %v4673_v57 = vpop.xlane.xlu0 %4672 }
0x220b   :  { %v4675_v22 = vmul.f32 0.03125, %v4673_v57 }
0x220c   :  { %v4670_v24 = vpop.xlane.xlu1 %4669 }
0x220d   :  { %v4677_v25 = vadd.f32 1e-05, %v4675_v22  ;;  %v4674_v26 = vmul.f32 0.03125, %v4670_v24 }
0x220f   :  { %5622 = vrsqrt.f32 %v4677_v25  ;;  %v4676_v27 = vadd.f32 1e-05, %v4674_v26 }
0x2211   :  { %5624 = vrsqrt.f32 %v4676_v27 }
0x221c   :  { %v5623_v13 = vpop.eup %5622 }
0x221d   :  { %v4681_v44 = vmul.f32 %v5623_v13, %v4665_v63 }
0x221e   :  { %v5625_v29 = vpop.eup %5624 }
0x221f   :  { %v4689_v30 = vmul.f32 %v4893_v1, %v4681_v44  ;;  %v4680_v52 = vmul.f32 %v5625_v29, %v4664_v20 }
0x2221   :  { %v4697_v32 = vadd.f32 %v4894_v28, %v4689_v30  ;;  %v4688_v39 = vmul.f32 %v4893_v1, %v4680_v52 }
0x2223   :  { %4699 = vst.msk [vmem:[%s6368_s6 + $0x8] sm:$0xff] %vm430_vm1, %v4697_v32  ;;  %v4696_v48 = vadd.f32 %v4894_v28, %v4688_v39 }
0x2225   :  { %4698 = vst.msk [vmem:[%s6368_s6] sm:$0xff] %vm430_vm1, %v4696_v48 }
0x2226   :  { %4712 = vsyncpa [#allocation5], 1 }
0x2227   :  { %4713 = vsyncpa [#allocation7], 1 }
0x2228   :  { %4714 = vsyncpa [#allocation10], 1 }
0x2229   :  { %4715 = vsyncpa [#allocation13], 1 }
0x222a   :  { %4716 = vsyncpa [#allocation16], 1 }
0x222b   :  { %4717 = vsyncpa [#allocation19], 1 }
0x222c   :  { %4718 = vsyncpa [#allocation22], 1 }
0x222d   :  { %4719 = vsyncpa [#allocation25], 1 }
0x222e   :  { %4720 = vsyncpa [#allocation28], 1 }
0x222f   :  { %4721 = vsyncpa [#allocation31], 1 }
0x2230   :  { %4722 = vsyncpa [#allocation34], 1 }
0x2231   :  { %4723 = vsyncpa [#allocation37], 1 }

</bundles_post_ra>
